<compile_context>
chip_gen: v5e
topology: v5e:2x2
jax: 0.10.0
libtpu: 0.0.40
codegen_flags: <defaults>
</compile_context>

<pallas_src>
import jax
import jax.numpy as jnp
from jax import lax
from jax.experimental import pallas as pl
from jax.experimental.pallas import tpu as pltpu

INPUT_SIZE = 128   # input_size
HIDDEN = 256       # output_size (bigger_discrim=True)
N_CLASS = 1        # n_class
BN_EPS = 1e-5


def discriminator_kernel(
    x_ref,                 # (B, 128)   bf16  VMEM
    w1_ref,                # (128, 256) bf16  VMEM
    g1_ref, be1_ref,       # (1, 256)   f32   VMEM
    w2_hbm,                # (256, 256) bf16  HBM (pl.ANY, manual DMA)
    g2_ref, be2_ref,       # (1, 256)   f32   VMEM
    w3t_hbm,               # (1, 256)   bf16  HBM (pl.ANY, manual DMA)
    b3_ref,                # (1, 1)     f32   SMEM scalar
    o_ref,                 # (1, B)     f32   VMEM, lane-dense output
    w2_vmem,               # (256, 256) bf16  VMEM scratch
    w3t_vmem,              # (1, 256)   bf16  VMEM scratch
    dma_sem,               # DMA semaphores, shape (2,)
):
    # Kick off the fc2 / fc3 weight fetches so they overlap fc1 + BN1 compute.
    w2_cp = pltpu.make_async_copy(w2_hbm, w2_vmem, dma_sem.at[0])
    w3_cp = pltpu.make_async_copy(w3t_hbm, w3t_vmem, dma_sem.at[1])
    w2_cp.start()
    w3_cp.start()

    B = x_ref.shape[0]
    inv_b = 1.0 / float(B)

    def bn_relu(h, gamma, beta):
        # Exact full-batch stats via VPU/XLU sublane reductions (MXU stays free
        # for the fc matmuls).  Two-pass, mean-centered variance in f32.
        mu = jnp.sum(h, axis=0, keepdims=True) * inv_b
        c = h - mu
        var = jnp.sum(c * c, axis=0, keepdims=True) * inv_b
        # BN affine folded into a single per-feature scale (+ beta shift).
        scale = gamma * lax.rsqrt(var + BN_EPS)
        # Emit bf16 directly: the next consumer is an MXU matmul.
        return jnp.maximum(c * scale + beta, 0.0).astype(jnp.bfloat16)

    # fc1 (+BN1+ReLU).  Bias dropped: exactly cancelled by batch-mean subtraction.
    h1 = jnp.dot(x_ref[...], w1_ref[...], preferred_element_type=jnp.float32)
    h1 = bn_relu(h1, g1_ref[...], be1_ref[...])            # (B, 256) bf16

    # fc2 (+BN2+ReLU).  Bias dropped for the same reason.
    w2_cp.wait()
    h2 = jnp.dot(h1, w2_vmem[...], preferred_element_type=jnp.float32)
    h2 = bn_relu(h2, g2_ref[...], be2_ref[...])            # (B, 256) bf16

    # fc3: lane-dense (1, B) output, contracting the 256-feature axis.
    w3_cp.wait()
    out_t = jnp.einsum("ok,bk->ob", w3t_vmem[...], h2,
                       preferred_element_type=jnp.float32)
    o_ref[...] = out_t + b3_ref[0, 0]


@jax.jit
def discriminator_forward(x, params):
    """x: (B, 128) f32.  Returns (B, 1) f32, matching the PyTorch forward."""
    (w1, b1, g1, be1, w2, b2, g2, be2, w3, b3) = params
    del b1, b2  # exactly cancelled by the following training-mode BatchNorm

    B = x.shape[0]
    w1b = w1.astype(jnp.bfloat16)
    w2b = w2.astype(jnp.bfloat16)
    w3tb = w3.T.astype(jnp.bfloat16)                  # (1, 256)
    b3s = b3.reshape(1, 1).astype(jnp.float32)        # SMEM scalar

    vmem = pltpu.MemorySpace.VMEM
    out_t = pl.pallas_call(
        discriminator_kernel,
        out_shape=jax.ShapeDtypeStruct((1, B), jnp.float32),
        in_specs=[
            pl.BlockSpec(memory_space=vmem),                     # x
            pl.BlockSpec(memory_space=vmem),                     # w1
            pl.BlockSpec(memory_space=vmem),                     # gamma1
            pl.BlockSpec(memory_space=vmem),                     # beta1
            pl.BlockSpec(memory_space=pl.ANY),                   # w2 (HBM)
            pl.BlockSpec(memory_space=vmem),                     # gamma2
            pl.BlockSpec(memory_space=vmem),                     # beta2
            pl.BlockSpec(memory_space=pl.ANY),                   # w3^T (HBM)
            pl.BlockSpec(memory_space=pltpu.MemorySpace.SMEM),   # b3
        ],
        out_specs=pl.BlockSpec(memory_space=vmem),
        scratch_shapes=[
            pltpu.VMEM((HIDDEN, HIDDEN), jnp.bfloat16),   # w2 landing buffer
            pltpu.VMEM((1, HIDDEN), jnp.bfloat16),        # w3^T landing buffer
            pltpu.SemaphoreType.DMA((2,)),
        ],
    )(x.astype(jnp.bfloat16), w1b, g1, be1, w2b, g2, be2, w3tb, b3s)

    return out_t.reshape(B, N_CLASS)


def init_params(key):
    """Deterministic synthetic parameters (shapes match the PyTorch module).
    Linear weights are stored [in, out] (transposed vs nn.Linear)."""
    ks = jax.random.split(key, 6)
    s1 = 1.0 / jnp.sqrt(INPUT_SIZE)
    s2 = 1.0 / jnp.sqrt(HIDDEN)

    w1 = jax.random.uniform(ks[0], (INPUT_SIZE, HIDDEN), jnp.float32, -s1, s1)
    b1 = jax.random.uniform(ks[1], (1, HIDDEN), jnp.float32, -s1, s1)
    g1 = jnp.ones((1, HIDDEN), jnp.float32)
    be1 = jnp.zeros((1, HIDDEN), jnp.float32)

    w2 = jax.random.uniform(ks[2], (HIDDEN, HIDDEN), jnp.float32, -s2, s2)
    b2 = jax.random.uniform(ks[3], (1, HIDDEN), jnp.float32, -s2, s2)
    g2 = jnp.ones((1, HIDDEN), jnp.float32)
    be2 = jnp.zeros((1, HIDDEN), jnp.float32)

    w3 = jax.random.uniform(ks[4], (HIDDEN, N_CLASS), jnp.float32, -s2, s2)
    b3 = jax.random.uniform(ks[5], (1, N_CLASS), jnp.float32, -s2, s2)

    return (w1, b1, g1, be1, w2, b2, g2, be2, w3, b3)


def reference_forward(x, params):
    """Pure-JAX reference with the PyTorch module's training-mode semantics
    (biases kept, two-pass batch variance), using the same bf16 matmul inputs
    as the kernel."""
    (w1, b1, g1, be1, w2, b2, g2, be2, w3, b3) = params

    def bn_relu(h, g, be):
        mu = jnp.mean(h, axis=0, keepdims=True)
        var = jnp.mean((h - mu) ** 2, axis=0, keepdims=True)
        return jnp.maximum((h - mu) * lax.rsqrt(var + BN_EPS) * g + be, 0.0)

    xb = x.astype(jnp.bfloat16)
    h = jnp.dot(xb, w1.astype(jnp.bfloat16),
                preferred_element_type=jnp.float32) + b1
    h = bn_relu(h, g1, be1)
    h = jnp.dot(h.astype(jnp.bfloat16), w2.astype(jnp.bfloat16),
                preferred_element_type=jnp.float32) + b2
    h = bn_relu(h, g2, be2)
    out = jnp.dot(h.astype(jnp.bfloat16), w3.astype(jnp.bfloat16),
                  preferred_element_type=jnp.float32) + b3
    return out


if __name__ == "__main__":
    key = jax.random.PRNGKey(0)
    kx, kp = jax.random.split(key)

    B = 256  # MXU-row-aligned batch (2x256^2 on v6e/v7x, 2x(4x128^2) on v5e)
    x = jax.random.normal(kx, (B, INPUT_SIZE), jnp.float32)
    params = init_params(kp)

    out = discriminator_forward(x, params)
    jax.block_until_ready(out)

    ref = reference_forward(x, params)
    assert out.shape == (B, N_CLASS)
    assert jnp.allclose(out, ref, atol=1e-2, rtol=1e-2), (
        "mismatch vs reference: max abs diff = %s"
        % float(jnp.max(jnp.abs(out - ref))))

    print("KERNEL_OK")
</pallas_src>

<mosaic_0001>
module attributes {stable_mosaic.version = 11 : i64} {
  func.func @discriminator_kernel(%arg0: memref<256x128xbf16, #tpu.memory_space<vmem>>, %arg1: memref<128x256xbf16, #tpu.memory_space<vmem>>, %arg2: memref<1x256xf32, #tpu.memory_space<vmem>>, %arg3: memref<1x256xf32, #tpu.memory_space<vmem>>, %arg4: memref<256x256xbf16, #tpu.memory_space<any>>, %arg5: memref<1x256xf32, #tpu.memory_space<vmem>>, %arg6: memref<1x256xf32, #tpu.memory_space<vmem>>, %arg7: memref<1x256xbf16, #tpu.memory_space<any>>, %arg8: memref<1x1xf32, #tpu.memory_space<smem>>, %arg9: memref<1x256xf32, #tpu.memory_space<vmem>>, %arg10: memref<256x256xbf16, #tpu.memory_space<vmem>>, %arg11: memref<1x256xbf16, #tpu.memory_space<vmem>>, %arg12: memref<2x!tpu.dma_semaphore, #tpu.memory_space<semaphore_mem>>) attributes {dimension_semantics = [], scalar_prefetch = 0 : i64, scratch_operands = 3 : i64, tpu.core_type = #tpu.core_type<tc>} {
    %c0_i32 = arith.constant 0 : i32
    %0 = tpu.memref_slice %arg12[%c0_i32] : memref<2x!tpu.dma_semaphore, #tpu.memory_space<semaphore_mem>> -> memref<1x!tpu.dma_semaphore, #tpu.memory_space<semaphore_mem>>
    %1 = tpu.memref_squeeze %0 : memref<1x!tpu.dma_semaphore, #tpu.memory_space<semaphore_mem>> -> memref<!tpu.dma_semaphore, #tpu.memory_space<semaphore_mem>>
    tpu.enqueue_dma source(%arg4 : memref<256x256xbf16, #tpu.memory_space<any>>) target(%arg10 : memref<256x256xbf16, #tpu.memory_space<vmem>>) target_semaphore(%1 : memref<!tpu.dma_semaphore, #tpu.memory_space<semaphore_mem>>)
    %c1_i32 = arith.constant 1 : i32
    %2 = tpu.memref_slice %arg12[%c1_i32] : memref<2x!tpu.dma_semaphore, #tpu.memory_space<semaphore_mem>> -> memref<1x!tpu.dma_semaphore, #tpu.memory_space<semaphore_mem>>
    %3 = tpu.memref_squeeze %2 : memref<1x!tpu.dma_semaphore, #tpu.memory_space<semaphore_mem>> -> memref<!tpu.dma_semaphore, #tpu.memory_space<semaphore_mem>>
    tpu.enqueue_dma source(%arg7 : memref<1x256xbf16, #tpu.memory_space<any>>) target(%arg11 : memref<1x256xbf16, #tpu.memory_space<vmem>>) target_semaphore(%3 : memref<!tpu.dma_semaphore, #tpu.memory_space<semaphore_mem>>)
    %c0 = arith.constant 0 : index
    %c0_0 = arith.constant 0 : index
    %4 = vector.load %arg0[%c0, %c0_0] : memref<256x128xbf16, #tpu.memory_space<vmem>>, vector<256x128xbf16>
    %c0_1 = arith.constant 0 : index
    %c0_2 = arith.constant 0 : index
    %5 = vector.load %arg1[%c0_1, %c0_2] : memref<128x256xbf16, #tpu.memory_space<vmem>>, vector<128x256xbf16>
    %cst = arith.constant dense<0.000000e+00> : vector<256x256xf32>
    %6 = tpu.matmul %4, %5, %cst {dimension_numbers = #tpu.dot_dimension_numbers<[1], [0], [0], [1], [0, 0, 1, 1], [], []>} : vector<256x128xbf16>, vector<128x256xbf16>, vector<256x256xf32> -> vector<256x256xf32>
    %c0_3 = arith.constant 0 : index
    %c0_4 = arith.constant 0 : index
    %7 = vector.load %arg2[%c0_3, %c0_4] : memref<1x256xf32, #tpu.memory_space<vmem>>, vector<1x256xf32>
    %c0_5 = arith.constant 0 : index
    %c0_6 = arith.constant 0 : index
    %8 = vector.load %arg3[%c0_5, %c0_6] : memref<1x256xf32, #tpu.memory_space<vmem>>, vector<1x256xf32>
    %cst_7 = arith.constant dense<0.000000e+00> : vector<256xf32>
    %9 = vector.multi_reduction <add>, %6, %cst_7 [0] : vector<256x256xf32> to vector<256xf32>
    %10 = vector.shape_cast %9 : vector<256xf32> to vector<1x256xf32>
    %cst_8 = arith.constant 3.906250e-03 : f32
    %11 = vector.broadcast %cst_8 : f32 to vector<1x256xf32>
    %12 = arith.mulf %10, %11 : vector<1x256xf32>
    %13 = vector.broadcast %12 : vector<1x256xf32> to vector<256x256xf32>
    %14 = arith.subf %6, %13 : vector<256x256xf32>
    %15 = arith.mulf %14, %14 : vector<256x256xf32>
    %cst_9 = arith.constant dense<0.000000e+00> : vector<256xf32>
    %16 = vector.multi_reduction <add>, %15, %cst_9 [0] : vector<256x256xf32> to vector<256xf32>
    %17 = vector.shape_cast %16 : vector<256xf32> to vector<1x256xf32>
    %cst_10 = arith.constant 3.906250e-03 : f32
    %18 = vector.broadcast %cst_10 : f32 to vector<1x256xf32>
    %19 = arith.mulf %17, %18 : vector<1x256xf32>
    %cst_11 = arith.constant 9.99999974E-6 : f32
    %20 = vector.broadcast %cst_11 : f32 to vector<1x256xf32>
    %21 = arith.addf %19, %20 : vector<1x256xf32>
    %22 = math.rsqrt %21 : vector<1x256xf32>
    %23 = arith.mulf %7, %22 : vector<1x256xf32>
    %24 = vector.broadcast %23 : vector<1x256xf32> to vector<256x256xf32>
    %25 = arith.mulf %14, %24 : vector<256x256xf32>
    %26 = vector.broadcast %8 : vector<1x256xf32> to vector<256x256xf32>
    %27 = arith.addf %25, %26 : vector<256x256xf32>
    %cst_12 = arith.constant 0.000000e+00 : f32
    %28 = vector.broadcast %cst_12 : f32 to vector<256x256xf32>
    %29 = arith.maximumf %27, %28 : vector<256x256xf32>
    %30 = arith.truncf %29 : vector<256x256xf32> to vector<256x256xbf16>
    %c0_i32_13 = arith.constant 0 : i32
    %31 = tpu.memref_slice %arg12[%c0_i32_13] : memref<2x!tpu.dma_semaphore, #tpu.memory_space<semaphore_mem>> -> memref<1x!tpu.dma_semaphore, #tpu.memory_space<semaphore_mem>>
    %32 = tpu.memref_squeeze %31 : memref<1x!tpu.dma_semaphore, #tpu.memory_space<semaphore_mem>> -> memref<!tpu.dma_semaphore, #tpu.memory_space<semaphore_mem>>
    tpu.wait_dma2 semaphore(%32 : memref<!tpu.dma_semaphore, #tpu.memory_space<semaphore_mem>>) src(%arg4 : memref<256x256xbf16, #tpu.memory_space<any>>) dst(%arg10 : memref<256x256xbf16, #tpu.memory_space<vmem>>)
    %c0_14 = arith.constant 0 : index
    %c0_15 = arith.constant 0 : index
    %33 = vector.load %arg10[%c0_14, %c0_15] : memref<256x256xbf16, #tpu.memory_space<vmem>>, vector<256x256xbf16>
    %cst_16 = arith.constant dense<0.000000e+00> : vector<256x256xf32>
    %34 = tpu.matmul %30, %33, %cst_16 {dimension_numbers = #tpu.dot_dimension_numbers<[1], [0], [0], [1], [0, 0, 1, 1], [], []>} : vector<256x256xbf16>, vector<256x256xbf16>, vector<256x256xf32> -> vector<256x256xf32>
    %c0_17 = arith.constant 0 : index
    %c0_18 = arith.constant 0 : index
    %35 = vector.load %arg5[%c0_17, %c0_18] : memref<1x256xf32, #tpu.memory_space<vmem>>, vector<1x256xf32>
    %c0_19 = arith.constant 0 : index
    %c0_20 = arith.constant 0 : index
    %36 = vector.load %arg6[%c0_19, %c0_20] : memref<1x256xf32, #tpu.memory_space<vmem>>, vector<1x256xf32>
    %cst_21 = arith.constant dense<0.000000e+00> : vector<256xf32>
    %37 = vector.multi_reduction <add>, %34, %cst_21 [0] : vector<256x256xf32> to vector<256xf32>
    %38 = vector.shape_cast %37 : vector<256xf32> to vector<1x256xf32>
    %cst_22 = arith.constant 3.906250e-03 : f32
    %39 = vector.broadcast %cst_22 : f32 to vector<1x256xf32>
    %40 = arith.mulf %38, %39 : vector<1x256xf32>
    %41 = vector.broadcast %40 : vector<1x256xf32> to vector<256x256xf32>
    %42 = arith.subf %34, %41 : vector<256x256xf32>
    %43 = arith.mulf %42, %42 : vector<256x256xf32>
    %cst_23 = arith.constant dense<0.000000e+00> : vector<256xf32>
    %44 = vector.multi_reduction <add>, %43, %cst_23 [0] : vector<256x256xf32> to vector<256xf32>
    %45 = vector.shape_cast %44 : vector<256xf32> to vector<1x256xf32>
    %cst_24 = arith.constant 3.906250e-03 : f32
    %46 = vector.broadcast %cst_24 : f32 to vector<1x256xf32>
    %47 = arith.mulf %45, %46 : vector<1x256xf32>
    %cst_25 = arith.constant 9.99999974E-6 : f32
    %48 = vector.broadcast %cst_25 : f32 to vector<1x256xf32>
    %49 = arith.addf %47, %48 : vector<1x256xf32>
    %50 = math.rsqrt %49 : vector<1x256xf32>
    %51 = arith.mulf %35, %50 : vector<1x256xf32>
    %52 = vector.broadcast %51 : vector<1x256xf32> to vector<256x256xf32>
    %53 = arith.mulf %42, %52 : vector<256x256xf32>
    %54 = vector.broadcast %36 : vector<1x256xf32> to vector<256x256xf32>
    %55 = arith.addf %53, %54 : vector<256x256xf32>
    %cst_26 = arith.constant 0.000000e+00 : f32
    %56 = vector.broadcast %cst_26 : f32 to vector<256x256xf32>
    %57 = arith.maximumf %55, %56 : vector<256x256xf32>
    %58 = arith.truncf %57 : vector<256x256xf32> to vector<256x256xbf16>
    %c1_i32_27 = arith.constant 1 : i32
    %59 = tpu.memref_slice %arg12[%c1_i32_27] : memref<2x!tpu.dma_semaphore, #tpu.memory_space<semaphore_mem>> -> memref<1x!tpu.dma_semaphore, #tpu.memory_space<semaphore_mem>>
    %60 = tpu.memref_squeeze %59 : memref<1x!tpu.dma_semaphore, #tpu.memory_space<semaphore_mem>> -> memref<!tpu.dma_semaphore, #tpu.memory_space<semaphore_mem>>
    tpu.wait_dma2 semaphore(%60 : memref<!tpu.dma_semaphore, #tpu.memory_space<semaphore_mem>>) src(%arg7 : memref<1x256xbf16, #tpu.memory_space<any>>) dst(%arg11 : memref<1x256xbf16, #tpu.memory_space<vmem>>)
    %c0_28 = arith.constant 0 : index
    %c0_29 = arith.constant 0 : index
    %61 = vector.load %arg11[%c0_28, %c0_29] : memref<1x256xbf16, #tpu.memory_space<vmem>>, vector<1x256xbf16>
    "tpu.trace_start"() <{level = 10 : i32, message = "ok,bk->ob"}> : () -> ()
    %cst_30 = arith.constant dense<0.000000e+00> : vector<1x256xf32>
    %62 = tpu.matmul %61, %58, %cst_30 {dimension_numbers = #tpu.dot_dimension_numbers<[1], [1], [0], [0], [0, 0, 1, 0], [], []>} : vector<1x256xbf16>, vector<256x256xbf16>, vector<1x256xf32> -> vector<1x256xf32>
    "tpu.trace_stop"() : () -> ()
    %c0_31 = arith.constant 0 : index
    %c0_32 = arith.constant 0 : index
    %63 = memref.load %arg8[%c0_31, %c0_32] : memref<1x1xf32, #tpu.memory_space<smem>>
    %64 = vector.broadcast %63 : f32 to vector<1x256xf32>
    %65 = arith.addf %62, %64 : vector<1x256xf32>
    %c0_33 = arith.constant 0 : index
    %c0_34 = arith.constant 0 : index
    %66 = vector.load %arg9[%c0_33, %c0_34] : memref<1x256xf32, #tpu.memory_space<vmem>>, vector<1x256xf32>
    tpu.vector_store %arg9[%c0_33, %c0_34], %65 {strides = array<i32>} : memref<1x256xf32, #tpu.memory_space<vmem>>, vector<1x256xf32>,
    return
  }
}

</mosaic_0001>

<bundles_post_ra>
// kernel: discriminator_forward.1
= control target key start
LH: loop header
LB: loop body
LE: loop exit
PB: predicated region body
PF: predicated region fallthrough
CT: control target
= control target key end

     0   :  { %15 = vsyncpa [#allocation7], 0  ;;  %s5497_s0 = inlined_call_operand.vmem [shape: bf16[256,128], index: 0, kind: input, shape index: {}]   ;;  %s5498_s1 = inlined_call_operand.vmem [shape: bf16[128,256], index: 1, kind: input, shape index: {}]   ;;  %s5499_s2 = inlined_call_operand.vmem [shape: f32[1,256], index: 2, kind: input, shape index: {}]   ;;  %s5500_s3 = inlined_call_operand.vmem [shape: f32[1,256], index: 3, kind: input, shape index: {}]   ;;  %s5501_s4 = inlined_call_operand.vmem [shape: bf16[256,256], index: 4, kind: input, shape index: {}]   ;;  %s5502_s5 = inlined_call_operand.vmem [shape: f32[1,256], index: 5, kind: input, shape index: {}]   ;;  %s5503_s6 = inlined_call_operand.vmem [shape: f32[1,256], index: 6, kind: input, shape index: {}]   ;;  %s5504_s7 = inlined_call_operand.vmem [shape: bf16[1,256], index: 7, kind: input, shape index: {}]   ;;  %s5505_s8 = inlined_call_operand.<no memory space> [shape: f32[1,1], index: 8, kind: input, shape index: {}]   ;;  %s5506_s9 = inlined_call_operand.hbm [shape: f32[1,256], index: 9, kind: output, shape index: {}]  }
   0x1   :  { %v40_v0 = vld [vmem:[%s5501_s4] sm:$0xff]  ;;  %v42_v1 = vld [vmem:[%s5501_s4 + $0x8] sm:$0xff]  ;;  %v44_v2 = vld [vmem:[%s5501_s4 + $0x10] sm:$0xff] }
   0x2   :  { %41 = vst [vmem:[#allocation2] sm:$0xff] %v40_v0  ;;  %v46_v3 = vld [vmem:[%s5501_s4 + $0x18] sm:$0xff]  ;;  %v48_v4 = vld [vmem:[%s5501_s4 + $0x20] sm:$0xff]  ;;  %v50_v5 = vld [vmem:[%s5501_s4 + $0x28] sm:$0xff] }
   0x3   :  { %43 = vst [vmem:[#allocation2 + $0x8] sm:$0xff] %v42_v1  ;;  %v52_v6 = vld [vmem:[%s5501_s4 + $0x30] sm:$0xff]  ;;  %v54_v7 = vld [vmem:[%s5501_s4 + $0x38] sm:$0xff]  ;;  %v56_v8 = vld [vmem:[%s5501_s4 + $0x40] sm:$0xff] }
   0x4   :  { %45 = vst [vmem:[#allocation2 + $0x10] sm:$0xff] %v44_v2  ;;  %v58_v9 = vld [vmem:[%s5501_s4 + $0x48] sm:$0xff]  ;;  %v60_v10 = vld [vmem:[%s5501_s4 + $0x50] sm:$0xff]  ;;  %v62_v11 = vld [vmem:[%s5501_s4 + $0x58] sm:$0xff] }
   0x5   :  { %47 = vst [vmem:[#allocation2 + $0x18] sm:$0xff] %v46_v3  ;;  %v64_v12 = vld [vmem:[%s5501_s4 + $0x60] sm:$0xff]  ;;  %v66_v13 = vld [vmem:[%s5501_s4 + $0x68] sm:$0xff]  ;;  %v68_v14 = vld [vmem:[%s5501_s4 + $0x70] sm:$0xff] }
   0x6   :  { %49 = vst [vmem:[#allocation2 + $0x20] sm:$0xff] %v48_v4  ;;  %v70_v15 = vld [vmem:[%s5501_s4 + $0x78] sm:$0xff]  ;;  %v72_v16 = vld [vmem:[%s5501_s4 + $0x80] sm:$0xff]  ;;  %v74_v17 = vld [vmem:[%s5501_s4 + $0x88] sm:$0xff] }
   0x7   :  { %51 = vst [vmem:[#allocation2 + $0x28] sm:$0xff] %v50_v5  ;;  %v76_v18 = vld [vmem:[%s5501_s4 + $0x90] sm:$0xff]  ;;  %v78_v19 = vld [vmem:[%s5501_s4 + $0x98] sm:$0xff]  ;;  %v80_v20 = vld [vmem:[%s5501_s4 + $0xa0] sm:$0xff] }
   0x8   :  { %53 = vst [vmem:[#allocation2 + $0x30] sm:$0xff] %v52_v6  ;;  %v82_v21 = vld [vmem:[%s5501_s4 + $0xa8] sm:$0xff]  ;;  %v84_v22 = vld [vmem:[%s5501_s4 + $0xb0] sm:$0xff]  ;;  %v86_v23 = vld [vmem:[%s5501_s4 + $0xb8] sm:$0xff] }
   0x9   :  { %55 = vst [vmem:[#allocation2 + $0x38] sm:$0xff] %v54_v7  ;;  %v88_v24 = vld [vmem:[%s5501_s4 + $0xc0] sm:$0xff]  ;;  %v90_v25 = vld [vmem:[%s5501_s4 + $0xc8] sm:$0xff]  ;;  %v92_v26 = vld [vmem:[%s5501_s4 + $0xd0] sm:$0xff] }
   0xa   :  { %57 = vst [vmem:[#allocation2 + $0x40] sm:$0xff] %v56_v8  ;;  %v94_v27 = vld [vmem:[%s5501_s4 + $0xd8] sm:$0xff]  ;;  %v96_v28 = vld [vmem:[%s5501_s4 + $0xe0] sm:$0xff]  ;;  %v98_v29 = vld [vmem:[%s5501_s4 + $0xe8] sm:$0xff] }
   0xb   :  { %59 = vst [vmem:[#allocation2 + $0x48] sm:$0xff] %v58_v9  ;;  %v100_v30 = vld [vmem:[%s5501_s4 + $0xf0] sm:$0xff]  ;;  %v102_v31 = vld [vmem:[%s5501_s4 + $0xf8] sm:$0xff] }
   0xc   :  { %61 = vst [vmem:[#allocation2 + $0x50] sm:$0xff] %v60_v10 }
   0xd   :  { %63 = vst [vmem:[#allocation2 + $0x58] sm:$0xff] %v62_v11 }
   0xe   :  { %65 = vst [vmem:[#allocation2 + $0x60] sm:$0xff] %v64_v12 }
   0xf   :  { %67 = vst [vmem:[#allocation2 + $0x68] sm:$0xff] %v66_v13 }
  0x10   :  { %69 = vst [vmem:[#allocation2 + $0x70] sm:$0xff] %v68_v14 }
  0x11   :  { %71 = vst [vmem:[#allocation2 + $0x78] sm:$0xff] %v70_v15 }
  0x12   :  { %73 = vst [vmem:[#allocation2 + $0x80] sm:$0xff] %v72_v16 }
  0x13   :  { %75 = vst [vmem:[#allocation2 + $0x88] sm:$0xff] %v74_v17 }
  0x14   :  { %77 = vst [vmem:[#allocation2 + $0x90] sm:$0xff] %v76_v18 }
  0x15   :  { %79 = vst [vmem:[#allocation2 + $0x98] sm:$0xff] %v78_v19 }
  0x16   :  { %81 = vst [vmem:[#allocation2 + $0xa0] sm:$0xff] %v80_v20 }
  0x17   :  { %83 = vst [vmem:[#allocation2 + $0xa8] sm:$0xff] %v82_v21 }
  0x18   :  { %85 = vst [vmem:[#allocation2 + $0xb0] sm:$0xff] %v84_v22 }
  0x19   :  { %87 = vst [vmem:[#allocation2 + $0xb8] sm:$0xff] %v86_v23 }
  0x1a   :  { %89 = vst [vmem:[#allocation2 + $0xc0] sm:$0xff] %v88_v24 }
  0x1b   :  { %91 = vst [vmem:[#allocation2 + $0xc8] sm:$0xff] %v90_v25 }
  0x1c   :  { %93 = vst [vmem:[#allocation2 + $0xd0] sm:$0xff] %v92_v26 }
  0x1d   :  { %95 = vst [vmem:[#allocation2 + $0xd8] sm:$0xff] %v94_v27 }
  0x1e   :  { %97 = vst [vmem:[#allocation2 + $0xe0] sm:$0xff] %v96_v28 }
  0x1f   :  { %99 = vst [vmem:[#allocation2 + $0xe8] sm:$0xff] %v98_v29 }
  0x20   :  { %101 = vst [vmem:[#allocation2 + $0xf0] sm:$0xff] %v100_v30 }
  0x21   :  { %103 = vst [vmem:[#allocation2 + $0xf8] sm:$0xff] %v102_v31 }
  0x22   :  { %109 = vsyncadd [#allocation4], 4096  ;;  %v125_v32 = vld [vmem:[%s5504_s7] sm:$0x3] }
  0x23   :  { %126 = vst [vmem:[#allocation3] sm:$0x3] %v125_v32 }
  0x24   :  { %144 = vsyncadd [#allocation4 + $0x1], 32  ;;  %v2421_v33 = vld [vmem:[%s5498_s1 + $0x70] sm:$0xf]  ;;  %v2588_v34 = vld [vmem:[%s5498_s1 + $0x74] sm:$0xf0] }
  0x25   :  { %v2422_v35 = vor.u32 %v2588_v34, %v2421_v33  ;;  %v2587_v36 = vld [vmem:[%s5498_s1 + $0x74] sm:$0xf]  ;;  %v2423_v37 = vld [vmem:[%s5498_s1 + $0x78] sm:$0xf0]  ;;  %v2413_v38 = vld [vmem:[%s5498_s1 + $0x60] sm:$0xf] }
  0x26   :  { %v2426_v39 = vor.u32 %v2587_v36, %v2423_v37  ;;  %v2586_v40 = vld [vmem:[%s5498_s1 + $0x64] sm:$0xf0]  ;;  %v2585_v41 = vld [vmem:[%s5498_s1 + $0x64] sm:$0xf]  ;;  %v2415_v42 = vld [vmem:[%s5498_s1 + $0x68] sm:$0xf0] }
  0x27   :  { %369 = vmatpush.bf16.msra.mxu0 %v2422_v35  ;;  %v2414_v43 = vor.u32 %v2586_v40, %v2413_v38  ;;  %2621 = vmatpush.bf16.msra.mxu2 %v2422_v35  ;;  %v2418_v44 = vor.u32 %v2585_v41, %v2415_v42  ;;  %v2405_v45 = vld [vmem:[%s5498_s1 + $0x50] sm:$0xf]  ;;  %v2584_v46 = vld [vmem:[%s5498_s1 + $0x54] sm:$0xf0]  ;;  %v2583_v47 = vld [vmem:[%s5498_s1 + $0x54] sm:$0xf] }
  0x28   :  { %458 = vmatpush.bf16.msra.mxu1 %v2426_v39  ;;  %2629 = vmatpush.bf16.msra.mxu3 %v2426_v39  ;;  %v2407_v48 = vld [vmem:[%s5498_s1 + $0x58] sm:$0xf0]  ;;  %v2406_v49 = vor.u32 %v2584_v46, %v2405_v45  ;;  %v2397_v51 = vld [vmem:[%s5498_s1 + $0x40] sm:$0xf]  ;;  %v2582_v52 = vld [vmem:[%s5498_s1 + $0x44] sm:$0xf0] }
  0x29   :  { %v2410_v50 = vor.u32 %v2583_v47, %v2407_v48  ;;  %v2581_v53 = vld [vmem:[%s5498_s1 + $0x44] sm:$0xf]  ;;  %v2399_v54 = vld [vmem:[%s5498_s1 + $0x48] sm:$0xf0]  ;;  %v2398_v55 = vor.u32 %v2582_v52, %v2397_v51  ;;  %v2389_v57 = vld [vmem:[%s5498_s1 + $0x30] sm:$0xf] }
  0x2a   :  { %v2402_v56 = vor.u32 %v2581_v53, %v2399_v54  ;;  %v2580_v58 = vld [vmem:[%s5498_s1 + $0x34] sm:$0xf0]  ;;  %v2579_v59 = vld [vmem:[%s5498_s1 + $0x34] sm:$0xf]  ;;  %v2391_v60 = vld [vmem:[%s5498_s1 + $0x38] sm:$0xf0] }
  0x2b   :  { %370 = vmatpush.bf16.msra.mxu0 %v2414_v43  ;;  %2622 = vmatpush.bf16.msra.mxu2 %v2414_v43  ;;  %v2390_v61 = vor.u32 %v2580_v58, %v2389_v57  ;;  %v2394_v62 = vor.u32 %v2579_v59, %v2391_v60  ;;  %v2381_v63 = vld [vmem:[%s5498_s1 + $0x20] sm:$0xf]  ;;  %v2578_v0 = vld [vmem:[%s5498_s1 + $0x24] sm:$0xf0]  ;;  %v2577_v1 = vld [vmem:[%s5498_s1 + $0x24] sm:$0xf] }
  0x2c   :  { %459 = vmatpush.bf16.msra.mxu1 %v2418_v44  ;;  %2630 = vmatpush.bf16.msra.mxu3 %v2418_v44  ;;  %v2383_v2 = vld [vmem:[%s5498_s1 + $0x28] sm:$0xf0]  ;;  %v2382_v3 = vor.u32 %v2578_v0, %v2381_v63  ;;  %v2373_v5 = vld [vmem:[%s5498_s1 + $0x10] sm:$0xf]  ;;  %v2576_v6 = vld [vmem:[%s5498_s1 + $0x14] sm:$0xf0] }
  0x2d   :  { %v2386_v4 = vor.u32 %v2577_v1, %v2383_v2  ;;  %v2575_v7 = vld [vmem:[%s5498_s1 + $0x14] sm:$0xf]  ;;  %v2375_v8 = vld [vmem:[%s5498_s1 + $0x18] sm:$0xf0]  ;;  %v2374_v9 = vor.u32 %v2576_v6, %v2373_v5  ;;  %v2365_v11 = vld [vmem:[%s5498_s1] sm:$0xf] }
  0x2e   :  { %v2378_v10 = vor.u32 %v2575_v7, %v2375_v8  ;;  %v2574_v12 = vld [vmem:[%s5498_s1 + $0x4] sm:$0xf0]  ;;  %v2573_v13 = vld [vmem:[%s5498_s1 + $0x4] sm:$0xf]  ;;  %v2367_v14 = vld [vmem:[%s5498_s1 + $0x8] sm:$0xf0] }
  0x2f   :  { %371 = vmatpush.bf16.msra.mxu0 %v2406_v49  ;;  %2623 = vmatpush.bf16.msra.mxu2 %v2406_v49  ;;  %v2366_v15 = vor.u32 %v2574_v12, %v2365_v11  ;;  %v2370_v16 = vor.u32 %v2573_v13, %v2367_v14  ;;  %v2557_v17 = vld [vmem:[%s5497_s0] sm:$0xff]  ;;  %v2558_v18 = vld [vmem:[%s5497_s0 + $0x8] sm:$0xff]  ;;  %v2559_v19 = vld [vmem:[%s5497_s0 + $0x10] sm:$0xff]  ;;  %vm854_vm5 = vcmask 1040384  }
  0x30   :  { %460 = vmatpush.bf16.msra.mxu1 %v2410_v50  ;;  %2631 = vmatpush.bf16.msra.mxu3 %v2410_v50  ;;  %v2560_v20 = vld [vmem:[%s5497_s0 + $0x18] sm:$0xff]  ;;  %v2561_v21 = vld [vmem:[%s5497_s0 + $0x20] sm:$0xff]  ;;  %v2562_v23 = vld [vmem:[%s5497_s0 + $0x28] sm:$0xff] }
  0x31   :  { %v2568_v22 = vld [vmem:[%s5497_s0 + $0x58] sm:$0xff]  ;;  %v2569_v24 = vld [vmem:[%s5497_s0 + $0x60] sm:$0xff]  ;;  %v2563_v25 = vld [vmem:[%s5497_s0 + $0x30] sm:$0xff] }
  0x32   :  { %v2570_v26 = vld [vmem:[%s5497_s0 + $0x68] sm:$0xff]  ;;  %v2564_v27 = vld [vmem:[%s5497_s0 + $0x38] sm:$0xff]  ;;  %v2571_v28 = vld [vmem:[%s5497_s0 + $0x70] sm:$0xff] }
  0x33   :  { %372 = vmatpush.bf16.msra.mxu0 %v2398_v55  ;;  %2624 = vmatpush.bf16.msra.mxu2 %v2398_v55  ;;  %v2565_v29 = vld [vmem:[%s5497_s0 + $0x40] sm:$0xff]  ;;  %v2572_v33 = vld [vmem:[%s5497_s0 + $0x78] sm:$0xff]  ;;  %v2566_v35 = vld [vmem:[%s5497_s0 + $0x48] sm:$0xff] }
  0x34   :  { %461 = vmatpush.bf16.msra.mxu1 %v2402_v56  ;;  %2632 = vmatpush.bf16.msra.mxu3 %v2402_v56  ;;  %v2567_v40 = vld [vmem:[%s5497_s0 + $0x50] sm:$0xff] }
  0x37   :  { %373 = vmatpush.bf16.msra.mxu0 %v2390_v61  ;;  %2625 = vmatpush.bf16.msra.mxu2 %v2390_v61 }
  0x38   :  { %462 = vmatpush.bf16.msra.mxu1 %v2394_v62  ;;  %2633 = vmatpush.bf16.msra.mxu3 %v2394_v62 }
  0x3b   :  { %374 = vmatpush.bf16.msra.mxu0 %v2382_v3  ;;  %2626 = vmatpush.bf16.msra.mxu2 %v2382_v3 }
  0x3c   :  { %463 = vmatpush.bf16.msra.mxu1 %v2386_v4  ;;  %2634 = vmatpush.bf16.msra.mxu3 %v2386_v4 }
  0x3f   :  { %375 = vmatpush.bf16.msra.mxu0 %v2374_v9  ;;  %2627 = vmatpush.bf16.msra.mxu2 %v2374_v9 }
  0x40   :  { %464 = vmatpush.bf16.msra.mxu1 %v2378_v10  ;;  %2635 = vmatpush.bf16.msra.mxu3 %v2378_v10 }
  0x43   :  { %376 = vmatpush.bf16.msra.mxu0 %v2366_v15  ;;  %2628 = vmatpush.bf16.msra.mxu2 %v2366_v15 }
  0x44   :  { %465 = vmatpush.bf16.msra.mxu1 %v2370_v16  ;;  %2636 = vmatpush.bf16.msra.mxu3 %v2370_v16 }
  0x46   :  { %377 = vmatmul.bf16.vlgmr.msra.gmra.mxu0 %v2557_v17  ;;  %432 = vmatmul.bf16.vlgmr.msra.gmra.mxu2 %v2568_v22 }
  0x47   :  { %466 = vmatmul.bf16.vlgmr.msra.gmra.mxu1 %v2557_v17  ;;  %521 = vmatmul.bf16.vlgmr.msra.gmra.mxu3 %v2568_v22 }
  0x56   :  { %382 = vmatmul.bf16.gmra.mxu0 %v2558_v18  ;;  %437 = vmatmul.bf16.gmra.mxu2 %v2569_v24 }
  0x57   :  { %471 = vmatmul.bf16.gmra.mxu1 %v2558_v18  ;;  %526 = vmatmul.bf16.gmra.mxu3 %v2569_v24 }
  0x66   :  { %387 = vmatmul.bf16.gmra.mxu0 %v2559_v19  ;;  %442 = vmatmul.bf16.gmra.mxu2 %v2570_v26 }
  0x67   :  { %476 = vmatmul.bf16.gmra.mxu1 %v2559_v19  ;;  %531 = vmatmul.bf16.gmra.mxu3 %v2570_v26 }
  0x76   :  { %392 = vmatmul.bf16.gmra.mxu0 %v2560_v20  ;;  %447 = vmatmul.bf16.gmra.mxu2 %v2571_v28 }
  0x77   :  { %481 = vmatmul.bf16.gmra.mxu1 %v2560_v20  ;;  %536 = vmatmul.bf16.gmra.mxu3 %v2571_v28 }
  0x86   :  { %397 = vmatmul.bf16.gmra.mxu0 %v2561_v21  ;;  %452 = vmatmul.bf16.gmra.mxu2 %v2572_v33 }
  0x87   :  { %486 = vmatmul.bf16.gmra.mxu1 %v2561_v21  ;;  %541 = vmatmul.bf16.gmra.mxu3 %v2572_v33 }
  0x96   :  { %402 = vmatmul.bf16.gmra.mxu0 %v2562_v23 }
  0x97   :  { %491 = vmatmul.bf16.gmra.mxu1 %v2562_v23 }
  0xa6   :  { %407 = vmatmul.bf16.gmra.mxu0 %v2563_v25 }
  0xa7   :  { %496 = vmatmul.bf16.gmra.mxu1 %v2563_v25 }
  0xb6   :  { %412 = vmatmul.bf16.gmra.mxu0 %v2564_v27 }
  0xb7   :  { %501 = vmatmul.bf16.gmra.mxu1 %v2564_v27 }
  0xc3   :  { %v2961_v30 = vpop.f32.mrf.mxu0 }
  0xc4   :  { %v2963_v31 = vpop.f32.mrf.mxu1 }
  0xc6   :  { %417 = vmatmul.bf16.gmra.mxu0 %v2565_v29 }
  0xc7   :  { %506 = vmatmul.bf16.gmra.mxu1 %v2565_v29 }
  0xc9   :  { %v3028_v62 = vpop.f32.mrf.mxu2 }
  0xca   :  { %v3022_v59 = vpop.f32.mrf.mxu3  ;;  %5596 = vst [vmem:[#allocation13_spill] sm:$0xff] %v3028_v62 }
  0xcb   :  { %v2965_v32 = vpop.f32.mrf.mxu0 }
  0xcc   :  { %v2970_v34 = vpop.f32.mrf.mxu1  ;;  %v549_v8 = vadd.f32 %v2965_v32, %v2961_v30 }
  0xcd   :  { %v586_v11 = vadd.f32 %v2970_v34, %v2963_v31 }
  0xd1   :  { %v3036_v2 = vpop.f32.mrf.mxu2 }
  0xd2   :  { %v3030_v63 = vpop.f32.mrf.mxu3  ;;  %5598 = vst [vmem:[#allocation15_spill] sm:$0xff] %v3036_v2 }
  0xd3   :  { %v2975_v36 = vpop.f32.mrf.mxu0 }
  0xd4   :  { %v2977_v37 = vpop.f32.mrf.mxu1  ;;  %v550_v12 = vadd.f32 %v549_v8, %v2975_v36 }
  0xd5   :  { %v587_v13 = vadd.f32 %v586_v11, %v2977_v37 }
  0xd6   :  { %422 = vmatmul.bf16.gmra.mxu0 %v2566_v35 }
  0xd7   :  { %511 = vmatmul.bf16.gmra.mxu1 %v2566_v35 }
  0xd9   :  { %v3044_v6 = vpop.f32.mrf.mxu2 }
  0xda   :  { %v3038_v3 = vpop.f32.mrf.mxu3  ;;  %5600 = vst [vmem:[#allocation17_spill] sm:$0xff] %v3044_v6 }
  0xdb   :  { %v2979_v38 = vpop.f32.mrf.mxu0 }
  0xdc   :  { %v2981_v39 = vpop.f32.mrf.mxu1  ;;  %v551_v14 = vadd.f32 %v550_v12, %v2979_v38 }
  0xdd   :  { %v588_v15 = vadd.f32 %v587_v13, %v2981_v39 }
  0xe1   :  { %v3068_v22 = vpop.f32.mrf.mxu2 }
  0xe2   :  { %v3052_v10 = vpop.f32.mrf.mxu3  ;;  %5603 = vst [vmem:[#allocation20_spill] sm:$0xff] %v3068_v22 }
  0xe3   :  { %v2986_v41 = vpop.f32.mrf.mxu0 }
  0xe4   :  { %v2988_v42 = vpop.f32.mrf.mxu1  ;;  %v552_v16 = vadd.f32 %v551_v14, %v2986_v41 }
  0xe5   :  { %v589_v17 = vadd.f32 %v588_v15, %v2988_v42 }
  0xe6   :  { %427 = vmatmul.bf16.gmra.mxu0 %v2567_v40 }
  0xe7   :  { %516 = vmatmul.bf16.gmra.mxu1 %v2567_v40 }
  0xe9   :  { %v3086_v13 = vpop.f32.mrf.mxu2 }
  0xea   :  { %v3071_v24 = vpop.f32.mrf.mxu3  ;;  %5605 = vst [vmem:[#allocation22_spill] sm:$0xff] %v3086_v13 }
  0xeb   :  { %v2990_v43 = vpop.f32.mrf.mxu0 }
  0xec   :  { %v2992_v44 = vpop.f32.mrf.mxu1  ;;  %v553_v19 = vadd.f32 %v552_v16, %v2990_v43 }
  0xed   :  { %v590_v21 = vadd.f32 %v589_v17, %v2992_v44 }
  0xf2   :  { %v3089_v15 = vpop.f32.mrf.mxu3 }
  0xf3   :  { %v2994_v45 = vpop.f32.mrf.mxu0 }
  0xf4   :  { %v2996_v46 = vpop.f32.mrf.mxu1  ;;  %v554_v23 = vadd.f32 %v553_v19, %v2994_v45 }
  0xf5   :  { %v591_v25 = vadd.f32 %v590_v21, %v2996_v46 }
  0xfb   :  { %v2998_v47 = vpop.f32.mrf.mxu0 }
  0xfc   :  { %v3000_v48 = vpop.f32.mrf.mxu1  ;;  %v555_v26 = vadd.f32 %v554_v23, %v2998_v47 }
  0xfd   :  { %v592_v27 = vadd.f32 %v591_v25, %v3000_v48 }
 0x103   :  { %v3002_v49 = vpop.f32.mrf.mxu0 }
 0x104   :  { %v3004_v50 = vpop.f32.mrf.mxu1  ;;  %v556_v28 = vadd.f32 %v555_v26, %v3002_v49 }
 0x105   :  { %v593_v29 = vadd.f32 %v592_v27, %v3004_v50 }
 0x10b   :  { %v3006_v51 = vpop.f32.mrf.mxu0 }
 0x10c   :  { %v3008_v52 = vpop.f32.mrf.mxu1  ;;  %v557_v35 = vadd.f32 %v556_v28, %v3006_v51 }
 0x10d   :  { %v594_v8 = vadd.f32 %v593_v29, %v3008_v52 }
 0x113   :  { %v3010_v53 = vpop.f32.mrf.mxu0 }
 0x114   :  { %v3012_v54 = vpop.f32.mrf.mxu1  ;;  %v558_v11 = vadd.f32 %v557_v35, %v3010_v53 }
 0x115   :  { %v595_v12 = vadd.f32 %v594_v8, %v3012_v54  ;;  %v3104_v8 = vpop.f32.mrf.mxu2 }
 0x116   :  { %5607 = vst [vmem:[#allocation24_spill] sm:$0xff] %v3104_v8 }
 0x11b   :  { %v3014_v55 = vpop.f32.mrf.mxu0 }
 0x11c   :  { %v3016_v56 = vpop.f32.mrf.mxu1  ;;  %v559_v14 = vadd.f32 %v558_v11, %v3014_v55 }
 0x11d   :  { %v596_v16 = vadd.f32 %v595_v12, %v3016_v56  ;;  %v3107_v12 = vpop.f32.mrf.mxu3 }
 0x123   :  { %v3018_v57 = vpop.f32.mrf.mxu0 }
 0x124   :  { %v3020_v58 = vpop.f32.mrf.mxu1  ;;  %v560_v17 = vadd.f32 %v559_v14, %v3018_v57 }
 0x125   :  { %v597_v19 = vadd.f32 %v596_v16, %v3020_v58 }
 0x12b   :  { %v3024_v60 = vpop.f32.mrf.mxu0 }
 0x12c   :  { %v3026_v61 = vpop.f32.mrf.mxu1  ;;  %v561_v23 = vadd.f32 %v560_v17, %v3024_v60 }
 0x12d   :  { %v598_v26 = vadd.f32 %v597_v19, %v3026_v61 }
 0x133   :  { %v3032_v0 = vpop.f32.mrf.mxu0 }
 0x134   :  { %5597 = vst [vmem:[#allocation14_spill] sm:$0xff] %v3032_v0  ;;  %v3034_v1 = vpop.f32.mrf.mxu1  ;;  %v562_v27 = vadd.f32 %v561_v23, %v3032_v0 }
 0x135   :  { %v599_v28 = vadd.f32 %v598_v26, %v3034_v1 }
 0x13b   :  { %v3040_v4 = vpop.f32.mrf.mxu0 }
 0x13c   :  { %5599 = vst [vmem:[#allocation16_spill] sm:$0xff] %v3040_v4  ;;  %v3042_v5 = vpop.f32.mrf.mxu1  ;;  %v563_v29 = vadd.f32 %v562_v27, %v3040_v4  ;;  %v3121_v4 = vpop.f32.mrf.mxu2 }
 0x13d   :  { %v600_v35 = vadd.f32 %v599_v28, %v3042_v5  ;;  %5609 = vst [vmem:[#allocation26_spill] sm:$0xff] %v3121_v4 }
 0x143   :  { %v3046_v7 = vpop.f32.mrf.mxu0 }
 0x144   :  { %5601 = vst [vmem:[#allocation18_spill] sm:$0xff] %v3046_v7  ;;  %v3050_v9 = vpop.f32.mrf.mxu1  ;;  %v564_v11 = vadd.f32 %v563_v29, %v3046_v7 }
 0x145   :  { %v601_v14 = vadd.f32 %v600_v35, %v3050_v9 }
 0x14b   :  { %v3062_v18 = vpop.f32.mrf.mxu0 }
 0x14c   :  { %5602 = vst [vmem:[#allocation19_spill] sm:$0xff] %v3062_v18  ;;  %v3065_v20 = vpop.f32.mrf.mxu1  ;;  %v565_v17 = vadd.f32 %v564_v11, %v3062_v18  ;;  %v3126_v11 = vpop.f32.mrf.mxu3 }
 0x14d   :  { %v602_v23 = vadd.f32 %v601_v14, %v3065_v20 }
 0x153   :  { %v3078_v33 = vpop.f32.mrf.mxu0 }
 0x154   :  { %5604 = vst [vmem:[#allocation21_spill] sm:$0xff] %v3078_v33  ;;  %v3081_v40 = vpop.f32.mrf.mxu1  ;;  %v566_v26 = vadd.f32 %v565_v17, %v3078_v33  ;;  %v3139_v33 = vpop.f32.mrf.mxu2 }
 0x155   :  { %v603_v27 = vadd.f32 %v602_v23, %v3081_v40 }
 0x15b   :  { %v3094_v21 = vpop.f32.mrf.mxu0 }
 0x15c   :  { %5606 = vst [vmem:[#allocation23_spill] sm:$0xff] %v3094_v21  ;;  %v3097_v25 = vpop.f32.mrf.mxu1  ;;  %v567_v28 = vadd.f32 %v566_v26, %v3094_v21 }
 0x15d   :  { %v604_v29 = vadd.f32 %v603_v27, %v3097_v25 }
 0x163   :  { %v3110_v16 = vpop.f32.mrf.mxu0 }
 0x164   :  { %5608 = vst [vmem:[#allocation25_spill] sm:$0xff] %v3110_v16  ;;  %v3113_v19 = vpop.f32.mrf.mxu1  ;;  %v568_v7 = vadd.f32 %v567_v28, %v3110_v16 }
 0x165   :  { %v605_v35 = vadd.f32 %v604_v29, %v3113_v19 }
 0x16b   :  { %v3124_v0 = vpop.f32.mrf.mxu0 }
 0x16c   :  { %5610 = vst [vmem:[#allocation27_spill] sm:$0xff] %v3124_v0  ;;  %v569_v14 = vadd.f32 %v568_v7, %v3124_v0  ;;  %v3129_v18 = vpop.f32.mrf.mxu1  ;;  %v3142_v0 = vpop.f32.mrf.mxu3 }
 0x16d   :  { %v606_v17 = vadd.f32 %v605_v35, %v3129_v18  ;;  %5611 = vst [vmem:[#allocation28_spill] sm:$0xff] %v3142_v0 }
 0x16e   :  { %v570_v23 = vadd.f32 %v569_v14, %v3028_v62 }
 0x16f   :  { %v607_v26 = vadd.f32 %v606_v17, %v3022_v59 }
 0x170   :  { %v571_v27 = vadd.f32 %v570_v23, %v3036_v2 }
 0x171   :  { %v608_v28 = vadd.f32 %v607_v26, %v3030_v63 }
 0x172   :  { %v572_v29 = vadd.f32 %v571_v27, %v3044_v6 }
 0x173   :  { %v609_v16 = vadd.f32 %v608_v28, %v3038_v3 }
 0x174   :  { %v573_v21 = vadd.f32 %v572_v29, %v3068_v22  ;;  %v3152_v22 = vpop.f32.mrf.mxu2 }
 0x175   :  { %v610_v7 = vadd.f32 %v609_v16, %v3052_v10  ;;  %v3154_v16 = vpop.f32.mrf.mxu3 }
 0x176   :  { %v574_v35 = vadd.f32 %v573_v21, %v3086_v13 }
 0x177   :  { %v611_v14 = vadd.f32 %v610_v7, %v3071_v24 }
 0x178   :  { %v575_v23 = vadd.f32 %v574_v35, %v3104_v8 }
 0x179   :  { %v612_v17 = vadd.f32 %v611_v14, %v3089_v15 }
 0x17a   :  { %v576_v28 = vadd.f32 %v575_v23, %v3121_v4 }
 0x17b   :  { %v613_v26 = vadd.f32 %v612_v17, %v3107_v12 }
 0x17c   :  { %v577_v7 = vadd.f32 %v576_v28, %v3139_v33  ;;  %v3159_v6 = vpop.f32.mrf.mxu2 }
 0x17d   :  { %v614_v27 = vadd.f32 %v613_v26, %v3126_v11 }
 0x17e   :  { %v578_v35 = vadd.f32 %v577_v7, %v3152_v22 }
 0x17f   :  { %v615_v29 = vadd.f32 %v614_v27, %v3142_v0 }
 0x180   :  { %v579_v23 = vadd.f32 %v578_v35, %v3159_v6 }
 0x181   :  { %v616_v21 = vadd.f32 %v615_v29, %v3154_v16 }
 0x182   :  { %v580_v27 = vrot.slane %v579_v23, 4 }
 0x183   :  { %v617_v13 = vrot.slane %v616_v21, 4 }
 0x184   :  { %v581_v2 = vadd.f32 %v580_v27, %v579_v23 }
 0x185   :  { %v618_v14 = vadd.f32 %v617_v13, %v616_v21 }
 0x186   :  { %v582_v0 = vrot.slane %v581_v2, 2 }
 0x187   :  { %v619_v8 = vrot.slane %v618_v14, 2 }
 0x189   :  { %v620_v17 = vadd.f32 %v619_v8, %v618_v14  ;;  %v583_v8 = vadd.f32 %v582_v0, %v581_v2 }
 0x18b   :  { %v621_v26 = vrot.slane %v620_v17, 1  ;;  %v584_v7 = vrot.slane %v583_v8, 1 }
 0x18d   :  { %v622_v4 = vadd.f32 %v621_v26, %v620_v17  ;;  %v585_v2 = vadd.f32 %v584_v7, %v583_v8 }
 0x18f   :  { %v3162_v62 = vmul.f32 0.00390625, %v622_v4  ;;  %v3202_v26 = vmul.f32 0.00390625, %v585_v2 }
 0x191   :  { %v3166_v28 = vsub.f32 %v2963_v31, %v3162_v62  ;;  %v3170_v13 = vsub.f32 %v2970_v34, %v3162_v62  ;;  %v3174_v29 = vsub.f32 %v2977_v37, %v3162_v62  ;;  %v3182_v31 = vsub.f32 %v2981_v39, %v3162_v62 }
 0x192   :  { %v3186_v34 = vsub.f32 %v2988_v42, %v3162_v62  ;;  %v3192_v14 = vsub.f32 %v2992_v44, %v3162_v62  ;;  %v3198_v39 = vsub.f32 %v2996_v46, %v3162_v62  ;;  %v3206_v27 = vsub.f32 %v3000_v48, %v3162_v62 }
 0x193   :  { %v690_v21 = vmul.f32 %v3166_v28, %v3166_v28  ;;  %v692_v4 = vmul.f32 %v3170_v13, %v3170_v13  ;;  %v694_v0 = vmul.f32 %v3174_v29, %v3174_v29  ;;  %v696_v35 = vmul.f32 %v3182_v31, %v3182_v31 }
 0x194   :  { %v698_v42 = vmul.f32 %v3186_v34, %v3186_v34  ;;  %v700_v44 = vmul.f32 %v3192_v14, %v3192_v14  ;;  %v702_v46 = vmul.f32 %v3198_v39, %v3198_v39  ;;  %v3218_v7 = vsub.f32 %v2961_v30, %v3202_v26 }
 0x195   :  { %v790_v37 = vadd.f32 %v692_v4, %v690_v21  ;;  %v3212_v21 = vsub.f32 %v3004_v50, %v3162_v62  ;;  %v3222_v48 = vsub.f32 %v2965_v32, %v3202_v26  ;;  %v704_v50 = vmul.f32 %v3206_v27, %v3206_v27 }
 0x196   :  { %v3232_v2 = vsub.f32 %v3012_v54, %v3162_v62  ;;  %v3238_v32 = vsub.f32 %v2975_v36, %v3202_v26  ;;  %v3256_v36 = vsub.f32 %v3020_v58, %v3162_v62 }
 0x197   :  { %v791_v17 = vadd.f32 %v790_v37, %v694_v0  ;;  %v3226_v0 = vsub.f32 %v3008_v52, %v3162_v62  ;;  %v706_v30 = vmul.f32 %v3212_v21, %v3212_v21  ;;  %v689_v52 = vmul.f32 %v3218_v7, %v3218_v7 }
 0x199   :  { %v792_v23 = vadd.f32 %v791_v17, %v696_v35  ;;  %v691_v17 = vmul.f32 %v3222_v48, %v3222_v48  ;;  %v708_v54 = vmul.f32 %v3226_v0, %v3226_v0 }
 0x19b   :  { %v793_v8 = vadd.f32 %v792_v23, %v698_v42  ;;  %v3246_v42 = vsub.f32 %v3016_v56, %v3162_v62  ;;  %v3262_v56 = vsub.f32 %v2986_v41, %v3202_v26 }
 0x19d   :  { %v794_v4 = vadd.f32 %v793_v8, %v700_v44  ;;  %v3252_v44 = vsub.f32 %v2979_v38, %v3202_v26  ;;  %v710_v8 = vmul.f32 %v3232_v2, %v3232_v2  ;;  %v3268_v38 = vsub.f32 %v3026_v61, %v3162_v62 }
 0x19e   :  { %v712_v58 = vmul.f32 %v3246_v42, %v3246_v42  ;;  %v714_v61 = vmul.f32 %v3256_v36, %v3256_v36 }
 0x19f   :  { %v795_v37 = vadd.f32 %v794_v4, %v702_v46  ;;  %v693_v4 = vmul.f32 %v3238_v32, %v3238_v32  ;;  %v695_v41 = vmul.f32 %v3252_v44, %v3252_v44 }
 0x1a1   :  { %v796_v35 = vadd.f32 %v795_v37, %v704_v50  ;;  %v753_v50 = vadd.f32 %v691_v17, %v689_v52  ;;  %v3286_v17 = vsub.f32 %v2994_v45, %v3202_v26 }
 0x1a3   :  { %v797_v23 = vadd.f32 %v796_v35, %v706_v30  ;;  %v3274_v30 = vsub.f32 %v2990_v43, %v3202_v26  ;;  %v754_v35 = vadd.f32 %v753_v50, %v693_v4  ;;  %v697_v43 = vmul.f32 %v3262_v56, %v3262_v56 }
 0x1a4   :  { %v3298_v4 = vsub.f32 %v2998_v47, %v3202_v26  ;;  %v701_v47 = vmul.f32 %v3286_v17, %v3286_v17 }
 0x1a5   :  { %v798_v46 = vadd.f32 %v797_v23, %v708_v54  ;;  %v3280_v54 = vsub.f32 %v3034_v1, %v3162_v62  ;;  %v755_v23 = vadd.f32 %v754_v35, %v695_v41  ;;  %v716_v1 = vmul.f32 %v3268_v38, %v3268_v38 }
 0x1a6   :  { %v699_v45 = vmul.f32 %v3274_v30, %v3274_v30  ;;  %v3310_v41 = vsub.f32 %v3002_v49, %v3202_v26  ;;  %v703_v49 = vmul.f32 %v3298_v4, %v3298_v4 }
 0x1a7   :  { %v799_v37 = vadd.f32 %v798_v46, %v710_v8  ;;  %v3292_v8 = vsub.f32 %v3042_v5, %v3162_v62  ;;  %v756_v50 = vadd.f32 %v755_v23, %v697_v43  ;;  %v718_v5 = vmul.f32 %v3280_v54, %v3280_v54 }
 0x1a8   :  { %v3322_v43 = vsub.f32 %v3006_v51, %v3202_v26  ;;  %v705_v51 = vmul.f32 %v3310_v41, %v3310_v41 }
 0x1a9   :  { %v800_v52 = vadd.f32 %v799_v37, %v712_v58  ;;  %v3304_v58 = vsub.f32 %v3050_v9, %v3162_v62  ;;  %v757_v35 = vadd.f32 %v756_v50, %v699_v45  ;;  %v720_v9 = vmul.f32 %v3292_v8, %v3292_v8 }
 0x1aa   :  { %v3334_v45 = vsub.f32 %v3010_v53, %v3202_v26  ;;  %v707_v53 = vmul.f32 %v3322_v43, %v3322_v43 }
 0x1ab   :  { %v801_v46 = vadd.f32 %v800_v52, %v714_v61  ;;  %v3316_v61 = vsub.f32 %v3065_v20, %v3162_v62  ;;  %v758_v23 = vadd.f32 %v757_v35, %v701_v47  ;;  %v722_v20 = vmul.f32 %v3304_v58, %v3304_v58 }
 0x1ac   :  { %v3346_v47 = vsub.f32 %v3014_v55, %v3202_v26  ;;  %v709_v55 = vmul.f32 %v3334_v45, %v3334_v45 }
 0x1ad   :  { %v802_v37 = vadd.f32 %v801_v46, %v716_v1  ;;  %v3328_v1 = vsub.f32 %v3081_v40, %v3162_v62  ;;  %v759_v50 = vadd.f32 %v758_v23, %v703_v49  ;;  %v724_v40 = vmul.f32 %v3316_v61, %v3316_v61 }
 0x1ae   :  { %v3358_v49 = vsub.f32 %v3018_v57, %v3202_v26  ;;  %v711_v57 = vmul.f32 %v3346_v47, %v3346_v47 }
 0x1af   :  { %v803_v52 = vadd.f32 %v802_v37, %v718_v5  ;;  %v3340_v5 = vsub.f32 %v3097_v25, %v3162_v62  ;;  %v760_v35 = vadd.f32 %v759_v50, %v705_v51  ;;  %v726_v25 = vmul.f32 %v3328_v1, %v3328_v1 }
 0x1b0   :  { %v3370_v51 = vsub.f32 %v3024_v60, %v3202_v26  ;;  %v713_v60 = vmul.f32 %v3358_v49, %v3358_v49 }
 0x1b1   :  { %v804_v46 = vadd.f32 %v803_v52, %v720_v9  ;;  %5612 = vst [vmem:[#allocation29_spill] sm:$0xff] %v3340_v5  ;;  %v3352_v9 = vsub.f32 %v3113_v19, %v3162_v62  ;;  %v761_v23 = vadd.f32 %v760_v35, %v707_v53  ;;  %v728_v19 = vmul.f32 %v3340_v5, %v3340_v5  ;;  %v5616_v53 = vld [vmem:[#allocation14_spill] sm:$0xff] }
 0x1b2   :  { %v3382_v35 = vsub.f32 %v5616_v53, %v3202_v26  ;;  %v3400_v53 = vsub.f32 %v3038_v3, %v3162_v62 }
 0x1b3   :  { %v805_v37 = vadd.f32 %v804_v46, %v722_v20  ;;  %5613 = vst [vmem:[#allocation30_spill] sm:$0xff] %v3352_v9  ;;  %v3364_v20 = vsub.f32 %v3129_v18, %v3162_v62  ;;  %v762_v50 = vadd.f32 %v761_v23, %v709_v55  ;;  %v730_v18 = vmul.f32 %v3352_v9, %v3352_v9  ;;  %v5618_v23 = vld [vmem:[#allocation16_spill] sm:$0xff] }
 0x1b4   :  { %v3394_v9 = vsub.f32 %v5618_v23, %v3202_v26  ;;  %5619 = vst [vmem:[#allocation16_spill] sm:$0xff] %v3400_v53  ;;  %v3412_v23 = vsub.f32 %v3052_v10, %v3162_v62  ;;  %v738_v10 = vmul.f32 %v3400_v53, %v3400_v53 }
 0x1b5   :  { %v806_v52 = vadd.f32 %v805_v37, %v724_v40  ;;  %5614 = vst [vmem:[#allocation31_spill] sm:$0xff] %v3364_v20  ;;  %v3376_v40 = vsub.f32 %v3022_v59, %v3162_v62  ;;  %v732_v59 = vmul.f32 %v3364_v20, %v3364_v20 }
 0x1b7   :  { %v807_v46 = vadd.f32 %v806_v52, %v726_v25  ;;  %5615 = vst [vmem:[#allocation32_spill] sm:$0xff] %v3376_v40  ;;  %v763_v25 = vadd.f32 %v762_v50, %v711_v57  ;;  %v3388_v52 = vsub.f32 %v3030_v63, %v3162_v62  ;;  %v734_v63 = vmul.f32 %v3376_v40, %v3376_v40  ;;  %v5620_v50 = vld [vmem:[#allocation18_spill] sm:$0xff] }
 0x1b8   :  { %v3406_v20 = vsub.f32 %v5620_v50, %v3202_v26  ;;  %5621 = vst [vmem:[#allocation18_spill] sm:$0xff] %v3412_v23  ;;  %v3424_v50 = vsub.f32 %v3071_v24, %v3162_v62  ;;  %v740_v24 = vmul.f32 %v3412_v23, %v3412_v23 }
 0x1b9   :  { %v808_v37 = vadd.f32 %v807_v46, %v728_v19  ;;  %5617 = vst [vmem:[#allocation14_spill] sm:$0xff] %v3388_v52  ;;  %v715_v19 = vmul.f32 %v3370_v51, %v3370_v51  ;;  %v764_v46 = vadd.f32 %v763_v25, %v713_v60  ;;  %v736_v3 = vmul.f32 %v3388_v52, %v3388_v52  ;;  %v5622_v25 = vld [vmem:[#allocation19_spill] sm:$0xff] }
 0x1ba   :  { %v3418_v40 = vsub.f32 %v5622_v25, %v3202_v26  ;;  %5623 = vst [vmem:[#allocation19_spill] sm:$0xff] %v3424_v50  ;;  %v3436_v25 = vsub.f32 %v3089_v15, %v3162_v62  ;;  %v742_v15 = vmul.f32 %v3424_v50, %v3424_v50 }
 0x1bb   :  { %v809_v55 = vadd.f32 %v808_v37, %v730_v18  ;;  %v717_v18 = vmul.f32 %v3382_v35, %v3382_v35  ;;  %v765_v37 = vadd.f32 %v764_v46, %v715_v19  ;;  %v5624_v46 = vld [vmem:[#allocation21_spill] sm:$0xff] }
 0x1bc   :  { %v3430_v52 = vsub.f32 %v5624_v46, %v3202_v26  ;;  %5625 = vst [vmem:[#allocation21_spill] sm:$0xff] %v3436_v25  ;;  %v3448_v46 = vsub.f32 %v3107_v12, %v3162_v62  ;;  %v744_v12 = vmul.f32 %v3436_v25, %v3436_v25 }
 0x1bd   :  { %v810_v57 = vadd.f32 %v809_v55, %v732_v59  ;;  %v719_v59 = vmul.f32 %v3394_v9, %v3394_v9  ;;  %v766_v55 = vadd.f32 %v765_v37, %v717_v18  ;;  %v5626_v37 = vld [vmem:[#allocation23_spill] sm:$0xff] }
 0x1be   :  { %v3442_v53 = vsub.f32 %v5626_v37, %v3202_v26  ;;  %5627 = vst [vmem:[#allocation23_spill] sm:$0xff] %v3448_v46  ;;  %v3460_v37 = vsub.f32 %v3126_v11, %v3162_v62  ;;  %v746_v11 = vmul.f32 %v3448_v46, %v3448_v46 }
 0x1bf   :  { %v811_v60 = vadd.f32 %v810_v57, %v734_v63  ;;  %v721_v63 = vmul.f32 %v3406_v20, %v3406_v20  ;;  %v767_v57 = vadd.f32 %v766_v55, %v719_v59  ;;  %v5628_v55 = vld [vmem:[#allocation25_spill] sm:$0xff] }
 0x1c0   :  { %v3454_v23 = vsub.f32 %v5628_v55, %v3202_v26  ;;  %5629 = vst [vmem:[#allocation25_spill] sm:$0xff] %v3460_v37  ;;  %v5632_v55 = vld [vmem:[#allocation28_spill] sm:$0xff] }
 0x1c1   :  { %v812_v19 = vadd.f32 %v811_v60, %v736_v3  ;;  %v723_v3 = vmul.f32 %v3418_v40, %v3418_v40  ;;  %v768_v60 = vadd.f32 %v767_v57, %v721_v63  ;;  %v5630_v57 = vld [vmem:[#allocation27_spill] sm:$0xff]  ;;  %v3472_v5 = vsub.f32 %v5632_v55, %v3162_v62 }
 0x1c2   :  { %v3466_v50 = vsub.f32 %v5630_v57, %v3202_v26  ;;  %v3484_v57 = vsub.f32 %v3154_v16, %v3162_v62  ;;  %v5636_v55 = vld [vmem:[#allocation15_spill] sm:$0xff] }
 0x1c3   :  { %v813_v18 = vadd.f32 %v812_v19, %v738_v10  ;;  %v725_v10 = vmul.f32 %v3430_v52, %v3430_v52  ;;  %v769_v19 = vadd.f32 %v768_v60, %v723_v3  ;;  %5633 = vst [vmem:[#allocation28_spill] sm:$0xff] %v3472_v5  ;;  %v5634_v60 = vld [vmem:[#allocation13_spill] sm:$0xff]  ;;  %v3490_v46 = vsub.f32 %v5636_v55, %v3202_v26 }
 0x1c4   :  { %5631 = vst [vmem:[#allocation27_spill] sm:$0xff] %v3466_v50  ;;  %v3478_v25 = vsub.f32 %v5634_v60, %v3202_v26  ;;  %v750_v60 = vmul.f32 %v3472_v5, %v3472_v5 }
 0x1c5   :  { %v814_v59 = vadd.f32 %v813_v18, %v740_v24  ;;  %v727_v24 = vmul.f32 %v3442_v53, %v3442_v53  ;;  %v770_v18 = vadd.f32 %v769_v19, %v725_v10  ;;  %5635 = vst [vmem:[#allocation13_spill] sm:$0xff] %v3484_v57  ;;  %v748_v10 = vmul.f32 %v3460_v37, %v3460_v37  ;;  %v5639_v37 = vld [vmem:[#allocation20_spill] sm:$0xff] }
 0x1c6   :  { %5637 = vst [vmem:[#allocation15_spill] sm:$0xff] %v3490_v46  ;;  %v733_v16 = vmul.f32 %v3478_v25, %v3478_v25 }
 0x1c7   :  { %v815_v63 = vadd.f32 %v814_v59, %v742_v15  ;;  %v729_v15 = vmul.f32 %v3454_v23, %v3454_v23  ;;  %v771_v59 = vadd.f32 %v770_v18, %v727_v24  ;;  %v5638_v18 = vld [vmem:[#allocation17_spill] sm:$0xff] }
 0x1c8   :  { %v3498_v62 = vsub.f32 %v5638_v18, %v3202_v26 }
 0x1c9   :  { %v816_v3 = vadd.f32 %v815_v63, %v744_v12  ;;  %v731_v12 = vmul.f32 %v3466_v50, %v3466_v50  ;;  %v772_v63 = vadd.f32 %v771_v59, %v729_v15  ;;  %v3506_v50 = vsub.f32 %v5639_v37, %v3202_v26 }
 0x1ca   :  { %v735_v15 = vmul.f32 %v3490_v46, %v3490_v46 }
 0x1cb   :  { %v817_v19 = vadd.f32 %v816_v3, %v746_v11  ;;  %v773_v11 = vadd.f32 %v772_v63, %v731_v12  ;;  %v752_v3 = vmul.f32 %v3484_v57, %v3484_v57  ;;  %5640 = vst [vmem:[#allocation17_spill] sm:$0xff] %v3506_v50  ;;  %v737_v12 = vmul.f32 %v3498_v62, %v3498_v62 }
 0x1cc   :  { %v739_v37 = vmul.f32 %v3506_v50, %v3506_v50 }
 0x1cd   :  { %v818_v24 = vadd.f32 %v817_v19, %v748_v10  ;;  %v774_v59 = vadd.f32 %v773_v11, %v733_v16  ;;  %v5641_v19 = vld [vmem:[#allocation22_spill] sm:$0xff] }
 0x1ce   :  { %v3512_v18 = vsub.f32 %v5641_v19, %v3202_v26  ;;  %v5645_v16 = vld [vmem:[#allocation26_spill] sm:$0xff] }
 0x1cf   :  { %v819_v55 = vadd.f32 %v818_v24, %v750_v60  ;;  %v775_v63 = vadd.f32 %v774_v59, %v735_v15  ;;  %v5643_v60 = vld [vmem:[#allocation24_spill] sm:$0xff]  ;;  %v3524_v11 = vsub.f32 %v5645_v16, %v3202_v26  ;;  %v3530_v15 = vsub.f32 %v3139_v33, %v3202_v26 }
 0x1d0   :  { %5642 = vst [vmem:[#allocation20_spill] sm:$0xff] %v3512_v18  ;;  %v3518_v24 = vsub.f32 %v5643_v60, %v3202_v26 }
 0x1d1   :  { %v820_v10 = vadd.f32 %v819_v55, %v752_v3  ;;  %v776_v57 = vadd.f32 %v775_v63, %v737_v12  ;;  %5646 = vst [vmem:[#allocation24_spill] sm:$0xff] %v3524_v11  ;;  %v741_v3 = vmul.f32 %v3512_v18, %v3512_v18  ;;  %v747_v33 = vmul.f32 %v3530_v15, %v3530_v15 }
 0x1d2   :  { %5644 = vst [vmem:[#allocation22_spill] sm:$0xff] %v3518_v24  ;;  %v743_v59 = vmul.f32 %v3518_v24, %v3518_v24 }
 0x1d3   :  { %v821_v5 = vrot.slane %v820_v10, 4  ;;  %v777_v55 = vadd.f32 %v776_v57, %v739_v37  ;;  %5647 = vst [vmem:[#allocation26_spill] sm:$0xff] %v3530_v15  ;;  %v3542_v57 = vsub.f32 %v3159_v6, %v3202_v26 }
 0x1d5   :  { %v822_v46 = vadd.f32 %v821_v5, %v820_v10  ;;  %v778_v60 = vadd.f32 %v777_v55, %v741_v3  ;;  %v3536_v5 = vsub.f32 %v3152_v22, %v3202_v26  ;;  %v745_v10 = vmul.f32 %v3524_v11, %v3524_v11  ;;  %5649 = vst [vmem:[#allocation34_spill] sm:$0xff] %v3542_v57 }
 0x1d6   :  { %v751_v55 = vmul.f32 %v3542_v57, %v3542_v57 }
 0x1d7   :  { %v823_v19 = vrot.slane %v822_v46, 2  ;;  %5648 = vst [vmem:[#allocation33_spill] sm:$0xff] %v3536_v5  ;;  %v779_v12 = vadd.f32 %v778_v60, %v743_v59 }
 0x1d9   :  { %v824_v50 = vadd.f32 %v823_v19, %v822_v46  ;;  %v780_v37 = vadd.f32 %v779_v12, %v745_v10  ;;  %v749_v46 = vmul.f32 %v3536_v5, %v3536_v5 }
 0x1db   :  { %v825_v63 = vrot.slane %v824_v50, 1  ;;  %v781_v3 = vadd.f32 %v780_v37, %v747_v33 }
 0x1dd   :  { %v826_v16 = vadd.f32 %v825_v63, %v824_v50  ;;  %v782_v19 = vadd.f32 %v781_v3, %v749_v46 }
 0x1df   :  { %v828_v22 = vmul.f32 0.00390625, %v826_v16  ;;  %v783_v60 = vadd.f32 %v782_v19, %v751_v55 }
 0x1e1   :  { %v830_v59 = vadd.f32 1e-05, %v828_v22  ;;  %v784_v11 = vrot.slane %v783_v60, 4 }
 0x1e3   :  { %2638 = vrsqrt.f32 %v830_v59  ;;  %v785_v6 = vadd.f32 %v784_v11, %v783_v60  ;;  %vm847_vm1 = vweird.f32 %v830_v59 }
 0x1e5   :  { %v786_v26 = vrot.slane %v785_v6, 2 }
 0x1e7   :  { %v787_v18 = vadd.f32 %v786_v26, %v785_v6 }
 0x1e9   :  { %v2639_v24 = vpop.eup %2638  ;;  %v788_v10 = vrot.slane %v787_v18, 1 }
 0x1ea   :  { %v842_v15 = vmul.f32 %v2639_v24, %v830_v59  ;;  %vm848_vm0 = vweird.f32 %v2639_v24  ;;  %v548_v59 = vld [vmem:[%s5500_s3] sm:$0x3] }
 0x1eb   :  { %v789_v50 = vadd.f32 %v788_v10, %v787_v18  ;;  %vm849_vm2 = vmor %vm847_vm1, %vm848_vm0  ;;  %v547_v18 = vld [vmem:[%s5499_s2] sm:$0x3]  ;;  %v3561_v10 = vperm.slane %v548_v59, 0 }
 0x1ec   :  { %v843_v12 = vmul.f32 %v2639_v24, %v842_v15 }
 0x1ed   :  { %v827_v63 = vmul.f32 0.00390625, %v789_v50 }
 0x1ee   :  { %v844_v33 = vmul.f32 0.5, %v843_v12 }
 0x1ef   :  { %v829_v5 = vadd.f32 1e-05, %v827_v63 }
 0x1f0   :  { %v845_v37 = vsub.f32 1.5, %v844_v33 }
 0x1f1   :  { %2640 = vrsqrt.f32 %v829_v5  ;;  %vm837_vm4 = vweird.f32 %v829_v5 }
 0x1f2   :  { %v846_v57 = vmul.f32 %v2639_v24, %v845_v37 }
 0x1f4   :  { %v850_v11 = vsel %vm849_vm2, %v2639_v24, %v846_v57 }
 0x1f5   :  { %v853_v19 = vrot.slane %v850_v11, 7  ;;  %v5653_v11 = vld [vmem:[#allocation31_spill] sm:$0xff] }
 0x1f7   :  { %v2641_v16 = vpop.eup %2640 }
 0x1f8   :  { %v832_v46 = vmul.f32 %v2641_v16, %v829_v5  ;;  %vm838_vm3 = vweird.f32 %v2641_v16  ;;  %v3563_v5 = vperm.slane %v548_v59, 1  ;;  %v5657_v59 = vld [vmem:[#allocation16_spill] sm:$0xff] }
 0x1f9   :  { %vm839_vm6 = vmor %vm837_vm4, %vm838_vm3 }
 0x1fa   :  { %v833_v3 = vmul.f32 %v2641_v16, %v832_v46  ;;  %v5651_v46 = vld [vmem:[#allocation30_spill] sm:$0xff] }
 0x1fc   :  { %v834_v22 = vmul.f32 0.5, %v833_v3  ;;  %v5652_v3 = vld [vmem:[#allocation27_spill] sm:$0xff] }
 0x1fe   :  { %v835_v55 = vsub.f32 1.5, %v834_v22 }
 0x200   :  { %v836_v60 = vmul.f32 %v2641_v16, %v835_v55  ;;  %v5654_v55 = vld [vmem:[#allocation32_spill] sm:$0xff] }
 0x202   :  { %v840_v15 = vsel %vm839_vm6, %v2641_v16, %v836_v60  ;;  %v5650_v16 = vld [vmem:[#allocation29_spill] sm:$0xff] }
 0x203   :  { %v855_v6 = vsel %vm854_vm5, %v840_v15, %v853_v19  ;;  %v5655_v19 = vld [vmem:[#allocation15_spill] sm:$0xff] }
 0x204   :  { %v857_v24 = vmul.f32 %v855_v6, %v547_v18  ;;  %v5656_v18 = vld [vmem:[#allocation14_spill] sm:$0xff] }
 0x206   :  { %v3557_v57 = vperm.slane %v857_v24, 0  ;;  %v3559_v26 = vperm.slane %v857_v24, 1  ;;  %v5659_v24 = vld [vmem:[#allocation17_spill] sm:$0xff] }
 0x208   :  { %v3567_v50 = vmul.f32 %v3557_v57, %v3218_v7  ;;  %v3571_v12 = vmul.f32 %v3559_v26, %v3166_v28  ;;  %v3575_v63 = vmul.f32 %v3557_v57, %v3222_v48  ;;  %v3579_v33 = vmul.f32 %v3559_v26, %v3170_v13 }
 0x209   :  { %v3583_v37 = vmul.f32 %v3557_v57, %v3238_v32  ;;  %v3587_v7 = vmul.f32 %v3559_v26, %v3174_v29  ;;  %v3591_v28 = vmul.f32 %v3557_v57, %v3252_v44  ;;  %v3595_v48 = vmul.f32 %v3559_v26, %v3182_v31 }
 0x20a   :  { %v3599_v13 = vmul.f32 %v3557_v57, %v3262_v56  ;;  %v3603_v32 = vmul.f32 %v3559_v26, %v3186_v34  ;;  %v3607_v29 = vmul.f32 %v3557_v57, %v3274_v30  ;;  %v3611_v44 = vmul.f32 %v3559_v26, %v3192_v14 }
 0x20b   :  { %v3615_v31 = vmul.f32 %v3557_v57, %v3286_v17  ;;  %v3619_v56 = vmul.f32 %v3559_v26, %v3198_v39  ;;  %v3623_v34 = vmul.f32 %v3557_v57, %v3298_v4  ;;  %v3627_v30 = vmul.f32 %v3559_v26, %v3206_v27 }
 0x20c   :  { %v3631_v14 = vmul.f32 %v3557_v57, %v3310_v41  ;;  %v3635_v17 = vmul.f32 %v3559_v26, %v3212_v21  ;;  %v3639_v39 = vmul.f32 %v3557_v57, %v3322_v43  ;;  %v3643_v4 = vmul.f32 %v3559_v26, %v3226_v0 }
 0x20d   :  { %v3647_v27 = vmul.f32 %v3557_v57, %v3334_v45  ;;  %v3651_v41 = vmul.f32 %v3559_v26, %v3232_v2  ;;  %v3655_v21 = vmul.f32 %v3557_v57, %v3346_v47  ;;  %v3659_v43 = vmul.f32 %v3559_v26, %v3246_v42 }
 0x20e   :  { %v3663_v0 = vmul.f32 %v3557_v57, %v3358_v49  ;;  %v3667_v45 = vmul.f32 %v3559_v26, %v3256_v36  ;;  %v3671_v2 = vmul.f32 %v3557_v57, %v3370_v51  ;;  %v3675_v47 = vmul.f32 %v3559_v26, %v3268_v38 }
 0x20f   :  { %v3679_v42 = vmul.f32 %v3557_v57, %v3382_v35  ;;  %v3683_v49 = vmul.f32 %v3559_v26, %v3280_v54  ;;  %v3687_v36 = vmul.f32 %v3557_v57, %v3394_v9  ;;  %v3691_v51 = vmul.f32 %v3559_v26, %v3292_v8 }
 0x210   :  { %v3695_v38 = vmul.f32 %v3557_v57, %v3406_v20  ;;  %v3699_v35 = vmul.f32 %v3559_v26, %v3304_v58  ;;  %v3703_v54 = vmul.f32 %v3557_v57, %v3418_v40  ;;  %v3707_v9 = vmul.f32 %v3559_v26, %v3316_v61 }
 0x211   :  { %v3711_v8 = vmul.f32 %v3557_v57, %v3430_v52  ;;  %v3715_v20 = vmul.f32 %v3559_v26, %v3328_v1  ;;  %v3719_v58 = vmul.f32 %v3557_v57, %v3442_v53  ;;  %v3723_v40 = vmul.f32 %v3559_v26, %v5650_v16 }
 0x212   :  { %v3727_v61 = vmul.f32 %v3557_v57, %v3454_v23  ;;  %v3731_v52 = vmul.f32 %v3559_v26, %v5651_v46  ;;  %v3735_v1 = vmul.f32 %v3557_v57, %v5652_v3  ;;  %v3739_v53 = vmul.f32 %v3559_v26, %v5653_v11  ;;  %v5661_v46 = vld [vmem:[#allocation18_spill] sm:$0xff]  ;;  %v5663_v11 = vld [vmem:[#allocation20_spill] sm:$0xff] }
 0x213   :  { %v3743_v22 = vmul.f32 %v3557_v57, %v3478_v25  ;;  %v3747_v23 = vmul.f32 %v3559_v26, %v5654_v55  ;;  %v3751_v60 = vmul.f32 %v3557_v57, %v5655_v19  ;;  %v3755_v15 = vmul.f32 %v3559_v26, %v5656_v18  ;;  %v5665_v19 = vld [vmem:[#allocation19_spill] sm:$0xff]  ;;  %v5667_v18 = vld [vmem:[#allocation22_spill] sm:$0xff] }
 0x214   :  { %v3759_v6 = vmul.f32 %v3557_v57, %v3498_v62  ;;  %v3763_v25 = vmul.f32 %v3559_v26, %v5657_v59  ;;  %v3767_v16 = vmul.f32 %v3557_v57, %v5659_v24  ;;  %v3771_v3 = vmul.f32 %v3559_v26, %v5661_v46 }
 0x215   :  { %v3775_v55 = vmul.f32 %v3557_v57, %v5663_v11  ;;  %v3779_v62 = vmul.f32 %v3559_v26, %v5665_v19  ;;  %v3783_v59 = vmul.f32 %v3557_v57, %v5667_v18 }
 0x216   :  { %5658 = vst [vmem:[#allocation29_spill] sm:$0xff] %v3763_v25  ;;  %v5669_v25 = vld [vmem:[#allocation21_spill] sm:$0xff] }
 0x217   :  { %5660 = vst [vmem:[#allocation30_spill] sm:$0xff] %v3767_v16  ;;  %v3787_v24 = vmul.f32 %v3559_v26, %v5669_v25  ;;  %v5671_v16 = vld [vmem:[#allocation24_spill] sm:$0xff] }
 0x218   :  { %5662 = vst [vmem:[#allocation27_spill] sm:$0xff] %v3771_v3  ;;  %v3791_v46 = vmul.f32 %v3557_v57, %v5671_v16  ;;  %v5673_v3 = vld [vmem:[#allocation23_spill] sm:$0xff] }
 0x219   :  { %5664 = vst [vmem:[#allocation31_spill] sm:$0xff] %v3775_v55  ;;  %v3795_v11 = vmul.f32 %v3559_v26, %v5673_v3  ;;  %v5675_v55 = vld [vmem:[#allocation26_spill] sm:$0xff] }
 0x21a   :  { %5666 = vst [vmem:[#allocation32_spill] sm:$0xff] %v3779_v62  ;;  %v3799_v19 = vmul.f32 %v3557_v57, %v5675_v55  ;;  %v5676_v62 = vld [vmem:[#allocation25_spill] sm:$0xff] }
 0x21b   :  { %5668 = vst [vmem:[#allocation15_spill] sm:$0xff] %v3783_v59  ;;  %v3803_v18 = vmul.f32 %v3559_v26, %v5676_v62  ;;  %v5677_v59 = vld [vmem:[#allocation33_spill] sm:$0xff]  ;;  %v3823_v62 = vadd.f32 %v3561_v10, %v3567_v50  ;;  %v3843_v50 = vadd.f32 %v3563_v5, %v3587_v7  ;;  %v3863_v7 = vadd.f32 %v3561_v10, %v3607_v29 }
 0x21c   :  { %5670 = vst [vmem:[#allocation14_spill] sm:$0xff] %v3787_v24  ;;  %v3807_v25 = vmul.f32 %v3557_v57, %v5677_v59  ;;  %v5678_v24 = vld [vmem:[#allocation28_spill] sm:$0xff]  ;;  %v3827_v59 = vadd.f32 %v3563_v5, %v3571_v12  ;;  %v3847_v12 = vadd.f32 %v3561_v10, %v3591_v28  ;;  %v3867_v28 = vadd.f32 %v3563_v5, %v3611_v44 }
 0x21d   :  { %5672 = vst [vmem:[#allocation16_spill] sm:$0xff] %v3791_v46  ;;  %v3811_v16 = vmul.f32 %v3559_v26, %v5678_v24  ;;  %v5679_v46 = vld [vmem:[#allocation34_spill] sm:$0xff]  ;;  %v3831_v24 = vadd.f32 %v3561_v10, %v3575_v63  ;;  %v3851_v63 = vadd.f32 %v3563_v5, %v3595_v48  ;;  %v3871_v48 = vadd.f32 %v3561_v10, %v3615_v31 }
 0x21e   :  { %5674 = vst [vmem:[#allocation17_spill] sm:$0xff] %v3795_v11  ;;  %v3815_v3 = vmul.f32 %v3557_v57, %v5679_v46  ;;  %v5680_v11 = vld [vmem:[#allocation13_spill] sm:$0xff]  ;;  %v3835_v57 = vadd.f32 %v3563_v5, %v3579_v33  ;;  %v3855_v33 = vadd.f32 %v3561_v10, %v3599_v13  ;;  %v3875_v13 = vadd.f32 %v3563_v5, %v3619_v56 }
 0x21f   :  { %v3819_v55 = vmul.f32 %v3559_v26, %v5680_v11  ;;  %5681 = vst [vmem:[#allocation18_spill] sm:$0xff] %v3823_v62  ;;  %v3839_v26 = vadd.f32 %v3561_v10, %v3583_v37  ;;  %v3859_v37 = vadd.f32 %v3563_v5, %v3603_v32  ;;  %v3879_v32 = vadd.f32 %v3561_v10, %v3623_v34  ;;  %v5687_v46 = vld [vmem:[#allocation29_spill] sm:$0xff]  ;;  %v5689_v11 = vld [vmem:[#allocation30_spill] sm:$0xff] }
 0x220   :  { %5682 = vst [vmem:[#allocation20_spill] sm:$0xff] %v3827_v59  ;;  %v3883_v29 = vadd.f32 %v3563_v5, %v3627_v30  ;;  %v3887_v44 = vadd.f32 %v3561_v10, %v3631_v14  ;;  %v3891_v31 = vadd.f32 %v3563_v5, %v3635_v17  ;;  %v3895_v56 = vadd.f32 %v3561_v10, %v3639_v39 }
 0x221   :  { %v3899_v34 = vadd.f32 %v3563_v5, %v3643_v4  ;;  %v3903_v30 = vadd.f32 %v3561_v10, %v3647_v27  ;;  %v3907_v14 = vadd.f32 %v3563_v5, %v3651_v41  ;;  %v3911_v17 = vadd.f32 %v3561_v10, %v3655_v21 }
 0x222   :  { %v3915_v39 = vadd.f32 %v3563_v5, %v3659_v43  ;;  %v3919_v4 = vadd.f32 %v3561_v10, %v3663_v0  ;;  %v3923_v27 = vadd.f32 %v3563_v5, %v3667_v45  ;;  %v3927_v41 = vadd.f32 %v3561_v10, %v3671_v2 }
 0x223   :  { %v3931_v21 = vadd.f32 %v3563_v5, %v3675_v47  ;;  %v3935_v43 = vadd.f32 %v3561_v10, %v3679_v42  ;;  %v3939_v0 = vadd.f32 %v3563_v5, %v3683_v49  ;;  %v3943_v45 = vadd.f32 %v3561_v10, %v3687_v36 }
 0x224   :  { %v3947_v2 = vadd.f32 %v3563_v5, %v3691_v51  ;;  %v3951_v47 = vadd.f32 %v3561_v10, %v3695_v38  ;;  %v3955_v42 = vadd.f32 %v3563_v5, %v3699_v35  ;;  %v3959_v49 = vadd.f32 %v3561_v10, %v3703_v54 }
 0x225   :  { %v3963_v36 = vadd.f32 %v3563_v5, %v3707_v9  ;;  %v3967_v51 = vadd.f32 %v3561_v10, %v3711_v8  ;;  %v3971_v38 = vadd.f32 %v3563_v5, %v3715_v20  ;;  %v3975_v35 = vadd.f32 %v3561_v10, %v3719_v58 }
 0x226   :  { %v3979_v54 = vadd.f32 %v3563_v5, %v3723_v40  ;;  %v3983_v9 = vadd.f32 %v3561_v10, %v3727_v61  ;;  %v3987_v8 = vadd.f32 %v3563_v5, %v3731_v52  ;;  %v3991_v20 = vadd.f32 %v3561_v10, %v3735_v1 }
 0x227   :  { %v3995_v58 = vadd.f32 %v3563_v5, %v3739_v53  ;;  %v3999_v40 = vadd.f32 %v3561_v10, %v3743_v22  ;;  %v4003_v61 = vadd.f32 %v3563_v5, %v3747_v23  ;;  %v4007_v52 = vadd.f32 %v3561_v10, %v3751_v60 }
 0x228   :  { %v4011_v1 = vadd.f32 %v3563_v5, %v3755_v15  ;;  %v4015_v53 = vadd.f32 %v3561_v10, %v3759_v6  ;;  %v4019_v22 = vadd.f32 %v3563_v5, %v5687_v46  ;;  %v4023_v23 = vadd.f32 %v3561_v10, %v5689_v11 }
 0x229   :  { %5683 = vst [vmem:[#allocation19_spill] sm:$0xff] %v4003_v61  ;;  %v5691_v61 = vld [vmem:[#allocation27_spill] sm:$0xff] }
 0x22a   :  { %5684 = vst [vmem:[#allocation22_spill] sm:$0xff] %v4007_v52  ;;  %v4027_v60 = vadd.f32 %v3563_v5, %v5691_v61  ;;  %v5693_v52 = vld [vmem:[#allocation31_spill] sm:$0xff] }
 0x22b   :  { %5685 = vst [vmem:[#allocation21_spill] sm:$0xff] %v4011_v1  ;;  %v4031_v15 = vadd.f32 %v3561_v10, %v5693_v52  ;;  %v5694_v1 = vld [vmem:[#allocation32_spill] sm:$0xff] }
 0x22c   :  { %5686 = vst [vmem:[#allocation24_spill] sm:$0xff] %v4015_v53  ;;  %v4035_v6 = vadd.f32 %v3563_v5, %v5694_v1  ;;  %v5695_v53 = vld [vmem:[#allocation15_spill] sm:$0xff]  ;;  %v4055_v1 = vadd.f32 %v3561_v10, %v3799_v19  ;;  %v4075_v19 = vadd.f32 %v3563_v5, %v3819_v55  ;;  %v1006_v55 = vmax.f32 %v3863_v7, 0.0 }
 0x22d   :  { %5688 = vst [vmem:[#allocation23_spill] sm:$0xff] %v4019_v22  ;;  %v4039_v46 = vadd.f32 %v3561_v10, %v5695_v53  ;;  %v5696_v22 = vld [vmem:[#allocation14_spill] sm:$0xff]  ;;  %v4059_v53 = vadd.f32 %v3563_v5, %v3803_v18  ;;  %v1007_v18 = vmax.f32 %v3867_v28, 0.0  ;;  %v1016_v7 = vmax.f32 %v3903_v30, 0.0 }
 0x22e   :  { %5690 = vst [vmem:[#allocation26_spill] sm:$0xff] %v4023_v23  ;;  %v4043_v11 = vadd.f32 %v3563_v5, %v5696_v22  ;;  %v5697_v23 = vld [vmem:[#allocation16_spill] sm:$0xff]  ;;  %v4063_v22 = vadd.f32 %v3561_v10, %v3807_v25  ;;  %v999_v25 = vmax.f32 %v3835_v57, 0.0  ;;  %v1009_v57 = vmax.f32 %v3875_v13, 0.0 }
 0x22f   :  { %5692 = vst [vmem:[#allocation25_spill] sm:$0xff] %v4027_v60  ;;  %v4047_v61 = vadd.f32 %v3561_v10, %v5697_v23  ;;  %v5699_v60 = vld [vmem:[#allocation17_spill] sm:$0xff]  ;;  %v4067_v23 = vadd.f32 %v3563_v5, %v3811_v16  ;;  %v1001_v16 = vmax.f32 %v3843_v50, 0.0  ;;  %v1011_v50 = vmax.f32 %v3883_v29, 0.0 }
 0x230   :  { %v4051_v52 = vadd.f32 %v3563_v5, %v5699_v60  ;;  %5701 = vst [vmem:[#allocation34_spill] sm:$0xff] %v4055_v1  ;;  %v4071_v60 = vadd.f32 %v3561_v10, %v3815_v3  ;;  %v1003_v10 = vmax.f32 %v3851_v63, 0.0  ;;  %v1004_v3 = vmax.f32 %v3855_v33, 0.0  ;;  %v5707_v1 = vld [vmem:[#allocation19_spill] sm:$0xff] }
 0x231   :  { %5698 = vst [vmem:[#allocation33_spill] sm:$0xff] %v4047_v61  ;;  %v1005_v5 = vmax.f32 %v3859_v37, 0.0  ;;  %v1013_v63 = vmax.f32 %v3891_v31, 0.0  ;;  %v1014_v33 = vmax.f32 %v3895_v56, 0.0  ;;  %v1015_v37 = vmax.f32 %v3899_v34, 0.0  ;;  %v5708_v59 = vld [vmem:[#allocation22_spill] sm:$0xff] }
 0x232   :  { %5700 = vst [vmem:[#allocation28_spill] sm:$0xff] %v4051_v52  ;;  %v1017_v28 = vmax.f32 %v3907_v14, 0.0  ;;  %v1019_v13 = vmax.f32 %v3915_v39, 0.0  ;;  %v1021_v29 = vmax.f32 %v3923_v27, 0.0  ;;  %v1023_v31 = vmax.f32 %v3931_v21, 0.0  ;;  %v5709_v62 = vld [vmem:[#allocation21_spill] sm:$0xff] }
 0x233   :  { %5702 = vst [vmem:[#allocation13_spill] sm:$0xff] %v4059_v53  ;;  %v998_v53 = vmax.f32 %v3831_v24, 0.0  ;;  %v1008_v24 = vmax.f32 %v3871_v48, 0.0  ;;  %v1018_v48 = vmax.f32 %v3911_v17, 0.0  ;;  %v1024_v56 = vmax.f32 %v3935_v43, 0.0 }
 0x234   :  { %5703 = vst [vmem:[#allocation29_spill] sm:$0xff] %v4063_v22  ;;  %v1000_v22 = vmax.f32 %v3839_v26, 0.0  ;;  %v1010_v26 = vmax.f32 %v3879_v32, 0.0  ;;  %v1020_v32 = vmax.f32 %v3919_v4, 0.0  ;;  %v1025_v34 = vmax.f32 %v3939_v0, 0.0 }
 0x235   :  { %5704 = vst [vmem:[#allocation30_spill] sm:$0xff] %v4067_v23  ;;  %v1002_v23 = vmax.f32 %v3847_v12, 0.0  ;;  %v1012_v12 = vmax.f32 %v3887_v44, 0.0  ;;  %v1022_v44 = vmax.f32 %v3927_v41, 0.0  ;;  %v1026_v30 = vmax.f32 %v3943_v45, 0.0  ;;  %v5712_v52 = vld [vmem:[#allocation26_spill] sm:$0xff] }
 0x236   :  { %5705 = vst [vmem:[#allocation27_spill] sm:$0xff] %v4071_v60  ;;  %v1027_v14 = vmax.f32 %v3947_v2, 0.0  ;;  %v1028_v17 = vmax.f32 %v3951_v47, 0.0  ;;  %v1029_v39 = vmax.f32 %v3955_v42, 0.0  ;;  %v1030_v4 = vmax.f32 %v3959_v49, 0.0  ;;  %v5711_v60 = vld [vmem:[#allocation23_spill] sm:$0xff] }
 0x237   :  { %5706 = vst [vmem:[#allocation31_spill] sm:$0xff] %v4075_v19  ;;  %v1031_v27 = vmax.f32 %v3963_v36, 0.0  ;;  %v1032_v41 = vmax.f32 %v3967_v51, 0.0  ;;  %v1033_v21 = vmax.f32 %v3971_v38, 0.0  ;;  %v1034_v43 = vmax.f32 %v3975_v35, 0.0  ;;  %v5710_v19 = vld [vmem:[#allocation24_spill] sm:$0xff] }
 0x238   :  { %v1035_v0 = vmax.f32 %v3979_v54, 0.0  ;;  %v1036_v45 = vmax.f32 %v3983_v9, 0.0  ;;  %v1037_v2 = vmax.f32 %v3987_v8, 0.0  ;;  %v1038_v47 = vmax.f32 %v3991_v20, 0.0  ;;  %v5713_v61 = vld [vmem:[#allocation25_spill] sm:$0xff] }
 0x239   :  { %v1039_v42 = vmax.f32 %v3995_v58, 0.0  ;;  %v1040_v49 = vmax.f32 %v3999_v40, 0.0  ;;  %v1041_v36 = vmax.f32 %v5707_v1, 0.0  ;;  %v1042_v51 = vmax.f32 %v5708_v59, 0.0  ;;  %v5714_v59 = vld [vmem:[#allocation33_spill] sm:$0xff] }
 0x23a   :  { %v1043_v38 = vmax.f32 %v5709_v62, 0.0  ;;  %v1044_v35 = vmax.f32 %v5710_v19, 0.0  ;;  %v1045_v54 = vmax.f32 %v5711_v60, 0.0  ;;  %v1046_v9 = vmax.f32 %v5712_v52, 0.0  ;;  %v5715_v19 = vld [vmem:[#allocation28_spill] sm:$0xff]  ;;  %v5716_v52 = vld [vmem:[#allocation34_spill] sm:$0xff] }
 0x23b   :  { %v1047_v8 = vmax.f32 %v5713_v61, 0.0  ;;  %v1048_v20 = vmax.f32 %v4031_v15, 0.0  ;;  %v1049_v58 = vmax.f32 %v4035_v6, 0.0  ;;  %v1050_v40 = vmax.f32 %v4039_v46, 0.0  ;;  %v5717_v15 = vld [vmem:[#allocation13_spill] sm:$0xff] }
 0x23c   :  { %v1051_v1 = vmax.f32 %v4043_v11, 0.0  ;;  %v1052_v62 = vmax.f32 %v5714_v59, 0.0  ;;  %v1053_v60 = vmax.f32 %v5715_v19, 0.0  ;;  %v1054_v61 = vmax.f32 %v5716_v52, 0.0  ;;  %v5718_v46 = vld [vmem:[#allocation29_spill] sm:$0xff]  ;;  %v5719_v59 = vld [vmem:[#allocation30_spill] sm:$0xff] }
 0x23d   :  { %v1055_v6 = vmax.f32 %v5717_v15, 0.0  ;;  %v1056_v11 = vmax.f32 %v5718_v46, 0.0  ;;  %v1057_v19 = vmax.f32 %v5719_v59, 0.0  ;;  %v5720_v52 = vld [vmem:[#allocation27_spill] sm:$0xff] }
 0x23e   :  { %v1058_v15 = vmax.f32 %v5720_v52, 0.0  ;;  %v5721_v46 = vld [vmem:[#allocation31_spill] sm:$0xff]  ;;  %v5722_v52 = vld [vmem:[#allocation18_spill] sm:$0xff] }
 0x23f   :  { %v1059_v59 = vmax.f32 %v5721_v46, 0.0  ;;  %v5723_v46 = vmax.f32 %v5722_v52, 0.0 }
 0x241   :  { %v4143_v52 = vpack.c.bf16 %v998_v53, %v5723_v46  ;;  %v5725_v46 = vld [vmem:[#allocation20_spill] sm:$0xff] }
 0x242   :  { %v5726_v53 = vmax.f32 %v5725_v46, 0.0  ;;  %v4149_v46 = vpack.c.bf16 %v1002_v23, %v1000_v22  ;;  %v4157_v22 = vpack.c.bf16 %v1010_v26, %v1008_v24  ;;  %v4159_v23 = vpack.c.bf16 %v1011_v50, %v1009_v57 }
 0x243   :  { %5724 = vst [vmem:[#allocation32_spill] sm:$0xff] %v4143_v52  ;;  %v4179_v24 = vpack.c.bf16 %v1031_v27, %v1029_v39  ;;  %v4181_v57 = vpack.c.bf16 %v1034_v43, %v1032_v41  ;;  %v4183_v26 = vpack.c.bf16 %v1035_v0, %v1033_v21  ;;  %v4185_v50 = vpack.c.bf16 %v1038_v47, %v1036_v45 }
 0x244   :  { %v4147_v52 = vpack.c.bf16 %v999_v25, %v5726_v53  ;;  %5728 = vst [vmem:[#allocation14_spill] sm:$0xff] %v4149_v46  ;;  %v4151_v25 = vpack.c.bf16 %v1003_v10, %v1001_v16  ;;  %v4153_v53 = vpack.c.bf16 %v1006_v55, %v1004_v3  ;;  %v4161_v46 = vpack.c.bf16 %v1014_v33, %v1012_v12 }
 0x245   :  { %v4163_v10 = vpack.c.bf16 %v1015_v37, %v1013_v63  ;;  %v4165_v16 = vpack.c.bf16 %v1018_v48, %v1016_v7  ;;  %v4169_v3 = vpack.c.bf16 %v1022_v44, %v1020_v32  ;;  %v4171_v55 = vpack.c.bf16 %v1023_v31, %v1021_v29 }
 0x246   :  { %5727 = vst [vmem:[#allocation15_spill] sm:$0xff] %v4147_v52  ;;  %v4155_v52 = vpack.c.bf16 %v1007_v18, %v1005_v5  ;;  %v4175_v18 = vpack.c.bf16 %v1027_v14, %v1025_v34  ;;  %v4177_v5 = vpack.c.bf16 %v1030_v4, %v1028_v17  ;;  %v4187_v12 = vpack.c.bf16 %v1039_v42, %v1037_v2 }
 0x247   :  { %5729 = vst [vmem:[#allocation16_spill] sm:$0xff] %v4151_v25  ;;  %v4167_v25 = vpack.c.bf16 %v1019_v13, %v1017_v28  ;;  %v4189_v63 = vpack.c.bf16 %v1042_v51, %v1040_v49  ;;  %v4191_v33 = vpack.c.bf16 %v1043_v38, %v1041_v36  ;;  %v4193_v37 = vpack.c.bf16 %v1046_v9, %v1044_v35 }
 0x248   :  { %5730 = vst [vmem:[#allocation17_spill] sm:$0xff] %v4153_v53  ;;  %v4173_v53 = vpack.c.bf16 %v1026_v30, %v1024_v56  ;;  %v4195_v7 = vpack.c.bf16 %v1047_v8, %v1045_v54  ;;  %v4197_v28 = vpack.c.bf16 %v1050_v40, %v1048_v20  ;;  %v4199_v48 = vpack.c.bf16 %v1051_v1, %v1049_v58 }
 0x249   :  { %v4201_v13 = vpack.c.bf16 %v1054_v61, %v1052_v62  ;;  %v4203_v32 = vpack.c.bf16 %v1055_v6, %v1053_v60  ;;  %v4205_v29 = vpack.c.bf16 %v1058_v15, %v1056_v11  ;;  %v4207_v44 = vpack.c.bf16 %v1059_v59, %v1057_v19 }
 0x24a   :  { %2670 = dma.done.wait [#allocation4], 4096 }
 0x24b   :  { %2671 = vsyncadd [#allocation4], 4294963200  ;;  %v2485_v31 = vld [vmem:[#allocation2 + $0x70] sm:$0xf]  ;;  %v2604_v56 = vld [vmem:[#allocation2 + $0x74] sm:$0xf0] }
 0x24c   :  { %v2549_v34 = vld [vmem:[#allocation2 + $0xf0] sm:$0xf]  ;;  %v2486_v30 = vor.u32 %v2604_v56, %v2485_v31  ;;  %v2620_v14 = vld [vmem:[#allocation2 + $0xf4] sm:$0xf0]  ;;  %v2603_v17 = vld [vmem:[#allocation2 + $0x74] sm:$0xf] }
 0x24d   :  { %v2487_v39 = vld [vmem:[#allocation2 + $0x78] sm:$0xf0]  ;;  %v2550_v4 = vor.u32 %v2620_v14, %v2549_v34  ;;  %v2619_v41 = vld [vmem:[#allocation2 + $0xf4] sm:$0xf]  ;;  %v2477_v43 = vld [vmem:[#allocation2 + $0x60] sm:$0xf] }
 0x24e   :  { %v2490_v27 = vor.u32 %v2603_v17, %v2487_v39  ;;  %v2551_v21 = vld [vmem:[#allocation2 + $0xf8] sm:$0xf0]  ;;  %1288 = vmatpush.bf16.msrb.mxu2 %v2486_v30  ;;  %v2602_v45 = vld [vmem:[#allocation2 + $0x64] sm:$0xf0]  ;;  %v2541_v2 = vld [vmem:[#allocation2 + $0xe0] sm:$0xf] }
 0x24f   :  { %v2554_v0 = vor.u32 %v2619_v41, %v2551_v21  ;;  %v2618_v47 = vld [vmem:[#allocation2 + $0xe4] sm:$0xf0]  ;;  %1377 = vmatpush.bf16.msrb.mxu3 %v2550_v4  ;;  %v2478_v42 = vor.u32 %v2602_v45, %v2477_v43  ;;  %v2601_v36 = vld [vmem:[#allocation2 + $0x64] sm:$0xf]  ;;  %v2479_v51 = vld [vmem:[#allocation2 + $0x68] sm:$0xf0] }
 0x250   :  { %1466 = vmatpush.bf16.msrb.mxu0 %v2490_v27  ;;  %v2542_v49 = vor.u32 %v2618_v47, %v2541_v2  ;;  %v2617_v38 = vld [vmem:[#allocation2 + $0xe4] sm:$0xf]  ;;  %v2482_v35 = vor.u32 %v2601_v36, %v2479_v51  ;;  %v2543_v54 = vld [vmem:[#allocation2 + $0xe8] sm:$0xf0]  ;;  %v2469_v9 = vld [vmem:[#allocation2 + $0x50] sm:$0xf] }
 0x251   :  { %1555 = vmatpush.bf16.msrb.mxu1 %v2554_v0  ;;  %v2600_v8 = vld [vmem:[#allocation2 + $0x54] sm:$0xf0]  ;;  %v2546_v20 = vor.u32 %v2617_v38, %v2543_v54  ;;  %v2533_v58 = vld [vmem:[#allocation2 + $0xd0] sm:$0xf]  ;;  %v2599_v1 = vld [vmem:[#allocation2 + $0x54] sm:$0xf] }
 0x252   :  { %v2616_v40 = vld [vmem:[#allocation2 + $0xd4] sm:$0xf0]  ;;  %1289 = vmatpush.bf16.msrb.mxu2 %v2478_v42  ;;  %v2470_v62 = vor.u32 %v2600_v8, %v2469_v9  ;;  %v2471_v60 = vld [vmem:[#allocation2 + $0x58] sm:$0xf0]  ;;  %v2615_v61 = vld [vmem:[#allocation2 + $0xd4] sm:$0xf] }
 0x253   :  { %v2535_v6 = vld [vmem:[#allocation2 + $0xd8] sm:$0xf0]  ;;  %1378 = vmatpush.bf16.msrb.mxu3 %v2542_v49  ;;  %v2534_v11 = vor.u32 %v2616_v40, %v2533_v58  ;;  %v2474_v19 = vor.u32 %v2599_v1, %v2471_v60  ;;  %v2461_v15 = vld [vmem:[#allocation2 + $0x40] sm:$0xf]  ;;  %v2598_v59 = vld [vmem:[#allocation2 + $0x44] sm:$0xf0] }
 0x254   :  { %1467 = vmatpush.bf16.msrb.mxu0 %v2482_v35  ;;  %v2525_v31 = vld [vmem:[#allocation2 + $0xc0] sm:$0xf]  ;;  %v2538_v56 = vor.u32 %v2615_v61, %v2535_v6  ;;  %v2614_v34 = vld [vmem:[#allocation2 + $0xc4] sm:$0xf0]  ;;  %v2597_v30 = vld [vmem:[#allocation2 + $0x44] sm:$0xf]  ;;  %v2462_v4 = vor.u32 %v2598_v59, %v2461_v15 }
 0x255   :  { %1556 = vmatpush.bf16.msrb.mxu1 %v2546_v20  ;;  %v2463_v14 = vld [vmem:[#allocation2 + $0x48] sm:$0xf0]  ;;  %v2613_v17 = vld [vmem:[#allocation2 + $0xc4] sm:$0xf]  ;;  %v2526_v27 = vor.u32 %v2614_v34, %v2525_v31  ;;  %v2453_v21 = vld [vmem:[#allocation2 + $0x30] sm:$0xf] }
 0x256   :  { %v2527_v39 = vld [vmem:[#allocation2 + $0xc8] sm:$0xf0]  ;;  %1290 = vmatpush.bf16.msrb.mxu2 %v2470_v62  ;;  %v2466_v41 = vor.u32 %v2597_v30, %v2463_v14  ;;  %v2596_v43 = vld [vmem:[#allocation2 + $0x34] sm:$0xf0]  ;;  %v2517_v0 = vld [vmem:[#allocation2 + $0xb0] sm:$0xf] }
 0x257   :  { %1379 = vmatpush.bf16.msrb.mxu3 %v2534_v11  ;;  %v2530_v45 = vor.u32 %v2613_v17, %v2527_v39  ;;  %v2612_v2 = vld [vmem:[#allocation2 + $0xb4] sm:$0xf0]  ;;  %v2595_v47 = vld [vmem:[#allocation2 + $0x34] sm:$0xf]  ;;  %v2455_v42 = vld [vmem:[#allocation2 + $0x38] sm:$0xf0]  ;;  %v2454_v51 = vor.u32 %v2596_v43, %v2453_v21 }
 0x258   :  { %1468 = vmatpush.bf16.msrb.mxu0 %v2474_v19  ;;  %v2611_v49 = vld [vmem:[#allocation2 + $0xb4] sm:$0xf]  ;;  %v2519_v36 = vld [vmem:[#allocation2 + $0xb8] sm:$0xf0]  ;;  %v2518_v38 = vor.u32 %v2612_v2, %v2517_v0  ;;  %v2458_v35 = vor.u32 %v2595_v47, %v2455_v42  ;;  %v2445_v54 = vld [vmem:[#allocation2 + $0x20] sm:$0xf] }
 0x259   :  { %1557 = vmatpush.bf16.msrb.mxu1 %v2538_v56  ;;  %v2594_v9 = vld [vmem:[#allocation2 + $0x24] sm:$0xf0]  ;;  %v2509_v8 = vld [vmem:[#allocation2 + $0xa0] sm:$0xf]  ;;  %v2522_v20 = vor.u32 %v2611_v49, %v2519_v36  ;;  %v2593_v40 = vld [vmem:[#allocation2 + $0x24] sm:$0xf] }
 0x25a   :  { %1291 = vmatpush.bf16.msrb.mxu2 %v2462_v4  ;;  %v2610_v58 = vld [vmem:[#allocation2 + $0xa4] sm:$0xf0]  ;;  %v2447_v1 = vld [vmem:[#allocation2 + $0x28] sm:$0xf0]  ;;  %v2609_v62 = vld [vmem:[#allocation2 + $0xa4] sm:$0xf]  ;;  %v2446_v61 = vor.u32 %v2594_v9, %v2445_v54 }
 0x25b   :  { %1380 = vmatpush.bf16.msrb.mxu3 %v2526_v27  ;;  %v2511_v60 = vld [vmem:[#allocation2 + $0xa8] sm:$0xf0]  ;;  %v2510_v6 = vor.u32 %v2610_v58, %v2509_v8  ;;  %v2450_v11 = vor.u32 %v2593_v40, %v2447_v1  ;;  %v2437_v19 = vld [vmem:[#allocation2 + $0x10] sm:$0xf]  ;;  %v2592_v15 = vld [vmem:[#allocation2 + $0x14] sm:$0xf0] }
 0x25c   :  { %1469 = vmatpush.bf16.msrb.mxu0 %v2466_v41  ;;  %v2501_v59 = vld [vmem:[#allocation2 + $0x90] sm:$0xf]  ;;  %v2514_v31 = vor.u32 %v2609_v62, %v2511_v60  ;;  %v2608_v56 = vld [vmem:[#allocation2 + $0x94] sm:$0xf0]  ;;  %v2591_v34 = vld [vmem:[#allocation2 + $0x14] sm:$0xf]  ;;  %v2438_v39 = vor.u32 %v2592_v15, %v2437_v19 }
 0x25d   :  { %1558 = vmatpush.bf16.msrb.mxu1 %v2530_v45  ;;  %v2439_v30 = vld [vmem:[#allocation2 + $0x18] sm:$0xf0]  ;;  %v2607_v14 = vld [vmem:[#allocation2 + $0x94] sm:$0xf]  ;;  %v2502_v4 = vor.u32 %v2608_v56, %v2501_v59  ;;  %v2429_v41 = vld [vmem:[#allocation2] sm:$0xf] }
 0x25e   :  { %1292 = vmatpush.bf16.msrb.mxu2 %v2454_v51  ;;  %v2503_v17 = vld [vmem:[#allocation2 + $0x98] sm:$0xf0]  ;;  %v2442_v27 = vor.u32 %v2591_v34, %v2439_v30  ;;  %v2590_v21 = vld [vmem:[#allocation2 + $0x4] sm:$0xf0]  ;;  %v2493_v43 = vld [vmem:[#allocation2 + $0x80] sm:$0xf] }
 0x25f   :  { %1381 = vmatpush.bf16.msrb.mxu3 %v2518_v38  ;;  %v2506_v0 = vor.u32 %v2607_v14, %v2503_v17  ;;  %v2606_v45 = vld [vmem:[#allocation2 + $0x84] sm:$0xf0]  ;;  %v2589_v2 = vld [vmem:[#allocation2 + $0x4] sm:$0xf]  ;;  %v2431_v47 = vld [vmem:[#allocation2 + $0x8] sm:$0xf0]  ;;  %v2430_v36 = vor.u32 %v2590_v21, %v2429_v41 }
 0x260   :  { %1470 = vmatpush.bf16.msrb.mxu0 %v2458_v35  ;;  %v2605_v42 = vld [vmem:[#allocation2 + $0x84] sm:$0xf]  ;;  %v2495_v49 = vld [vmem:[#allocation2 + $0x88] sm:$0xf0]  ;;  %v2494_v51 = vor.u32 %v2606_v45, %v2493_v43  ;;  %v2434_v38 = vor.u32 %v2589_v2, %v2431_v47  ;;  %v5731_v54 = vld [vmem:[#allocation32_spill] sm:$0xff] }
 0x261   :  { %1559 = vmatpush.bf16.msrb.mxu1 %v2522_v20  ;;  %v2498_v35 = vor.u32 %v2605_v42, %v2495_v49  ;;  %v5732_v9 = vld [vmem:[#allocation15_spill] sm:$0xff]  ;;  %v5733_v8 = vld [vmem:[#allocation14_spill] sm:$0xff]  ;;  %v5734_v20 = vld [vmem:[#allocation16_spill] sm:$0xff] }
 0x262   :  { %1293 = vmatpush.bf16.msrb.mxu2 %v2446_v61  ;;  %v5735_v58 = vld [vmem:[#allocation17_spill] sm:$0xff] }
 0x263   :  { %1382 = vmatpush.bf16.msrb.mxu3 %v2510_v6 }
 0x264   :  { %1471 = vmatpush.bf16.msrb.mxu0 %v2450_v11 }
 0x265   :  { %1560 = vmatpush.bf16.msrb.mxu1 %v2514_v31 }
 0x266   :  { %1294 = vmatpush.bf16.msrb.mxu2 %v2438_v39 }
 0x267   :  { %1383 = vmatpush.bf16.msrb.mxu3 %v2502_v4 }
 0x268   :  { %1472 = vmatpush.bf16.msrb.mxu0 %v2442_v27 }
 0x269   :  { %1561 = vmatpush.bf16.msrb.mxu1 %v2506_v0 }
 0x26a   :  { %1295 = vmatpush.bf16.msrb.mxu2 %v2430_v36 }
 0x26b   :  { %1384 = vmatpush.bf16.msrb.mxu3 %v2494_v51 }
 0x26c   :  { %1473 = vmatpush.bf16.msrb.mxu0 %v2434_v38 }
 0x26d   :  { %1562 = vmatpush.bf16.msrb.mxu1 %v2498_v35  ;;  %1296 = vmatmul.bf16.vlgmr.msrb.gmra.mxu2 %v5731_v54 }
 0x26e   :  { %1385 = vmatmul.bf16.vlgmr.msrb.gmra.mxu3 %v5732_v9 }
 0x26f   :  { %1474 = vmatmul.bf16.vlgmr.msrb.gmra.mxu0 %v5731_v54 }
 0x270   :  { %1563 = vmatmul.bf16.vlgmr.msrb.gmra.mxu1 %v5732_v9 }
 0x27d   :  { %1301 = vmatmul.bf16.gmra.mxu2 %v5733_v8 }
 0x27e   :  { %1390 = vmatmul.bf16.gmra.mxu3 %v5734_v20 }
 0x27f   :  { %1479 = vmatmul.bf16.gmra.mxu0 %v5733_v8 }
 0x280   :  { %1568 = vmatmul.bf16.gmra.mxu1 %v5734_v20 }
 0x28d   :  { %1306 = vmatmul.bf16.gmra.mxu2 %v5735_v58 }
 0x28e   :  { %1395 = vmatmul.bf16.gmra.mxu3 %v4155_v52 }
 0x28f   :  { %1484 = vmatmul.bf16.gmra.mxu0 %v5735_v58 }
 0x290   :  { %1573 = vmatmul.bf16.gmra.mxu1 %v4155_v52 }
 0x29d   :  { %1311 = vmatmul.bf16.gmra.mxu2 %v4157_v22 }
 0x29e   :  { %1400 = vmatmul.bf16.gmra.mxu3 %v4159_v23 }
 0x29f   :  { %1489 = vmatmul.bf16.gmra.mxu0 %v4157_v22 }
 0x2a0   :  { %1578 = vmatmul.bf16.gmra.mxu1 %v4159_v23 }
 0x2ad   :  { %1316 = vmatmul.bf16.gmra.mxu2 %v4161_v46 }
 0x2ae   :  { %1405 = vmatmul.bf16.gmra.mxu3 %v4163_v10 }
 0x2af   :  { %1494 = vmatmul.bf16.gmra.mxu0 %v4161_v46 }
 0x2b0   :  { %1583 = vmatmul.bf16.gmra.mxu1 %v4163_v10 }
 0x2bd   :  { %1321 = vmatmul.bf16.gmra.mxu2 %v4165_v16 }
 0x2be   :  { %1410 = vmatmul.bf16.gmra.mxu3 %v4167_v25 }
 0x2bf   :  { %1499 = vmatmul.bf16.gmra.mxu0 %v4165_v16 }
 0x2c0   :  { %1588 = vmatmul.bf16.gmra.mxu1 %v4167_v25 }
 0x2cd   :  { %1326 = vmatmul.bf16.gmra.mxu2 %v4169_v3 }
 0x2ce   :  { %1415 = vmatmul.bf16.gmra.mxu3 %v4171_v55 }
 0x2cf   :  { %1504 = vmatmul.bf16.gmra.mxu0 %v4169_v3 }
 0x2d0   :  { %1593 = vmatmul.bf16.gmra.mxu1 %v4171_v55 }
 0x2dd   :  { %1331 = vmatmul.bf16.gmra.mxu2 %v4173_v53 }
 0x2de   :  { %1420 = vmatmul.bf16.gmra.mxu3 %v4175_v18 }
 0x2df   :  { %1509 = vmatmul.bf16.gmra.mxu0 %v4173_v53 }
 0x2e0   :  { %1598 = vmatmul.bf16.gmra.mxu1 %v4175_v18 }
 0x2ec   :  { %v1475_v52 = vpop.f32.mrf.mxu0 }
 0x2ed   :  { %v1564_v46 = vpop.f32.mrf.mxu1  ;;  %1336 = vmatmul.bf16.gmra.mxu2 %v4177_v5 }
 0x2ee   :  { %v4241_v22 = vadd.f32 %v1564_v46, %v1475_v52  ;;  %1425 = vmatmul.bf16.gmra.mxu3 %v4179_v24 }
 0x2ef   :  { %1514 = vmatmul.bf16.gmra.mxu0 %v4177_v5 }
 0x2f0   :  { %5736 = vst [vmem:[#allocation19_spill] sm:$0xff] %v4241_v22  ;;  %1603 = vmatmul.bf16.gmra.mxu1 %v4179_v24  ;;  %v1297_v25 = vpop.f32.mrf.mxu2 }
 0x2f1   :  { %v1386_v23 = vpop.f32.mrf.mxu3 }
 0x2f2   :  { %v4247_v10 = vadd.f32 %v1386_v23, %v1297_v25 }
 0x2f4   :  { %5737 = vst [vmem:[#allocation22_spill] sm:$0xff] %v4247_v10  ;;  %v1477_v16 = vpop.f32.mrf.mxu0 }
 0x2f5   :  { %v1566_v53 = vpop.f32.mrf.mxu1 }
 0x2f6   :  { %v4249_v3 = vadd.f32 %v1566_v53, %v1477_v16 }
 0x2f8   :  { %5738 = vst [vmem:[#allocation21_spill] sm:$0xff] %v4249_v3  ;;  %v1299_v55 = vpop.f32.mrf.mxu2 }
 0x2f9   :  { %v1388_v18 = vpop.f32.mrf.mxu3 }
 0x2fa   :  { %v4251_v40 = vadd.f32 %v1388_v18, %v1299_v55 }
 0x2fc   :  { %5739 = vst [vmem:[#allocation24_spill] sm:$0xff] %v4251_v40  ;;  %v1480_v1 = vpop.f32.mrf.mxu0 }
 0x2fd   :  { %v1569_v62 = vpop.f32.mrf.mxu1  ;;  %1341 = vmatmul.bf16.gmra.mxu2 %v4181_v57 }
 0x2fe   :  { %v4253_v60 = vadd.f32 %v1569_v62, %v1480_v1  ;;  %1430 = vmatmul.bf16.gmra.mxu3 %v4183_v26 }
 0x2ff   :  { %1519 = vmatmul.bf16.gmra.mxu0 %v4181_v57 }
 0x300   :  { %5740 = vst [vmem:[#allocation23_spill] sm:$0xff] %v4253_v60  ;;  %1608 = vmatmul.bf16.gmra.mxu1 %v4183_v26  ;;  %v1302_v5 = vpop.f32.mrf.mxu2 }
 0x301   :  { %v1391_v24 = vpop.f32.mrf.mxu3 }
 0x302   :  { %v4259_v61 = vadd.f32 %v1391_v24, %v1302_v5 }
 0x304   :  { %5741 = vst [vmem:[#allocation26_spill] sm:$0xff] %v4259_v61  ;;  %v1482_v6 = vpop.f32.mrf.mxu0 }
 0x305   :  { %v1571_v11 = vpop.f32.mrf.mxu1 }
 0x306   :  { %v4261_v19 = vadd.f32 %v1571_v11, %v1482_v6 }
 0x308   :  { %5742 = vst [vmem:[#allocation25_spill] sm:$0xff] %v4261_v19  ;;  %v1304_v15 = vpop.f32.mrf.mxu2 }
 0x309   :  { %v1393_v59 = vpop.f32.mrf.mxu3 }
 0x30a   :  { %v4263_v31 = vadd.f32 %v1393_v59, %v1304_v15 }
 0x30c   :  { %5743 = vst [vmem:[#allocation33_spill] sm:$0xff] %v4263_v31  ;;  %v1485_v56 = vpop.f32.mrf.mxu0 }
 0x30d   :  { %v1574_v34 = vpop.f32.mrf.mxu1  ;;  %1346 = vmatmul.bf16.gmra.mxu2 %v4185_v50 }
 0x30e   :  { %v4265_v30 = vadd.f32 %v1574_v34, %v1485_v56  ;;  %1435 = vmatmul.bf16.gmra.mxu3 %v4187_v12 }
 0x30f   :  { %1524 = vmatmul.bf16.gmra.mxu0 %v4185_v50 }
 0x310   :  { %5744 = vst [vmem:[#allocation28_spill] sm:$0xff] %v4265_v30  ;;  %1613 = vmatmul.bf16.gmra.mxu1 %v4187_v12  ;;  %v1307_v57 = vpop.f32.mrf.mxu2 }
 0x311   :  { %v1396_v26 = vpop.f32.mrf.mxu3 }
 0x312   :  { %v4271_v14 = vadd.f32 %v1396_v26, %v1307_v57 }
 0x314   :  { %5745 = vst [vmem:[#allocation34_spill] sm:$0xff] %v4271_v14  ;;  %v1487_v17 = vpop.f32.mrf.mxu0 }
 0x315   :  { %v1576_v39 = vpop.f32.mrf.mxu1 }
 0x316   :  { %v4273_v4 = vadd.f32 %v1576_v39, %v1487_v17 }
 0x318   :  { %5746 = vst [vmem:[#allocation13_spill] sm:$0xff] %v4273_v4  ;;  %v1309_v27 = vpop.f32.mrf.mxu2 }
 0x319   :  { %v1398_v41 = vpop.f32.mrf.mxu3 }
 0x31a   :  { %v4275_v21 = vadd.f32 %v1398_v41, %v1309_v27 }
 0x31c   :  { %5747 = vst [vmem:[#allocation29_spill] sm:$0xff] %v4275_v21  ;;  %v1490_v43 = vpop.f32.mrf.mxu0 }
 0x31d   :  { %v1579_v0 = vpop.f32.mrf.mxu1  ;;  %1351 = vmatmul.bf16.gmra.mxu2 %v4189_v63 }
 0x31e   :  { %v4277_v45 = vadd.f32 %v1579_v0, %v1490_v43  ;;  %1440 = vmatmul.bf16.gmra.mxu3 %v4191_v33 }
 0x31f   :  { %1529 = vmatmul.bf16.gmra.mxu0 %v4189_v63 }
 0x320   :  { %5748 = vst [vmem:[#allocation30_spill] sm:$0xff] %v4277_v45  ;;  %1618 = vmatmul.bf16.gmra.mxu1 %v4191_v33  ;;  %v1312_v50 = vpop.f32.mrf.mxu2 }
 0x321   :  { %v1401_v12 = vpop.f32.mrf.mxu3 }
 0x322   :  { %v4283_v2 = vadd.f32 %v1401_v12, %v1312_v50 }
 0x324   :  { %5749 = vst [vmem:[#allocation27_spill] sm:$0xff] %v4283_v2  ;;  %v1492_v47 = vpop.f32.mrf.mxu0 }
 0x325   :  { %v1581_v42 = vpop.f32.mrf.mxu1 }
 0x326   :  { %v4285_v49 = vadd.f32 %v1581_v42, %v1492_v47 }
 0x328   :  { %5750 = vst [vmem:[#allocation31_spill] sm:$0xff] %v4285_v49  ;;  %v1314_v36 = vpop.f32.mrf.mxu2 }
 0x329   :  { %v1403_v51 = vpop.f32.mrf.mxu3 }
 0x32a   :  { %v4287_v38 = vadd.f32 %v1403_v51, %v1314_v36 }
 0x32c   :  { %5751 = vst [vmem:[#allocation18_spill] sm:$0xff] %v4287_v38  ;;  %v1495_v35 = vpop.f32.mrf.mxu0 }
 0x32d   :  { %v1584_v54 = vpop.f32.mrf.mxu1  ;;  %1356 = vmatmul.bf16.gmra.mxu2 %v4193_v37 }
 0x32e   :  { %v4289_v9 = vadd.f32 %v1584_v54, %v1495_v35  ;;  %1445 = vmatmul.bf16.gmra.mxu3 %v4195_v7 }
 0x32f   :  { %1534 = vmatmul.bf16.gmra.mxu0 %v4193_v37 }
 0x330   :  { %1623 = vmatmul.bf16.gmra.mxu1 %v4195_v7  ;;  %v1317_v63 = vpop.f32.mrf.mxu2 }
 0x331   :  { %v1406_v33 = vpop.f32.mrf.mxu3 }
 0x332   :  { %v4295_v8 = vadd.f32 %v1406_v33, %v1317_v63 }
 0x334   :  { %5752 = vst [vmem:[#allocation20_spill] sm:$0xff] %v4295_v8  ;;  %v1497_v20 = vpop.f32.mrf.mxu0 }
 0x335   :  { %v1586_v58 = vpop.f32.mrf.mxu1 }
 0x336   :  { %v4297_v52 = vadd.f32 %v1586_v58, %v1497_v20 }
 0x338   :  { %v1319_v46 = vpop.f32.mrf.mxu2 }
 0x339   :  { %v1408_v25 = vpop.f32.mrf.mxu3 }
 0x33a   :  { %v4299_v23 = vadd.f32 %v1408_v25, %v1319_v46 }
 0x33c   :  { %5753 = vst [vmem:[#allocation32_spill] sm:$0xff] %v4299_v23  ;;  %v1500_v16 = vpop.f32.mrf.mxu0 }
 0x33d   :  { %v1589_v53 = vpop.f32.mrf.mxu1  ;;  %1361 = vmatmul.bf16.gmra.mxu2 %v4197_v28 }
 0x33e   :  { %v4301_v55 = vadd.f32 %v1589_v53, %v1500_v16  ;;  %1450 = vmatmul.bf16.gmra.mxu3 %v4199_v48 }
 0x33f   :  { %1539 = vmatmul.bf16.gmra.mxu0 %v4197_v28 }
 0x340   :  { %1628 = vmatmul.bf16.gmra.mxu1 %v4199_v48  ;;  %v1322_v37 = vpop.f32.mrf.mxu2 }
 0x341   :  { %v1411_v7 = vpop.f32.mrf.mxu3 }
 0x342   :  { %v4307_v18 = vadd.f32 %v1411_v7, %v1322_v37 }
 0x344   :  { %5754 = vst [vmem:[#allocation15_spill] sm:$0xff] %v4307_v18  ;;  %v1502_v1 = vpop.f32.mrf.mxu0 }
 0x345   :  { %v1591_v62 = vpop.f32.mrf.mxu1 }
 0x346   :  { %v4309_v5 = vadd.f32 %v1591_v62, %v1502_v1 }
 0x348   :  { %v1324_v24 = vpop.f32.mrf.mxu2 }
 0x349   :  { %v1413_v6 = vpop.f32.mrf.mxu3 }
 0x34a   :  { %v4311_v11 = vadd.f32 %v1413_v6, %v1324_v24 }
 0x34c   :  { %5755 = vst [vmem:[#allocation14_spill] sm:$0xff] %v4311_v11  ;;  %v1505_v15 = vpop.f32.mrf.mxu0 }
 0x34d   :  { %v1594_v59 = vpop.f32.mrf.mxu1  ;;  %1366 = vmatmul.bf16.gmra.mxu2 %v4201_v13 }
 0x34e   :  { %v4313_v56 = vadd.f32 %v1594_v59, %v1505_v15  ;;  %1455 = vmatmul.bf16.gmra.mxu3 %v4203_v32 }
 0x34f   :  { %1544 = vmatmul.bf16.gmra.mxu0 %v4201_v13 }
 0x350   :  { %1633 = vmatmul.bf16.gmra.mxu1 %v4203_v32  ;;  %v1327_v28 = vpop.f32.mrf.mxu2 }
 0x351   :  { %v1416_v48 = vpop.f32.mrf.mxu3 }
 0x352   :  { %v4319_v34 = vadd.f32 %v1416_v48, %v1327_v28 }
 0x354   :  { %v1507_v57 = vpop.f32.mrf.mxu0 }
 0x355   :  { %v1596_v26 = vpop.f32.mrf.mxu1 }
 0x356   :  { %v4321_v17 = vadd.f32 %v1596_v26, %v1507_v57 }
 0x358   :  { %v1329_v39 = vpop.f32.mrf.mxu2 }
 0x359   :  { %v1418_v27 = vpop.f32.mrf.mxu3 }
 0x35a   :  { %v4323_v41 = vadd.f32 %v1418_v27, %v1329_v39 }
 0x35c   :  { %v1510_v43 = vpop.f32.mrf.mxu0 }
 0x35d   :  { %v1599_v0 = vpop.f32.mrf.mxu1  ;;  %1371 = vmatmul.bf16.gmra.mxu2 %v4205_v29 }
 0x35e   :  { %v4325_v50 = vadd.f32 %v1599_v0, %v1510_v43  ;;  %1460 = vmatmul.bf16.gmra.mxu3 %v4207_v44 }
 0x35f   :  { %1549 = vmatmul.bf16.gmra.mxu0 %v4205_v29 }
 0x360   :  { %1638 = vmatmul.bf16.gmra.mxu1 %v4207_v44  ;;  %v1332_v13 = vpop.f32.mrf.mxu2 }
 0x361   :  { %v1421_v32 = vpop.f32.mrf.mxu3 }
 0x362   :  { %v4331_v12 = vadd.f32 %v1421_v32, %v1332_v13 }
 0x364   :  { %v1512_v47 = vpop.f32.mrf.mxu0 }
 0x365   :  { %v1601_v42 = vpop.f32.mrf.mxu1 }
 0x366   :  { %v4333_v36 = vadd.f32 %v1601_v42, %v1512_v47 }
 0x368   :  { %v1334_v51 = vpop.f32.mrf.mxu2 }
 0x369   :  { %v1423_v35 = vpop.f32.mrf.mxu3 }
 0x36a   :  { %v4335_v54 = vadd.f32 %v1423_v35, %v1334_v51 }
 0x36c   :  { %v1515_v63 = vpop.f32.mrf.mxu0 }
 0x36d   :  { %v1604_v33 = vpop.f32.mrf.mxu1 }
 0x36e   :  { %v4337_v20 = vadd.f32 %v1604_v33, %v1515_v63 }
 0x370   :  { %v1337_v58 = vpop.f32.mrf.mxu2 }
 0x371   :  { %v1426_v29 = vpop.f32.mrf.mxu3 }
 0x372   :  { %v4339_v46 = vadd.f32 %v1426_v29, %v1337_v58 }
 0x374   :  { %v1517_v44 = vpop.f32.mrf.mxu0 }
 0x375   :  { %v1606_v25 = vpop.f32.mrf.mxu1 }
 0x376   :  { %v4341_v16 = vadd.f32 %v1606_v25, %v1517_v44 }
 0x378   :  { %v1339_v53 = vpop.f32.mrf.mxu2 }
 0x379   :  { %v1428_v37 = vpop.f32.mrf.mxu3 }
 0x37a   :  { %v4343_v7 = vadd.f32 %v1428_v37, %v1339_v53 }
 0x37c   :  { %v1520_v1 = vpop.f32.mrf.mxu0 }
 0x37d   :  { %v1609_v62 = vpop.f32.mrf.mxu1 }
 0x37e   :  { %v4345_v24 = vadd.f32 %v1609_v62, %v1520_v1 }
 0x380   :  { %v1342_v6 = vpop.f32.mrf.mxu2 }
 0x381   :  { %v1431_v15 = vpop.f32.mrf.mxu3 }
 0x382   :  { %v4347_v59 = vadd.f32 %v1431_v15, %v1342_v6  ;;  %v1683_v6 = vadd.f32 %v4249_v3, %v4241_v22 }
 0x384   :  { %v1522_v28 = vpop.f32.mrf.mxu0 }
 0x385   :  { %v1611_v48 = vpop.f32.mrf.mxu1 }
 0x386   :  { %v4349_v57 = vadd.f32 %v1611_v48, %v1522_v28  ;;  %v1684_v48 = vadd.f32 %v1683_v6, %v4253_v60  ;;  %v1646_v6 = vadd.f32 %v4251_v40, %v4247_v10 }
 0x388   :  { %v1344_v26 = vpop.f32.mrf.mxu2 }
 0x389   :  { %v1433_v39 = vpop.f32.mrf.mxu3 }
 0x38a   :  { %v4351_v27 = vadd.f32 %v1433_v39, %v1344_v26  ;;  %v1685_v26 = vadd.f32 %v1684_v48, %v4261_v19 }
 0x38c   :  { %v1525_v43 = vpop.f32.mrf.mxu0 }
 0x38d   :  { %v1614_v0 = vpop.f32.mrf.mxu1 }
 0x38e   :  { %v4353_v13 = vadd.f32 %v1614_v0, %v1525_v43  ;;  %v1686_v43 = vadd.f32 %v1685_v26, %v4265_v30  ;;  %v1647_v26 = vadd.f32 %v1646_v6, %v4259_v61 }
 0x390   :  { %v1347_v32 = vpop.f32.mrf.mxu2  ;;  %v1648_v60 = vadd.f32 %v1647_v26, %v4263_v31 }
 0x391   :  { %v1436_v47 = vpop.f32.mrf.mxu3 }
 0x392   :  { %v4355_v42 = vadd.f32 %v1436_v47, %v1347_v32  ;;  %v1687_v32 = vadd.f32 %v1686_v43, %v4273_v4 }
 0x394   :  { %v1527_v51 = vpop.f32.mrf.mxu0 }
 0x395   :  { %v1616_v35 = vpop.f32.mrf.mxu1 }
 0x398   :  { %v4357_v63 = vpop.f32.mrf.mxu2 }
 0x399   :  { %v4359_v33 = vpop.f32.mrf.mxu3 }
 0x39c   :  { %v1530_v58 = vpop.f32.mrf.mxu0 }
 0x39d   :  { %v1619_v29 = vpop.f32.mrf.mxu1 }
 0x3a0   :  { %v4361_v44 = vpop.f32.mrf.mxu2 }
 0x3a1   :  { %v4363_v25 = vpop.f32.mrf.mxu3 }
 0x3a4   :  { %v1532_v53 = vpop.f32.mrf.mxu0 }
 0x3a5   :  { %v1621_v37 = vpop.f32.mrf.mxu1 }
 0x3a8   :  { %v4365_v1 = vpop.f32.mrf.mxu2 }
 0x3a9   :  { %5756 = vst [vmem:[#allocation16_spill] sm:$0xff] %v4365_v1  ;;  %v4367_v62 = vpop.f32.mrf.mxu3 }
 0x3aa   :  { %5757 = vst [vmem:[#allocation17_spill] sm:$0xff] %v4367_v62  ;;  %v1688_v62 = vadd.f32 %v1687_v32, %v4277_v45 }
 0x3ac   :  { %v1535_v15 = vpop.f32.mrf.mxu0  ;;  %v1689_v3 = vadd.f32 %v1688_v62, %v4285_v49  ;;  %v1649_v62 = vadd.f32 %v1648_v60, %v4271_v14 }
 0x3ad   :  { %v1624_v28 = vpop.f32.mrf.mxu1 }
 0x3ae   :  { %v1690_v48 = vadd.f32 %v1689_v3, %v4289_v9  ;;  %v1650_v3 = vadd.f32 %v1649_v62, %v4275_v21 }
 0x3b0   :  { %v4373_v39 = vpop.f32.mrf.mxu2  ;;  %v1691_v30 = vadd.f32 %v1690_v48, %v4297_v52  ;;  %v1651_v6 = vadd.f32 %v1650_v3, %v4283_v2 }
 0x3b1   :  { %v4376_v0 = vpop.f32.mrf.mxu3 }
 0x3b2   :  { %v1692_v32 = vadd.f32 %v1691_v30, %v4301_v55  ;;  %v1652_v30 = vadd.f32 %v1651_v6, %v4287_v38  ;;  %v4418_v38 = vadd.f32 %v1616_v35, %v1527_v51  ;;  %v4430_v35 = vadd.f32 %v1624_v28, %v1535_v15 }
 0x3b4   :  { %v1537_v47 = vpop.f32.mrf.mxu0  ;;  %v1693_v49 = vadd.f32 %v1692_v32, %v4309_v5  ;;  %v1653_v32 = vadd.f32 %v1652_v30, %v4295_v8 }
 0x3b5   :  { %v1626_v1 = vpop.f32.mrf.mxu1 }
 0x3b6   :  { %v1694_v40 = vadd.f32 %v1693_v49, %v4313_v56  ;;  %v1654_v49 = vadd.f32 %v1653_v32, %v4299_v23 }
 0x3b8   :  { %v4381_v22 = vpop.f32.mrf.mxu2  ;;  %v1695_v48 = vadd.f32 %v1694_v40, %v4321_v17  ;;  %v1655_v40 = vadd.f32 %v1654_v49, %v4307_v18  ;;  %v4422_v49 = vadd.f32 %v1619_v29, %v1530_v58  ;;  %v4434_v58 = vadd.f32 %v1626_v1, %v1537_v47 }
 0x3b9   :  { %v4386_v19 = vpop.f32.mrf.mxu3  ;;  %v4447_v1 = vadd.f32 %v4359_v33, %v4357_v63 }
 0x3ba   :  { %v1696_v60 = vadd.f32 %v1695_v48, %v4325_v50  ;;  %v1656_v48 = vadd.f32 %v1655_v40, %v4311_v11  ;;  %v4426_v11 = vadd.f32 %v1621_v37, %v1532_v53 }
 0x3bc   :  { %v1540_v43 = vpop.f32.mrf.mxu0  ;;  %v1697_v14 = vadd.f32 %v1696_v60, %v4333_v36  ;;  %v1657_v60 = vadd.f32 %v1656_v48, %v4319_v34 }
 0x3bd   :  { %v1629_v4 = vpop.f32.mrf.mxu1 }
 0x3be   :  { %v1698_v62 = vadd.f32 %v1697_v14, %v4337_v20  ;;  %v1658_v14 = vadd.f32 %v1657_v60, %v4323_v41  ;;  %v4438_v53 = vadd.f32 %v1629_v4, %v1540_v43 }
 0x3c0   :  { %v4394_v45 = vpop.f32.mrf.mxu2  ;;  %v1699_v3 = vadd.f32 %v1698_v62, %v4341_v16  ;;  %v1659_v18 = vadd.f32 %v1658_v14, %v4331_v12 }
 0x3c1   :  { %v4398_v10 = vpop.f32.mrf.mxu3 }
 0x3c2   :  { %v1700_v30 = vadd.f32 %v1699_v3, %v4345_v24 }
 0x3c4   :  { %v1542_v61 = vpop.f32.mrf.mxu0  ;;  %v1701_v8 = vadd.f32 %v1700_v30, %v4349_v57  ;;  %v1660_v30 = vadd.f32 %v1659_v18, %v4335_v54 }
 0x3c5   :  { %v1631_v26 = vpop.f32.mrf.mxu1 }
 0x3c6   :  { %v1702_v23 = vadd.f32 %v1701_v8, %v4353_v13  ;;  %v1661_v60 = vadd.f32 %v1660_v30, %v4339_v46  ;;  %v4442_v15 = vadd.f32 %v1631_v26, %v1542_v61 }
 0x3c8   :  { %v4406_v31 = vpop.f32.mrf.mxu2  ;;  %v1703_v40 = vadd.f32 %v1702_v23, %v4418_v38  ;;  %v1662_v29 = vadd.f32 %v1661_v60, %v4343_v7  ;;  %v4455_v60 = vadd.f32 %v4363_v25, %v4361_v44  ;;  %v4471_v44 = vadd.f32 %v4376_v0, %v4373_v39 }
 0x3c9   :  { %v4410_v21 = vpop.f32.mrf.mxu3  ;;  %v4485_v39 = vadd.f32 %v4398_v10, %v4394_v45 }
 0x3ca   :  { %v1704_v51 = vadd.f32 %v1703_v40, %v4422_v49  ;;  %v1663_v18 = vadd.f32 %v1662_v29, %v4347_v59  ;;  %v5758_v29 = vld [vmem:[#allocation16_spill] sm:$0xff] }
 0x3cc   :  { %v1545_v2 = vpop.f32.mrf.mxu0  ;;  %v1705_v8 = vadd.f32 %v1704_v51, %v4426_v11  ;;  %v1664_v51 = vadd.f32 %v1663_v18, %v4351_v27 }
 0x3cd   :  { %v1634_v6 = vpop.f32.mrf.mxu1 }
 0x3ce   :  { %v1706_v23 = vadd.f32 %v1705_v8, %v4430_v35  ;;  %v4450_v4 = vadd.f32 %v1634_v6, %v1545_v2  ;;  %v1665_v43 = vadd.f32 %v1664_v51, %v4355_v42 }
 0x3d0   :  { %v1367_v32 = vpop.f32.mrf.mxu2  ;;  %v1707_v40 = vadd.f32 %v1706_v23, %v4434_v58  ;;  %v1666_v8 = vadd.f32 %v1665_v43, %v4447_v1  ;;  %v5759_v23 = vld [vmem:[#allocation17_spill] sm:$0xff] }
 0x3d1   :  { %v1456_v62 = vpop.f32.mrf.mxu3  ;;  %v4463_v63 = vadd.f32 %v5759_v23, %v5758_v29 }
 0x3d2   :  { %v1708_v47 = vadd.f32 %v1707_v40, %v4438_v53  ;;  %v1667_v6 = vadd.f32 %v1666_v8, %v4455_v60  ;;  %v4491_v8 = vadd.f32 %v4410_v21, %v4406_v31  ;;  %v4494_v29 = vadd.f32 %v1456_v62, %v1367_v32 }
 0x3d4   :  { %v1547_v3 = vpop.f32.mrf.mxu0  ;;  %v1709_v61 = vadd.f32 %v1708_v47, %v4442_v15  ;;  %v1668_v51 = vadd.f32 %v1667_v6, %v4463_v63  ;;  %v4477_v47 = vadd.f32 %v4386_v19, %v4381_v22 }
 0x3d5   :  { %v1636_v48 = vpop.f32.mrf.mxu1 }
 0x3d6   :  { %v4458_v26 = vadd.f32 %v1636_v48, %v1547_v3  ;;  %v1710_v33 = vadd.f32 %v1709_v61, %v4450_v4  ;;  %v1669_v43 = vadd.f32 %v1668_v51, %v4471_v44 }
 0x3d8   :  { %v1369_v37 = vpop.f32.mrf.mxu2  ;;  %v1711_v25 = vadd.f32 %v1710_v33, %v4458_v26  ;;  %v1670_v61 = vadd.f32 %v1669_v43, %v4477_v47 }
 0x3d9   :  { %v1458_v14 = vpop.f32.mrf.mxu3 }
 0x3da   :  { %v1671_v19 = vadd.f32 %v1670_v61, %v4485_v39  ;;  %v4497_v6 = vadd.f32 %v1458_v14, %v1369_v37  ;;  %v5760_v61 = vld [vmem:[#allocation19_spill] sm:$0xff] }
 0x3dc   :  { %v1550_v28 = vpop.f32.mrf.mxu0  ;;  %v1672_v33 = vadd.f32 %v1671_v19, %v4491_v8 }
 0x3dd   :  { %v1639_v30 = vpop.f32.mrf.mxu1 }
 0x3de   :  { %v4466_v2 = vadd.f32 %v1639_v30, %v1550_v28 }
 0x3e0   :  { %v1372_v3 = vpop.f32.mrf.mxu2  ;;  %v1712_v28 = vadd.f32 %v1711_v25, %v4466_v2 }
 0x3e1   :  { %v1461_v18 = vpop.f32.mrf.mxu3 }
 0x3e4   :  { %v1552_v48 = vpop.f32.mrf.mxu0 }
 0x3e5   :  { %v1641_v40 = vpop.f32.mrf.mxu1 }
 0x3e6   :  { %v4480_v30 = vadd.f32 %v1641_v40, %v1552_v48  ;;  %v1673_v48 = vadd.f32 %v1672_v33, %v4494_v29  ;;  %v4500_v40 = vadd.f32 %v1461_v18, %v1372_v3  ;;  %v5761_v3 = vld [vmem:[#allocation21_spill] sm:$0xff] }
 0x3e8   :  { %v1713_v0 = vadd.f32 %v1712_v28, %v4480_v30  ;;  %v1374_v45 = vpop.f32.mrf.mxu2  ;;  %v1674_v31 = vadd.f32 %v1673_v48, %v4497_v6 }
 0x3e9   :  { %v1463_v25 = vpop.f32.mrf.mxu3 }
 0x3ea   :  { %v1714_v22 = vrot.slane %v1713_v0, 4  ;;  %v4503_v21 = vadd.f32 %v1463_v25, %v1374_v45  ;;  %v1675_v32 = vadd.f32 %v1674_v31, %v4500_v40  ;;  %v5765_v25 = vld [vmem:[#allocation25_spill] sm:$0xff]  ;;  %v5766_v31 = vld [vmem:[#allocation28_spill] sm:$0xff] }
 0x3ec   :  { %v1715_v23 = vadd.f32 %v1714_v22, %v1713_v0  ;;  %v1676_v28 = vadd.f32 %v1675_v32, %v4503_v21 }
 0x3ee   :  { %v1716_v10 = vrot.slane %v1715_v23, 2  ;;  %v1677_v37 = vrot.slane %v1676_v28, 4 }
 0x3f0   :  { %v1717_v51 = vadd.f32 %v1716_v10, %v1715_v23  ;;  %v1678_v0 = vadd.f32 %v1677_v37, %v1676_v28  ;;  %v5763_v23 = vld [vmem:[#allocation23_spill] sm:$0xff] }
 0x3f2   :  { %v1718_v62 = vrot.slane %v1717_v51, 1  ;;  %v1679_v19 = vrot.slane %v1678_v0, 2 }
 0x3f4   :  { %v1719_v43 = vadd.f32 %v1718_v62, %v1717_v51  ;;  %v1680_v51 = vadd.f32 %v1679_v19, %v1678_v0 }
 0x3f6   :  { %v4507_v14 = vmul.f32 0.00390625, %v1719_v43  ;;  %v5768_v43 = vld [vmem:[#allocation13_spill] sm:$0xff] }
 0x3f8   :  { %v4511_v22 = vsub.f32 %v5760_v61, %v4507_v14  ;;  %v4515_v18 = vsub.f32 %v5761_v3, %v4507_v14  ;;  %v4519_v33 = vsub.f32 %v5763_v23, %v4507_v14  ;;  %v4527_v48 = vsub.f32 %v5765_v25, %v4507_v14  ;;  %v5769_v25 = vld [vmem:[#allocation30_spill] sm:$0xff] }
 0x3f9   :  { %v4531_v32 = vsub.f32 %v5766_v31, %v4507_v14  ;;  %v4537_v37 = vsub.f32 %v5768_v43, %v4507_v14  ;;  %v1681_v23 = vrot.slane %v1680_v51, 1  ;;  %v4543_v0 = vsub.f32 %v5769_v25, %v4507_v14 }
 0x3fa   :  { %5762 = vst [vmem:[#allocation16_spill] sm:$0xff] %v4515_v18  ;;  %v1787_v10 = vmul.f32 %v4511_v22, %v4511_v22  ;;  %v1789_v45 = vmul.f32 %v4515_v18, %v4515_v18  ;;  %v1791_v62 = vmul.f32 %v4519_v33, %v4519_v33  ;;  %v1793_v61 = vmul.f32 %v4527_v48, %v4527_v48 }
 0x3fb   :  { %5764 = vst [vmem:[#allocation17_spill] sm:$0xff] %v4519_v33  ;;  %v1795_v19 = vmul.f32 %v4531_v32, %v4531_v32  ;;  %v5770_v33 = vld [vmem:[#allocation31_spill] sm:$0xff]  ;;  %v1682_v18 = vadd.f32 %v1681_v23, %v1680_v51  ;;  %v4569_v51 = vsub.f32 %v4301_v55, %v4507_v14 }
 0x3fc   :  { %5767 = vst [vmem:[#allocation19_spill] sm:$0xff] %v4531_v32  ;;  %v1887_v28 = vadd.f32 %v1789_v45, %v1787_v10  ;;  %v4549_v10 = vsub.f32 %v5770_v33, %v4507_v14  ;;  %v1797_v45 = vmul.f32 %v4537_v37, %v4537_v37 }
 0x3fd   :  { %v4565_v32 = vmul.f32 0.00390625, %v1682_v18  ;;  %5773 = vst [vmem:[#allocation25_spill] sm:$0xff] %v4569_v51 }
 0x3fe   :  { %v1888_v3 = vadd.f32 %v1887_v28, %v1791_v62  ;;  %v4555_v62 = vsub.f32 %v4289_v9, %v4507_v14  ;;  %v1799_v28 = vmul.f32 %v4543_v0, %v4543_v0  ;;  %v1801_v33 = vmul.f32 %v4549_v10, %v4549_v10 }
 0x400   :  { %v1889_v31 = vadd.f32 %v1888_v3, %v1793_v61  ;;  %5771 = vst [vmem:[#allocation21_spill] sm:$0xff] %v4555_v62  ;;  %v4561_v61 = vsub.f32 %v4297_v52, %v4507_v14  ;;  %v1803_v9 = vmul.f32 %v4555_v62, %v4555_v62  ;;  %v5785_v62 = vld [vmem:[#allocation29_spill] sm:$0xff] }
 0x402   :  { %v1890_v43 = vadd.f32 %v1889_v31, %v1795_v19  ;;  %5772 = vst [vmem:[#allocation23_spill] sm:$0xff] %v4561_v61  ;;  %v4575_v19 = vsub.f32 %v4309_v5, %v4507_v14  ;;  %v1805_v52 = vmul.f32 %v4561_v61, %v4561_v61  ;;  %v1807_v5 = vmul.f32 %v4569_v51, %v4569_v51  ;;  %v5783_v61 = vld [vmem:[#allocation34_spill] sm:$0xff] }
 0x404   :  { %v1891_v25 = vadd.f32 %v1890_v43, %v1797_v45  ;;  %5774 = vst [vmem:[#allocation28_spill] sm:$0xff] %v4575_v19  ;;  %v5775_v45 = vld [vmem:[#allocation22_spill] sm:$0xff]  ;;  %v5776_v43 = vld [vmem:[#allocation24_spill] sm:$0xff] }
 0x405   :  { %v4581_v18 = vsub.f32 %v5775_v45, %v4565_v32  ;;  %v4585_v55 = vsub.f32 %v5776_v43, %v4565_v32 }
 0x406   :  { %v1892_v3 = vadd.f32 %v1891_v25, %v1799_v28  ;;  %v4589_v28 = vsub.f32 %v4313_v56, %v4507_v14 }
 0x407   :  { %v1786_v56 = vmul.f32 %v4581_v18, %v4581_v18  ;;  %v1788_v43 = vmul.f32 %v4585_v55, %v4585_v55 }
 0x408   :  { %v1893_v23 = vadd.f32 %v1892_v3, %v1801_v33  ;;  %5777 = vst [vmem:[#allocation13_spill] sm:$0xff] %v4589_v28  ;;  %v4595_v33 = vsub.f32 %v4321_v17, %v4507_v14  ;;  %v1809_v3 = vmul.f32 %v4575_v19, %v4575_v19  ;;  %v1811_v17 = vmul.f32 %v4589_v28, %v4589_v28 }
 0x40a   :  { %v1894_v31 = vadd.f32 %v1893_v23, %v1803_v9  ;;  %5778 = vst [vmem:[#allocation30_spill] sm:$0xff] %v4595_v33  ;;  %v5779_v23 = vld [vmem:[#allocation26_spill] sm:$0xff]  ;;  %v1813_v19 = vmul.f32 %v4595_v33, %v4595_v33  ;;  %v4637_v33 = vsub.f32 %v5785_v62, %v4565_v32 }
 0x40b   :  { %v4601_v45 = vsub.f32 %v5779_v23, %v4565_v32  ;;  %v4619_v23 = vsub.f32 %v4333_v36, %v4507_v14 }
 0x40c   :  { %v1895_v25 = vadd.f32 %v1894_v31, %v1805_v52  ;;  %v4609_v52 = vsub.f32 %v4325_v50, %v4507_v14  ;;  %v4625_v50 = vsub.f32 %v5783_v61, %v4565_v32 }
 0x40d   :  { %5782 = vst [vmem:[#allocation22_spill] sm:$0xff] %v4619_v23  ;;  %v1790_v28 = vmul.f32 %v4601_v45, %v4601_v45 }
 0x40e   :  { %v1896_v9 = vadd.f32 %v1895_v25, %v1807_v5  ;;  %5780 = vst [vmem:[#allocation31_spill] sm:$0xff] %v4609_v52  ;;  %v5781_v5 = vld [vmem:[#allocation33_spill] sm:$0xff]  ;;  %v1815_v36 = vmul.f32 %v4609_v52, %v4609_v52  ;;  %v1794_v62 = vmul.f32 %v4625_v50, %v4625_v50 }
 0x40f   :  { %v4615_v25 = vsub.f32 %v5781_v5, %v4565_v32 }
 0x410   :  { %v1897_v31 = vadd.f32 %v1896_v9, %v1809_v3  ;;  %v1850_v3 = vadd.f32 %v1788_v43, %v1786_v56  ;;  %v4631_v9 = vsub.f32 %v4337_v20, %v4507_v14  ;;  %v1817_v20 = vmul.f32 %v4619_v23, %v4619_v23  ;;  %v5787_v43 = vld [vmem:[#allocation27_spill] sm:$0xff] }
 0x411   :  { %v1792_v61 = vmul.f32 %v4615_v25, %v4615_v25  ;;  %v4649_v52 = vsub.f32 %v5787_v43, %v4565_v32  ;;  %v4667_v43 = vsub.f32 %v4349_v57, %v4507_v14 }
 0x412   :  { %v1898_v51 = vadd.f32 %v1897_v31, %v1811_v17  ;;  %5784 = vst [vmem:[#allocation24_spill] sm:$0xff] %v4631_v9  ;;  %v1851_v17 = vadd.f32 %v1850_v3, %v1790_v28  ;;  %v4643_v31 = vsub.f32 %v4341_v16, %v4507_v14  ;;  %v1819_v16 = vmul.f32 %v4631_v9, %v4631_v9  ;;  %v5789_v3 = vld [vmem:[#allocation18_spill] sm:$0xff] }
 0x413   :  { %v4661_v23 = vsub.f32 %v5789_v3, %v4565_v32  ;;  %5790 = vst [vmem:[#allocation34_spill] sm:$0xff] %v4667_v43  ;;  %v4679_v3 = vsub.f32 %v4353_v13, %v4507_v14  ;;  %v1825_v13 = vmul.f32 %v4667_v43, %v4667_v43 }
 0x414   :  { %v1899_v5 = vadd.f32 %v1898_v51, %v1813_v19  ;;  %5786 = vst [vmem:[#allocation26_spill] sm:$0xff] %v4643_v31  ;;  %v1852_v51 = vadd.f32 %v1851_v17, %v1792_v61  ;;  %v4655_v19 = vsub.f32 %v4345_v24, %v4507_v14  ;;  %v1821_v24 = vmul.f32 %v4643_v31, %v4643_v31  ;;  %v5791_v17 = vld [vmem:[#allocation20_spill] sm:$0xff] }
 0x415   :  { %v4673_v9 = vsub.f32 %v5791_v17, %v4565_v32  ;;  %v4691_v17 = vsub.f32 %v4418_v38, %v4507_v14  ;;  %v1827_v38 = vmul.f32 %v4679_v3, %v4679_v3 }
 0x416   :  { %v1900_v56 = vadd.f32 %v1899_v5, %v1815_v36  ;;  %5788 = vst [vmem:[#allocation33_spill] sm:$0xff] %v4655_v19  ;;  %v1796_v36 = vmul.f32 %v4637_v33, %v4637_v33  ;;  %v1853_v5 = vadd.f32 %v1852_v51, %v1794_v62  ;;  %v1823_v57 = vmul.f32 %v4655_v19, %v4655_v19  ;;  %v5792_v51 = vld [vmem:[#allocation32_spill] sm:$0xff] }
 0x417   :  { %v4685_v31 = vsub.f32 %v5792_v51, %v4565_v32  ;;  %v4703_v51 = vsub.f32 %v4422_v49, %v4507_v14  ;;  %v1829_v49 = vmul.f32 %v4691_v17, %v4691_v17 }
 0x418   :  { %v1901_v28 = vadd.f32 %v1900_v56, %v1817_v20  ;;  %v1798_v20 = vmul.f32 %v4649_v52, %v4649_v52  ;;  %v1854_v56 = vadd.f32 %v1853_v5, %v1796_v36  ;;  %v5793_v5 = vld [vmem:[#allocation15_spill] sm:$0xff] }
 0x419   :  { %v4697_v19 = vsub.f32 %v5793_v5, %v4565_v32  ;;  %v4715_v5 = vsub.f32 %v4426_v11, %v4507_v14  ;;  %v1831_v11 = vmul.f32 %v4703_v51, %v4703_v51 }
 0x41a   :  { %v1902_v61 = vadd.f32 %v1901_v28, %v1819_v16  ;;  %v1800_v16 = vmul.f32 %v4661_v23, %v4661_v23  ;;  %v1855_v28 = vadd.f32 %v1854_v56, %v1798_v20  ;;  %v5794_v56 = vld [vmem:[#allocation14_spill] sm:$0xff] }
 0x41b   :  { %v4709_v43 = vsub.f32 %v5794_v56, %v4565_v32  ;;  %v4727_v56 = vsub.f32 %v4430_v35, %v4507_v14  ;;  %v1833_v35 = vmul.f32 %v4715_v5, %v4715_v5 }
 0x41c   :  { %v1903_v62 = vadd.f32 %v1902_v61, %v1821_v24  ;;  %v1802_v24 = vmul.f32 %v4673_v9, %v4673_v9  ;;  %v1856_v61 = vadd.f32 %v1855_v28, %v1800_v16  ;;  %v4721_v28 = vsub.f32 %v4319_v34, %v4565_v32 }
 0x41d   :  { %v1808_v34 = vmul.f32 %v4709_v43, %v4709_v43 }
 0x41e   :  { %v1904_v36 = vadd.f32 %v1903_v62, %v1823_v57  ;;  %v1804_v57 = vmul.f32 %v4685_v31, %v4685_v31  ;;  %v1857_v62 = vadd.f32 %v1856_v61, %v1802_v24  ;;  %v4733_v61 = vsub.f32 %v4323_v41, %v4565_v32 }
 0x41f   :  { %v1810_v41 = vmul.f32 %v4721_v28, %v4721_v28 }
 0x420   :  { %v1905_v20 = vadd.f32 %v1904_v36, %v1825_v13  ;;  %v1806_v13 = vmul.f32 %v4697_v19, %v4697_v19  ;;  %v1858_v36 = vadd.f32 %v1857_v62, %v1804_v57  ;;  %v4745_v62 = vsub.f32 %v4331_v12, %v4565_v32 }
 0x421   :  { %v1812_v12 = vmul.f32 %v4733_v61, %v4733_v61 }
 0x422   :  { %v1906_v16 = vadd.f32 %v1905_v20, %v1827_v38  ;;  %v1859_v38 = vadd.f32 %v1858_v36, %v1806_v13  ;;  %v4739_v20 = vsub.f32 %v4434_v58, %v4507_v14  ;;  %v1835_v58 = vmul.f32 %v4727_v56, %v4727_v56 }
 0x423   :  { %v4757_v36 = vsub.f32 %v4335_v54, %v4565_v32  ;;  %v1814_v54 = vmul.f32 %v4745_v62, %v4745_v62 }
 0x424   :  { %v1907_v24 = vadd.f32 %v1906_v16, %v1829_v49  ;;  %v1860_v49 = vadd.f32 %v1859_v38, %v1808_v34  ;;  %v4751_v16 = vsub.f32 %v4438_v53, %v4507_v14  ;;  %v1837_v53 = vmul.f32 %v4739_v20, %v4739_v20 }
 0x425   :  { %v4769_v38 = vsub.f32 %v4339_v46, %v4565_v32  ;;  %v1816_v46 = vmul.f32 %v4757_v36, %v4757_v36 }
 0x426   :  { %v1908_v57 = vadd.f32 %v1907_v24, %v1831_v11  ;;  %v1861_v11 = vadd.f32 %v1860_v49, %v1810_v41  ;;  %v4763_v24 = vsub.f32 %v4442_v15, %v4507_v14  ;;  %v1839_v15 = vmul.f32 %v4751_v16, %v4751_v16 }
 0x427   :  { %v4781_v49 = vsub.f32 %v4343_v7, %v4565_v32  ;;  %v1818_v7 = vmul.f32 %v4769_v38, %v4769_v38 }
 0x428   :  { %v1909_v13 = vadd.f32 %v1908_v57, %v1833_v35  ;;  %v1862_v35 = vadd.f32 %v1861_v11, %v1812_v12  ;;  %v4775_v57 = vsub.f32 %v4450_v4, %v4507_v14  ;;  %v1841_v4 = vmul.f32 %v4763_v24, %v4763_v24 }
 0x429   :  { %v4793_v11 = vsub.f32 %v4347_v59, %v4565_v32  ;;  %v1820_v59 = vmul.f32 %v4781_v49, %v4781_v49 }
 0x42a   :  { %v1910_v34 = vadd.f32 %v1909_v13, %v1835_v58  ;;  %5795 = vst [vmem:[#allocation29_spill] sm:$0xff] %v4775_v57  ;;  %v1863_v58 = vadd.f32 %v1862_v35, %v1814_v54  ;;  %v4787_v13 = vsub.f32 %v4458_v26, %v4507_v14  ;;  %v1843_v26 = vmul.f32 %v4775_v57, %v4775_v57 }
 0x42b   :  { %v4805_v35 = vsub.f32 %v4351_v27, %v4565_v32  ;;  %v1822_v27 = vmul.f32 %v4793_v11, %v4793_v11 }
 0x42c   :  { %v1911_v41 = vadd.f32 %v1910_v34, %v1837_v53  ;;  %5796 = vst [vmem:[#allocation27_spill] sm:$0xff] %v4787_v13  ;;  %v1864_v53 = vadd.f32 %v1863_v58, %v1816_v46  ;;  %v4799_v34 = vsub.f32 %v4466_v2, %v4507_v14  ;;  %v1845_v2 = vmul.f32 %v4787_v13, %v4787_v13 }
 0x42d   :  { %v4817_v58 = vsub.f32 %v4355_v42, %v4565_v32 }
 0x42e   :  { %v1912_v12 = vadd.f32 %v1911_v41, %v1839_v15  ;;  %5797 = vst [vmem:[#allocation18_spill] sm:$0xff] %v4799_v34  ;;  %v1865_v15 = vadd.f32 %v1864_v53, %v1818_v7  ;;  %v4811_v41 = vsub.f32 %v4480_v30, %v4507_v14  ;;  %v4825_v30 = vsub.f32 %v4447_v1, %v4565_v32 }
 0x42f   :  { %v1824_v14 = vmul.f32 %v4805_v35, %v4805_v35  ;;  %v4839_v1 = vsub.f32 %v4463_v63, %v4565_v32 }
 0x430   :  { %v1913_v54 = vadd.f32 %v1912_v12, %v1841_v4  ;;  %5798 = vst [vmem:[#allocation20_spill] sm:$0xff] %v4811_v41  ;;  %v1866_v4 = vadd.f32 %v1865_v15, %v1820_v59  ;;  %v1847_v12 = vmul.f32 %v4799_v34, %v4799_v34  ;;  %v1849_v42 = vmul.f32 %v4811_v41, %v4811_v41 }
 0x431   :  { %v1826_v59 = vmul.f32 %v4817_v58, %v4817_v58  ;;  %v1832_v63 = vmul.f32 %v4839_v1, %v4839_v1 }
 0x432   :  { %v1914_v46 = vadd.f32 %v1913_v54, %v1843_v26  ;;  %v1867_v53 = vadd.f32 %v1866_v4, %v1822_v27  ;;  %v4833_v54 = vsub.f32 %v4455_v60, %v4565_v32 }
 0x434   :  { %v1915_v7 = vadd.f32 %v1914_v46, %v1845_v2  ;;  %v1868_v15 = vadd.f32 %v1867_v53, %v1824_v14  ;;  %v1828_v46 = vmul.f32 %v4825_v30, %v4825_v30  ;;  %v1830_v60 = vmul.f32 %v4833_v54, %v4833_v54 }
 0x435   :  { %v4851_v14 = vsub.f32 %v4477_v47, %v4565_v32 }
 0x436   :  { %v1916_v26 = vadd.f32 %v1915_v7, %v1847_v12  ;;  %v1869_v27 = vadd.f32 %v1868_v15, %v1826_v59  ;;  %v4845_v12 = vsub.f32 %v4471_v44, %v4565_v32 }
 0x437   :  { %v1836_v47 = vmul.f32 %v4851_v14, %v4851_v14 }
 0x438   :  { %v1917_v2 = vadd.f32 %v1916_v26, %v1849_v42  ;;  %v1870_v7 = vadd.f32 %v1869_v27, %v1828_v46  ;;  %v4857_v26 = vsub.f32 %v4485_v39, %v4565_v32  ;;  %v1834_v44 = vmul.f32 %v4845_v12, %v4845_v12 }
 0x43a   :  { %v1918_v4 = vrot.slane %v1917_v2, 4  ;;  %v1871_v53 = vadd.f32 %v1870_v7, %v1830_v60  ;;  %v1838_v39 = vmul.f32 %v4857_v26, %v4857_v26 }
 0x43c   :  { %v1919_v41 = vadd.f32 %v1918_v4, %v1917_v2  ;;  %v1872_v59 = vadd.f32 %v1871_v53, %v1832_v63  ;;  %v4863_v2 = vsub.f32 %v4491_v8, %v4565_v32  ;;  %v4869_v4 = vsub.f32 %v4494_v29, %v4565_v32 }
 0x43d   :  { %v4881_v53 = vsub.f32 %v4500_v40, %v4565_v32 }
 0x43e   :  { %v1920_v42 = vrot.slane %v1919_v41, 2  ;;  %v1873_v46 = vadd.f32 %v1872_v59, %v1834_v44  ;;  %v1840_v8 = vmul.f32 %v4863_v2, %v4863_v2  ;;  %v1842_v29 = vmul.f32 %v4869_v4, %v4869_v4 }
 0x43f   :  { %5800 = vst [vmem:[#allocation15_spill] sm:$0xff] %v4881_v53  ;;  %v4887_v59 = vsub.f32 %v4503_v21, %v4565_v32 }
 0x440   :  { %v1921_v15 = vadd.f32 %v1920_v42, %v1919_v41  ;;  %v1874_v60 = vadd.f32 %v1873_v46, %v1836_v47  ;;  %v4875_v41 = vsub.f32 %v4497_v6, %v4565_v32  ;;  %v1846_v47 = vmul.f32 %v4881_v53, %v4881_v53 }
 0x441   :  { %5801 = vst [vmem:[#allocation14_spill] sm:$0xff] %v4887_v59  ;;  %v1848_v40 = vmul.f32 %v4887_v59, %v4887_v59 }
 0x442   :  { %v1922_v27 = vrot.slane %v1921_v15, 1  ;;  %5799 = vst [vmem:[#allocation32_spill] sm:$0xff] %v4875_v41  ;;  %v1875_v63 = vadd.f32 %v1874_v60, %v1838_v39  ;;  %v1844_v6 = vmul.f32 %v4875_v41, %v4875_v41 }
 0x444   :  { %v1923_v7 = vadd.f32 %v1922_v27, %v1921_v15  ;;  %v1876_v42 = vadd.f32 %v1875_v63, %v1840_v8 }
 0x446   :  { %v1925_v44 = vmul.f32 0.00390625, %v1923_v7  ;;  %v1877_v15 = vadd.f32 %v1876_v42, %v1842_v29 }
 0x448   :  { %v1878_v46 = vadd.f32 %v1877_v15, %v1844_v6  ;;  %v1927_v27 = vadd.f32 1e-05, %v1925_v44 }
 0x44a   :  { %v1879_v39 = vadd.f32 %v1878_v46, %v1846_v47  ;;  %2642 = vrsqrt.f32 %v1927_v27  ;;  %vm1944_vm8 = vweird.f32 %v1927_v27 }
 0x44c   :  { %v1880_v60 = vadd.f32 %v1879_v39, %v1848_v40 }
 0x44e   :  { %v1881_v7 = vrot.slane %v1880_v60, 4 }
 0x450   :  { %v1882_v8 = vadd.f32 %v1881_v7, %v1880_v60  ;;  %v2643_v21 = vpop.eup %2642 }
 0x451   :  { %v1939_v13 = vmul.f32 %v2643_v21, %v1927_v27  ;;  %vm1945_vm7 = vweird.f32 %v2643_v21 }
 0x452   :  { %v1883_v63 = vrot.slane %v1882_v8, 2  ;;  %vm1946_vm9 = vmor %vm1944_vm8, %vm1945_vm7 }
 0x453   :  { %v1940_v42 = vmul.f32 %v2643_v21, %v1939_v13  ;;  %v1644_v13 = vld [vmem:[%s5502_s5] sm:$0x3] }
 0x454   :  { %v1884_v32 = vadd.f32 %v1883_v63, %v1882_v8 }
 0x455   :  { %v1941_v6 = vmul.f32 0.5, %v1940_v42  ;;  %v5802_v42 = vld [vmem:[#allocation16_spill] sm:$0xff] }
 0x456   :  { %v1885_v34 = vrot.slane %v1884_v32, 1 }
 0x457   :  { %v1942_v44 = vsub.f32 1.5, %v1941_v6 }
 0x458   :  { %v1886_v41 = vadd.f32 %v1885_v34, %v1884_v32 }
 0x459   :  { %v1943_v59 = vmul.f32 %v2643_v21, %v1942_v44 }
 0x45a   :  { %v1924_v29 = vmul.f32 0.00390625, %v1886_v41 }
 0x45b   :  { %v1947_v40 = vsel %vm1946_vm9, %v2643_v21, %v1943_v59 }
 0x45c   :  { %v1926_v57 = vadd.f32 1e-05, %v1924_v29  ;;  %v1950_v34 = vrot.slane %v1947_v40, 7 }
 0x45e   :  { %2644 = vrsqrt.f32 %v1926_v57  ;;  %vm1934_vm11 = vweird.f32 %v1926_v57 }
 0x464   :  { %v2645_v15 = vpop.eup %2644 }
 0x465   :  { %v1929_v53 = vmul.f32 %v2645_v15, %v1926_v57  ;;  %vm1935_vm10 = vweird.f32 %v2645_v15 }
 0x466   :  { %vm1936_vm12 = vmor %vm1934_vm11, %vm1935_vm10 }
 0x467   :  { %v1930_v47 = vmul.f32 %v2645_v15, %v1929_v53  ;;  %v1645_v53 = vld [vmem:[%s5503_s6] sm:$0x3] }
 0x468   :  { %v4906_v63 = vperm.slane %v1645_v53, 0  ;;  %v4908_v57 = vperm.slane %v1645_v53, 1 }
 0x469   :  { %v1931_v46 = vmul.f32 0.5, %v1930_v47 }
 0x46b   :  { %v1932_v39 = vsub.f32 1.5, %v1931_v46  ;;  %v5804_v46 = vld [vmem:[#allocation19_spill] sm:$0xff] }
 0x46d   :  { %v1933_v60 = vmul.f32 %v2645_v15, %v1932_v39 }
 0x46f   :  { %v1937_v41 = vsel %vm1936_vm12, %v2645_v15, %v1933_v60  ;;  %v5803_v15 = vld [vmem:[#allocation17_spill] sm:$0xff] }
 0x470   :  { %v1951_v7 = vsel %vm854_vm5, %v1937_v41, %v1950_v34  ;;  %v5805_v60 = vld [vmem:[#allocation21_spill] sm:$0xff]  ;;  %v5806_v34 = vld [vmem:[#allocation23_spill] sm:$0xff] }
 0x471   :  { %v1953_v27 = vmul.f32 %v1951_v7, %v1644_v13  ;;  %v5807_v13 = vld [vmem:[#allocation25_spill] sm:$0xff]  ;;  %v5808_v7 = vld [vmem:[#allocation28_spill] sm:$0xff] }
 0x473   :  { %v4902_v8 = vperm.slane %v1953_v27, 0  ;;  %v4904_v59 = vperm.slane %v1953_v27, 1  ;;  %v5809_v27 = vld [vmem:[#allocation13_spill] sm:$0xff] }
 0x475   :  { %v4912_v21 = vmul.f32 %v4902_v8, %v4581_v18  ;;  %v4916_v32 = vmul.f32 %v4904_v59, %v4511_v22  ;;  %v4920_v29 = vmul.f32 %v4902_v8, %v4585_v55  ;;  %v4924_v6 = vmul.f32 %v4904_v59, %v5802_v42 }
 0x476   :  { %v4928_v44 = vmul.f32 %v4902_v8, %v4601_v45  ;;  %v4932_v18 = vmul.f32 %v4904_v59, %v5803_v15  ;;  %v4936_v22 = vmul.f32 %v4902_v8, %v4615_v25  ;;  %v4940_v55 = vmul.f32 %v4904_v59, %v4527_v48  ;;  %v5810_v15 = vld [vmem:[#allocation30_spill] sm:$0xff] }
 0x477   :  { %v4944_v47 = vmul.f32 %v4902_v8, %v4625_v50  ;;  %v4948_v45 = vmul.f32 %v4904_v59, %v5804_v46  ;;  %v4952_v40 = vmul.f32 %v4902_v8, %v4637_v33  ;;  %v4956_v25 = vmul.f32 %v4904_v59, %v4537_v37 }
 0x478   :  { %v4960_v48 = vmul.f32 %v4902_v8, %v4649_v52  ;;  %v4964_v50 = vmul.f32 %v4904_v59, %v4543_v0  ;;  %v4968_v39 = vmul.f32 %v4902_v8, %v4661_v23  ;;  %v4972_v33 = vmul.f32 %v4904_v59, %v4549_v10 }
 0x479   :  { %v4976_v37 = vmul.f32 %v4902_v8, %v4673_v9  ;;  %v4980_v52 = vmul.f32 %v4904_v59, %v5805_v60  ;;  %v4984_v0 = vmul.f32 %v4902_v8, %v4685_v31  ;;  %v4988_v23 = vmul.f32 %v4904_v59, %v5806_v34  ;;  %v5811_v60 = vld [vmem:[#allocation31_spill] sm:$0xff] }
 0x47a   :  { %v4992_v10 = vmul.f32 %v4902_v8, %v4697_v19  ;;  %v4996_v9 = vmul.f32 %v4904_v59, %v5807_v13  ;;  %v5000_v41 = vmul.f32 %v4902_v8, %v4709_v43  ;;  %v5004_v31 = vmul.f32 %v4904_v59, %v5808_v7  ;;  %v5812_v13 = vld [vmem:[#allocation22_spill] sm:$0xff] }
 0x47b   :  { %v5008_v53 = vmul.f32 %v4902_v8, %v4721_v28  ;;  %v5012_v19 = vmul.f32 %v4904_v59, %v5809_v27  ;;  %v5016_v42 = vmul.f32 %v4902_v8, %v4733_v61  ;;  %v5020_v43 = vmul.f32 %v4904_v59, %v5810_v15  ;;  %v5814_v27 = vld [vmem:[#allocation24_spill] sm:$0xff] }
 0x47c   :  { %v5024_v46 = vmul.f32 %v4902_v8, %v4745_v62  ;;  %v5028_v28 = vmul.f32 %v4904_v59, %v5811_v60  ;;  %v5032_v34 = vmul.f32 %v4902_v8, %v4757_v36  ;;  %v5036_v61 = vmul.f32 %v4904_v59, %v5812_v13  ;;  %v5816_v60 = vld [vmem:[#allocation26_spill] sm:$0xff] }
 0x47d   :  { %v5040_v7 = vmul.f32 %v4902_v8, %v4769_v38  ;;  %v5044_v62 = vmul.f32 %v4904_v59, %v5814_v27  ;;  %v5048_v15 = vmul.f32 %v4902_v8, %v4781_v49  ;;  %v5052_v36 = vmul.f32 %v4904_v59, %v5816_v60 }
 0x47e   :  { %5813 = vst [vmem:[#allocation16_spill] sm:$0xff] %v5036_v61  ;;  %v5056_v13 = vmul.f32 %v4902_v8, %v4793_v11  ;;  %v5817_v61 = vld [vmem:[#allocation33_spill] sm:$0xff]  ;;  %v5064_v27 = vmul.f32 %v4902_v8, %v4805_v35  ;;  %v5072_v60 = vmul.f32 %v4902_v8, %v4817_v58  ;;  %v5076_v11 = vmul.f32 %v4904_v59, %v4679_v3 }
 0x47f   :  { %5815 = vst [vmem:[#allocation17_spill] sm:$0xff] %v5044_v62  ;;  %v5060_v38 = vmul.f32 %v4904_v59, %v5817_v61  ;;  %v5818_v62 = vld [vmem:[#allocation34_spill] sm:$0xff]  ;;  %v5080_v61 = vmul.f32 %v4902_v8, %v4825_v30  ;;  %v5084_v35 = vmul.f32 %v4904_v59, %v4691_v17  ;;  %v5092_v58 = vmul.f32 %v4904_v59, %v4703_v51 }
 0x480   :  { %v5068_v49 = vmul.f32 %v4904_v59, %v5818_v62  ;;  %v5088_v62 = vmul.f32 %v4902_v8, %v4833_v54  ;;  %v5096_v3 = vmul.f32 %v4902_v8, %v4839_v1  ;;  %v5100_v30 = vmul.f32 %v4904_v59, %v4715_v5 }
 0x481   :  { %v5104_v17 = vmul.f32 %v4902_v8, %v4845_v12  ;;  %v5108_v54 = vmul.f32 %v4904_v59, %v4727_v56  ;;  %v5112_v51 = vmul.f32 %v4902_v8, %v4851_v14  ;;  %v5116_v1 = vmul.f32 %v4904_v59, %v4739_v20 }
 0x482   :  { %v5120_v5 = vmul.f32 %v4902_v8, %v4857_v26  ;;  %v5124_v12 = vmul.f32 %v4904_v59, %v4751_v16  ;;  %v5128_v56 = vmul.f32 %v4902_v8, %v4863_v2  ;;  %v5132_v14 = vmul.f32 %v4904_v59, %v4763_v24 }
 0x483   :  { %5819 = vst [vmem:[#allocation19_spill] sm:$0xff] %v5116_v1  ;;  %v5136_v20 = vmul.f32 %v4902_v8, %v4869_v4  ;;  %v5825_v1 = vld [vmem:[#allocation29_spill] sm:$0xff] }
 0x484   :  { %5820 = vst [vmem:[#allocation21_spill] sm:$0xff] %v5120_v5  ;;  %v5140_v26 = vmul.f32 %v4904_v59, %v5825_v1  ;;  %v5827_v5 = vld [vmem:[#allocation32_spill] sm:$0xff] }
 0x485   :  { %5821 = vst [vmem:[#allocation23_spill] sm:$0xff] %v5124_v12  ;;  %v5144_v16 = vmul.f32 %v4902_v8, %v5827_v5  ;;  %v5828_v12 = vld [vmem:[#allocation27_spill] sm:$0xff] }
 0x486   :  { %5822 = vst [vmem:[#allocation25_spill] sm:$0xff] %v5128_v56  ;;  %v5148_v2 = vmul.f32 %v4904_v59, %v5828_v12  ;;  %v5829_v56 = vld [vmem:[#allocation15_spill] sm:$0xff]  ;;  %v5168_v12 = vadd.f32 %v4906_v63, %v4912_v21  ;;  %v5188_v21 = vadd.f32 %v4908_v57, %v4932_v18  ;;  %v5208_v18 = vadd.f32 %v4906_v63, %v4952_v40 }
 0x487   :  { %5823 = vst [vmem:[#allocation28_spill] sm:$0xff] %v5132_v14  ;;  %v5152_v24 = vmul.f32 %v4902_v8, %v5829_v56  ;;  %v5830_v14 = vld [vmem:[#allocation18_spill] sm:$0xff]  ;;  %v5172_v56 = vadd.f32 %v4908_v57, %v4916_v32  ;;  %v5192_v32 = vadd.f32 %v4906_v63, %v4936_v22  ;;  %v5212_v22 = vadd.f32 %v4908_v57, %v4956_v25 }
 0x488   :  { %5824 = vst [vmem:[#allocation13_spill] sm:$0xff] %v5136_v20  ;;  %v5156_v4 = vmul.f32 %v4904_v59, %v5830_v14  ;;  %v5831_v20 = vld [vmem:[#allocation14_spill] sm:$0xff]  ;;  %v5176_v14 = vadd.f32 %v4906_v63, %v4920_v29  ;;  %v5196_v29 = vadd.f32 %v4908_v57, %v4940_v55  ;;  %v5216_v55 = vadd.f32 %v4906_v63, %v4960_v48 }
 0x489   :  { %5826 = vst [vmem:[#allocation30_spill] sm:$0xff] %v5140_v26  ;;  %v5160_v1 = vmul.f32 %v4902_v8, %v5831_v20  ;;  %v5832_v26 = vld [vmem:[#allocation20_spill] sm:$0xff]  ;;  %v5180_v8 = vadd.f32 %v4908_v57, %v4924_v6  ;;  %v5200_v6 = vadd.f32 %v4906_v63, %v4944_v47  ;;  %v5220_v47 = vadd.f32 %v4908_v57, %v4964_v50 }
 0x48a   :  { %v5164_v5 = vmul.f32 %v4904_v59, %v5832_v26  ;;  %5833 = vst [vmem:[#allocation31_spill] sm:$0xff] %v5168_v12  ;;  %v5184_v59 = vadd.f32 %v4906_v63, %v4928_v44  ;;  %v5204_v44 = vadd.f32 %v4908_v57, %v4948_v45  ;;  %v5224_v45 = vadd.f32 %v4906_v63, %v4968_v39  ;;  %v5835_v20 = vld [vmem:[#allocation16_spill] sm:$0xff]  ;;  %v5836_v26 = vld [vmem:[#allocation17_spill] sm:$0xff] }
 0x48b   :  { %5834 = vst [vmem:[#allocation22_spill] sm:$0xff] %v5172_v56  ;;  %v5228_v40 = vadd.f32 %v4908_v57, %v4972_v33  ;;  %v5232_v25 = vadd.f32 %v4906_v63, %v4976_v37  ;;  %v5236_v48 = vadd.f32 %v4908_v57, %v4980_v52  ;;  %v5240_v50 = vadd.f32 %v4906_v63, %v4984_v0 }
 0x48c   :  { %v5244_v39 = vadd.f32 %v4908_v57, %v4988_v23  ;;  %v5248_v33 = vadd.f32 %v4906_v63, %v4992_v10  ;;  %v5252_v37 = vadd.f32 %v4908_v57, %v4996_v9  ;;  %v5256_v52 = vadd.f32 %v4906_v63, %v5000_v41 }
 0x48d   :  { %v5260_v0 = vadd.f32 %v4908_v57, %v5004_v31  ;;  %v5264_v23 = vadd.f32 %v4906_v63, %v5008_v53  ;;  %v5268_v10 = vadd.f32 %v4908_v57, %v5012_v19  ;;  %v5272_v9 = vadd.f32 %v4906_v63, %v5016_v42 }
 0x48e   :  { %v5276_v41 = vadd.f32 %v4908_v57, %v5020_v43  ;;  %v5280_v31 = vadd.f32 %v4906_v63, %v5024_v46  ;;  %v5284_v53 = vadd.f32 %v4908_v57, %v5028_v28  ;;  %v5288_v19 = vadd.f32 %v4906_v63, %v5032_v34 }
 0x48f   :  { %v5292_v42 = vadd.f32 %v4908_v57, %v5835_v20  ;;  %v5296_v43 = vadd.f32 %v4906_v63, %v5040_v7  ;;  %v5300_v46 = vadd.f32 %v4908_v57, %v5836_v26  ;;  %v5304_v28 = vadd.f32 %v4906_v63, %v5048_v15 }
 0x490   :  { %v5308_v34 = vadd.f32 %v4908_v57, %v5052_v36  ;;  %v5312_v20 = vadd.f32 %v4906_v63, %v5056_v13  ;;  %v5316_v7 = vadd.f32 %v4908_v57, %v5060_v38  ;;  %v5320_v26 = vadd.f32 %v4906_v63, %v5064_v27 }
 0x491   :  { %v5324_v15 = vadd.f32 %v4908_v57, %v5068_v49  ;;  %v5328_v36 = vadd.f32 %v4906_v63, %v5072_v60  ;;  %v5332_v13 = vadd.f32 %v4908_v57, %v5076_v11  ;;  %v5336_v38 = vadd.f32 %v4906_v63, %v5080_v61 }
 0x492   :  { %v5340_v27 = vadd.f32 %v4908_v57, %v5084_v35  ;;  %v5344_v49 = vadd.f32 %v4906_v63, %v5088_v62  ;;  %v5348_v60 = vadd.f32 %v4908_v57, %v5092_v58  ;;  %v5352_v11 = vadd.f32 %v4906_v63, %v5096_v3 }
 0x493   :  { %v5356_v61 = vadd.f32 %v4908_v57, %v5100_v30  ;;  %v5360_v35 = vadd.f32 %v4906_v63, %v5104_v17  ;;  %v5364_v62 = vadd.f32 %v4908_v57, %v5108_v54  ;;  %v5368_v58 = vadd.f32 %v4906_v63, %v5112_v51 }
 0x494   :  { %5837 = vst [vmem:[#allocation24_spill] sm:$0xff] %v5348_v60  ;;  %v5843_v60 = vld [vmem:[#allocation19_spill] sm:$0xff] }
 0x495   :  { %5838 = vst [vmem:[#allocation26_spill] sm:$0xff] %v5352_v11  ;;  %v5372_v3 = vadd.f32 %v4908_v57, %v5843_v60  ;;  %v5845_v11 = vld [vmem:[#allocation21_spill] sm:$0xff] }
 0x496   :  { %5839 = vst [vmem:[#allocation33_spill] sm:$0xff] %v5356_v61  ;;  %v5376_v30 = vadd.f32 %v4906_v63, %v5845_v11  ;;  %v5846_v61 = vld [vmem:[#allocation23_spill] sm:$0xff] }
 0x497   :  { %5840 = vst [vmem:[#allocation34_spill] sm:$0xff] %v5360_v35  ;;  %v5380_v17 = vadd.f32 %v4908_v57, %v5846_v61  ;;  %v5847_v35 = vld [vmem:[#allocation25_spill] sm:$0xff]  ;;  %v5400_v61 = vadd.f32 %v4906_v63, %v5144_v16  ;;  %v5420_v16 = vadd.f32 %v4908_v57, %v5164_v5  ;;  %v2102_v5 = vmax.f32 %v5208_v18, 0.0 }
 0x498   :  { %5841 = vst [vmem:[#allocation29_spill] sm:$0xff] %v5364_v62  ;;  %v5384_v54 = vadd.f32 %v4906_v63, %v5847_v35  ;;  %v5848_v62 = vld [vmem:[#allocation28_spill] sm:$0xff]  ;;  %v5404_v35 = vadd.f32 %v4908_v57, %v5148_v2  ;;  %v2103_v2 = vmax.f32 %v5212_v22, 0.0  ;;  %v2112_v18 = vmax.f32 %v5248_v33, 0.0 }
 0x499   :  { %5842 = vst [vmem:[#allocation32_spill] sm:$0xff] %v5368_v58  ;;  %v5388_v51 = vadd.f32 %v4908_v57, %v5848_v62  ;;  %v5849_v58 = vld [vmem:[#allocation13_spill] sm:$0xff]  ;;  %v5408_v62 = vadd.f32 %v4906_v63, %v5152_v24  ;;  %v2095_v24 = vmax.f32 %v5180_v8, 0.0  ;;  %v2105_v8 = vmax.f32 %v5220_v47, 0.0 }
 0x49a   :  { %5844 = vst [vmem:[#allocation27_spill] sm:$0xff] %v5372_v3  ;;  %v5392_v60 = vadd.f32 %v4906_v63, %v5849_v58  ;;  %v5851_v3 = vld [vmem:[#allocation30_spill] sm:$0xff]  ;;  %v5412_v58 = vadd.f32 %v4908_v57, %v5156_v4  ;;  %v2097_v4 = vmax.f32 %v5188_v21, 0.0  ;;  %v2107_v21 = vmax.f32 %v5228_v40, 0.0 }
 0x49b   :  { %v5396_v11 = vadd.f32 %v4908_v57, %v5851_v3  ;;  %5853 = vst [vmem:[#allocation14_spill] sm:$0xff] %v5400_v61  ;;  %v5416_v3 = vadd.f32 %v4906_v63, %v5160_v1  ;;  %v2099_v63 = vmax.f32 %v5196_v29, 0.0  ;;  %v2100_v1 = vmax.f32 %v5200_v6, 0.0  ;;  %v5859_v61 = vld [vmem:[#allocation24_spill] sm:$0xff] }
 0x49c   :  { %5850 = vst [vmem:[#allocation15_spill] sm:$0xff] %v5392_v60  ;;  %v2101_v57 = vmax.f32 %v5204_v44, 0.0  ;;  %v2109_v29 = vmax.f32 %v5236_v48, 0.0  ;;  %v2110_v6 = vmax.f32 %v5240_v50, 0.0  ;;  %v2111_v44 = vmax.f32 %v5244_v39, 0.0  ;;  %v5860_v56 = vld [vmem:[#allocation26_spill] sm:$0xff] }
 0x49d   :  { %5852 = vst [vmem:[#allocation18_spill] sm:$0xff] %v5396_v11  ;;  %v2113_v22 = vmax.f32 %v5252_v37, 0.0  ;;  %v2115_v47 = vmax.f32 %v5260_v0, 0.0  ;;  %v2117_v40 = vmax.f32 %v5268_v10, 0.0  ;;  %v2119_v48 = vmax.f32 %v5276_v41, 0.0  ;;  %v5861_v12 = vld [vmem:[#allocation33_spill] sm:$0xff] }
 0x49e   :  { %5854 = vst [vmem:[#allocation20_spill] sm:$0xff] %v5404_v35  ;;  %v2094_v35 = vmax.f32 %v5176_v14, 0.0  ;;  %v2104_v14 = vmax.f32 %v5216_v55, 0.0  ;;  %v2114_v55 = vmax.f32 %v5256_v52, 0.0  ;;  %v2120_v50 = vmax.f32 %v5280_v31, 0.0 }
 0x49f   :  { %5855 = vst [vmem:[#allocation16_spill] sm:$0xff] %v5408_v62  ;;  %v2096_v62 = vmax.f32 %v5184_v59, 0.0  ;;  %v2106_v59 = vmax.f32 %v5224_v45, 0.0  ;;  %v2116_v45 = vmax.f32 %v5264_v23, 0.0  ;;  %v2121_v39 = vmax.f32 %v5284_v53, 0.0 }
 0x4a0   :  { %5856 = vst [vmem:[#allocation17_spill] sm:$0xff] %v5412_v58  ;;  %v2098_v58 = vmax.f32 %v5192_v32, 0.0  ;;  %v2108_v32 = vmax.f32 %v5232_v25, 0.0  ;;  %v2118_v25 = vmax.f32 %v5272_v9, 0.0  ;;  %v2122_v33 = vmax.f32 %v5288_v19, 0.0  ;;  %v5864_v11 = vld [vmem:[#allocation32_spill] sm:$0xff] }
 0x4a1   :  { %5857 = vst [vmem:[#allocation19_spill] sm:$0xff] %v5416_v3  ;;  %v2123_v37 = vmax.f32 %v5292_v42, 0.0  ;;  %v2124_v52 = vmax.f32 %v5296_v43, 0.0  ;;  %v2125_v0 = vmax.f32 %v5300_v46, 0.0  ;;  %v2126_v23 = vmax.f32 %v5304_v28, 0.0  ;;  %v5863_v3 = vld [vmem:[#allocation29_spill] sm:$0xff] }
 0x4a2   :  { %5858 = vst [vmem:[#allocation21_spill] sm:$0xff] %v5420_v16  ;;  %v2127_v10 = vmax.f32 %v5308_v34, 0.0  ;;  %v2128_v9 = vmax.f32 %v5312_v20, 0.0  ;;  %v2129_v41 = vmax.f32 %v5316_v7, 0.0  ;;  %v2130_v31 = vmax.f32 %v5320_v26, 0.0  ;;  %v5862_v16 = vld [vmem:[#allocation34_spill] sm:$0xff] }
 0x4a3   :  { %v2131_v53 = vmax.f32 %v5324_v15, 0.0  ;;  %v2132_v19 = vmax.f32 %v5328_v36, 0.0  ;;  %v2133_v42 = vmax.f32 %v5332_v13, 0.0  ;;  %v2134_v43 = vmax.f32 %v5336_v38, 0.0  ;;  %v5865_v60 = vld [vmem:[#allocation27_spill] sm:$0xff] }
 0x4a4   :  { %v2135_v46 = vmax.f32 %v5340_v27, 0.0  ;;  %v2136_v28 = vmax.f32 %v5344_v49, 0.0  ;;  %v2137_v34 = vmax.f32 %v5859_v61, 0.0  ;;  %v2138_v20 = vmax.f32 %v5860_v56, 0.0  ;;  %v5866_v56 = vld [vmem:[#allocation15_spill] sm:$0xff] }
 0x4a5   :  { %v2139_v7 = vmax.f32 %v5861_v12, 0.0  ;;  %v2140_v26 = vmax.f32 %v5862_v16, 0.0  ;;  %v2141_v15 = vmax.f32 %v5863_v3, 0.0  ;;  %v2142_v36 = vmax.f32 %v5864_v11, 0.0  ;;  %v5867_v16 = vld [vmem:[#allocation18_spill] sm:$0xff] }
 0x4a6   :  { %v2143_v13 = vmax.f32 %v5865_v60, 0.0  ;;  %v2144_v38 = vmax.f32 %v5376_v30, 0.0  ;;  %v2145_v27 = vmax.f32 %v5380_v17, 0.0  ;;  %v2146_v49 = vmax.f32 %v5384_v54, 0.0  ;;  %v5868_v11 = vld [vmem:[#allocation14_spill] sm:$0xff]  ;;  %v5869_v30 = vld [vmem:[#allocation20_spill] sm:$0xff] }
 0x4a7   :  { %v2147_v61 = vmax.f32 %v5388_v51, 0.0  ;;  %v2148_v12 = vmax.f32 %v5866_v56, 0.0  ;;  %v2149_v3 = vmax.f32 %v5867_v16, 0.0  ;;  %v2150_v60 = vmax.f32 %v5868_v11, 0.0  ;;  %v5870_v54 = vld [vmem:[#allocation16_spill] sm:$0xff]  ;;  %v5871_v56 = vld [vmem:[#allocation17_spill] sm:$0xff] }
 0x4a8   :  { %v2151_v17 = vmax.f32 %v5869_v30, 0.0  ;;  %v2152_v51 = vmax.f32 %v5870_v54, 0.0  ;;  %v2153_v16 = vmax.f32 %v5871_v56, 0.0  ;;  %v5872_v11 = vld [vmem:[#allocation19_spill] sm:$0xff] }
 0x4a9   :  { %v2154_v30 = vmax.f32 %v5872_v11, 0.0  ;;  %v5873_v54 = vld [vmem:[#allocation21_spill] sm:$0xff]  ;;  %v5874_v11 = vld [vmem:[#allocation31_spill] sm:$0xff] }
 0x4aa   :  { %v2155_v56 = vmax.f32 %v5873_v54, 0.0  ;;  %v5875_v54 = vmax.f32 %v5874_v11, 0.0 }
 0x4ac   :  { %v2156_v11 = vpack.c.bf16 %v2094_v35, %v5875_v54  ;;  %v5876_v35 = vld [vmem:[#allocation22_spill] sm:$0xff] }
 0x4ad   :  { %v5877_v54 = vmax.f32 %v5876_v35, 0.0 }
 0x4af   :  { %v2157_v35 = vpack.c.bf16 %v2095_v24, %v5877_v54  ;;  %v2158_v24 = vpack.c.bf16 %v2098_v58, %v2096_v62  ;;  %v2159_v54 = vpack.c.bf16 %v2099_v63, %v2097_v4  ;;  %v2160_v58 = vpack.c.bf16 %v2102_v5, %v2100_v1 }
 0x4b0   :  { %v2161_v62 = vpack.c.bf16 %v2103_v2, %v2101_v57  ;;  %v2162_v4 = vpack.c.bf16 %v2106_v59, %v2104_v14  ;;  %v2163_v63 = vpack.c.bf16 %v2107_v21, %v2105_v8  ;;  %v2164_v1 = vpack.c.bf16 %v2110_v6, %v2108_v32 }
 0x4b1   :  { %v2165_v5 = vpack.c.bf16 %v2111_v44, %v2109_v29  ;;  %v2166_v2 = vpack.c.bf16 %v2114_v55, %v2112_v18  ;;  %v2167_v57 = vpack.c.bf16 %v2115_v47, %v2113_v22  ;;  %v2168_v14 = vpack.c.bf16 %v2118_v25, %v2116_v45 }
 0x4b2   :  { %v2169_v59 = vpack.c.bf16 %v2119_v48, %v2117_v40  ;;  %v2170_v8 = vpack.c.bf16 %v2122_v33, %v2120_v50  ;;  %v2171_v21 = vpack.c.bf16 %v2123_v37, %v2121_v39  ;;  %v2172_v6 = vpack.c.bf16 %v2126_v23, %v2124_v52 }
 0x4b3   :  { %v2173_v32 = vpack.c.bf16 %v2127_v10, %v2125_v0  ;;  %v2174_v29 = vpack.c.bf16 %v2130_v31, %v2128_v9  ;;  %v2175_v44 = vpack.c.bf16 %v2131_v53, %v2129_v41  ;;  %v2176_v18 = vpack.c.bf16 %v2134_v43, %v2132_v19 }
 0x4b4   :  { %v2177_v55 = vpack.c.bf16 %v2135_v46, %v2133_v42  ;;  %v2178_v22 = vpack.c.bf16 %v2138_v20, %v2136_v28  ;;  %v2179_v47 = vpack.c.bf16 %v2139_v7, %v2137_v34  ;;  %v2180_v25 = vpack.c.bf16 %v2142_v36, %v2140_v26  ;;  %2200 = vmatpush.bf16.xpose.msra.mxu2 %v2170_v8 }
 0x4b5   :  { %v2181_v45 = vpack.c.bf16 %v2143_v13, %v2141_v15  ;;  %v2182_v40 = vpack.c.bf16 %v2146_v49, %v2144_v38  ;;  %v2183_v48 = vpack.c.bf16 %v2147_v61, %v2145_v27  ;;  %v2184_v33 = vpack.c.bf16 %v2150_v60, %v2148_v12  ;;  %2213 = vmatpush.bf16.xpose.msra.mxu3 %v2171_v21 }
 0x4b6   :  { %v2185_v50 = vpack.c.bf16 %v2151_v17, %v2149_v3  ;;  %v2186_v37 = vpack.c.bf16 %v2154_v30, %v2152_v51  ;;  %v2187_v39 = vpack.c.bf16 %v2155_v56, %v2153_v16 }
 0x4b7   :  { %2672 = dma.done.wait [#allocation4 + $0x1], 32 }
 0x4b8   :  { %2673 = vsyncadd [#allocation4 + $0x1], 4294967264  ;;  %v2191_v52 = vld [vmem:[#allocation3] sm:$0x3]  ;;  %v2193_v53 = vstv %s5505_s8  ;;  %v2257_v28 = vlaneseq  ;;  %s2676_s18 = smov [#allocation6]   ;;  %s2269_s21 = sshll.u32 %s5506_s9, 4  ;;  %s2270_s21 = int_to_ptr.hbm [resolvable:$true] %s2269_s21 }
 0x4b9   :  { %2195 = vst [vmem:[#allocation1] ss:$9 sm:$0xff] %v2191_v52  ;;  %s2267_s7 = sshll.u32 %s2676_s18, 4  ;;  %s2268_s7 = int_to_ptr.vmem [resolvable:$true] %s2267_s7 }
 0x4ba   :  { %vm2259_vm13 = vcmp.lt.s32.totalorder %v2257_v28, 256 }
 0x4bc   :  { %2201 = vmatpush.bf16.xpose.msra.mxu2 %v2168_v14 }
 0x4bd   :  { %2214 = vmatpush.bf16.xpose.msra.mxu3 %v2169_v59 }
 0x4c0   :  { %v2196_v0 = vld [vmem:[#allocation1] sm:$0xff]  ;;  %v2197_v23 = vld [vmem:[#allocation1 + $0x9] sm:$0xff] }
 0x4c4   :  { %2202 = vmatpush.bf16.xpose.msra.mxu2 %v2166_v2 }
 0x4c5   :  { %2215 = vmatpush.bf16.xpose.msra.mxu3 %v2167_v57 }
 0x4cc   :  { %2203 = vmatpush.bf16.xpose.msra.mxu2 %v2164_v1 }
 0x4cd   :  { %2216 = vmatpush.bf16.xpose.msra.mxu3 %v2165_v5 }
 0x4d4   :  { %2204 = vmatpush.bf16.xpose.msra.mxu2 %v2162_v4 }
 0x4d5   :  { %2217 = vmatpush.bf16.xpose.msra.mxu3 %v2163_v63 }
 0x4dc   :  { %2205 = vmatpush.bf16.xpose.msra.mxu2 %v2160_v58 }
 0x4dd   :  { %2218 = vmatpush.bf16.xpose.msra.mxu3 %v2161_v62 }
 0x4e4   :  { %2206 = vmatpush.bf16.xpose.msra.mxu2 %v2158_v24 }
 0x4e5   :  { %2219 = vmatpush.bf16.xpose.msra.mxu3 %v2159_v54 }
 0x4ec   :  { %2207 = vmatpush.bf16.xpose.msra.mxu2 %v2156_v11 }
 0x4ed   :  { %2220 = vmatpush.bf16.xpose.msra.mxu3 %v2157_v35 }
 0x4f3   :  { %2208 = vmatmul.bf16.vlgmr.msra.gmra.mxu2 %v2196_v0 }
 0x4f4   :  { %2226 = vmatpush.bf16.xpose.msrb.mxu2 %v2186_v37  ;;  %2221 = vmatmul.bf16.vlgmr.msra.gmra.mxu3 %v2197_v23 }
 0x4f5   :  { %2239 = vmatpush.bf16.xpose.msrb.mxu3 %v2187_v39 }
 0x4fc   :  { %2227 = vmatpush.bf16.xpose.msrb.mxu2 %v2184_v33 }
 0x4fd   :  { %2240 = vmatpush.bf16.xpose.msrb.mxu3 %v2185_v50 }
 0x504   :  { %2228 = vmatpush.bf16.xpose.msrb.mxu2 %v2182_v40 }
 0x505   :  { %2241 = vmatpush.bf16.xpose.msrb.mxu3 %v2183_v48 }
 0x50c   :  { %2229 = vmatpush.bf16.xpose.msrb.mxu2 %v2180_v25 }
 0x50d   :  { %2242 = vmatpush.bf16.xpose.msrb.mxu3 %v2181_v45 }
 0x514   :  { %2230 = vmatpush.bf16.xpose.msrb.mxu2 %v2178_v22 }
 0x515   :  { %2243 = vmatpush.bf16.xpose.msrb.mxu3 %v2179_v47 }
 0x51c   :  { %2231 = vmatpush.bf16.xpose.msrb.mxu2 %v2176_v18 }
 0x51d   :  { %2244 = vmatpush.bf16.xpose.msrb.mxu3 %v2177_v55 }
 0x524   :  { %2232 = vmatpush.bf16.xpose.msrb.mxu2 %v2174_v29 }
 0x525   :  { %2245 = vmatpush.bf16.xpose.msrb.mxu3 %v2175_v44 }
 0x52c   :  { %2233 = vmatpush.bf16.xpose.msrb.mxu2 %v2172_v6 }
 0x52d   :  { %2246 = vmatpush.bf16.xpose.msrb.mxu3 %v2173_v32 }
 0x533   :  { %2234 = vmatmul.bf16.vlgmr.msrb.gmra.mxu2 %v2196_v0 }
 0x534   :  { %2247 = vmatmul.bf16.vlgmr.msrb.gmra.mxu3 %v2197_v23 }
 0x576   :  { %v2209_v10 = vpop.f32.mrf.mxu2 }
 0x577   :  { %v2222_v9 = vpop.f32.mrf.mxu3  ;;  %v2210_v43 = vadd.f32 %v2209_v10, %v2193_v53 }
 0x579   :  { %v2223_v20 = vadd.f32 %v2222_v9, %v2210_v43 }
 0x57e   :  { %v2211_v41 = vpop.f32.mrf.mxu2 }
 0x57f   :  { %v2224_v31 = vpop.f32.mrf.mxu3 }
 0x5b6   :  { %v2235_v19 = vpop.f32.mrf.mxu2 }
 0x5b7   :  { %v2248_v42 = vpop.f32.mrf.mxu3  ;;  %v2236_v46 = vadd.f32 %v2235_v19, %v2193_v53 }
 0x5b9   :  { %v2249_v34 = vadd.f32 %v2248_v42, %v2236_v46 }
 0x5bb   :  { %v2254_v7 = vrot.slane %v2249_v34, 7 }
 0x5bd   :  { %v2255_v26 = vsel %vm854_vm5, %v2223_v20, %v2254_v7 }
 0x5be   :  { %v2237_v15 = vpop.f32.mrf.mxu2  ;;  %2261 = vst.msk [vmem:[#allocation6] sm:$0x3] %vm2259_vm13, %v2255_v26 }
 0x5bf   :  { %v2250_v36 = vpop.f32.mrf.mxu3  ;;  %2272 = dma.vmem_to_hbm [thread:$0]  %s2268_s7, 32, %s2270_s21, [#allocation7]  }
 0x5c0   :  { %2674 = dma.done.wait [#allocation7], 32  }
 0x5c1   :  { %2675 = vsyncadd [#allocation7], 4294967264 }
 0x5c2   :  { %2277 = vsyncpa [#allocation7], 1 }
 0x5c3   :  { %2278 = vsyncmov [#allocation4] }
 0x5c6   :  { %s2279_s8 = vpop.sfrf %2278 }
 0x5c7   :  { %p2555_p0 = scmp.ne.s32.totalorder %s2279_s8, 0 }
 0x5c9   :  { %2283 = shalt.err (%p2555_p0)  }
 0x5ca   :  { %2285 = vsyncmov [#allocation4 + $0x1] }
 0x5cd   :  { %s2286_s9 = vpop.sfrf %2285 }
 0x5ce   :  { %p2556_p1 = scmp.ne.s32.totalorder %s2286_s9, 0 }
 0x5d0   :  { %2290 = shalt.err (%p2556_p1)  }

</bundles_post_ra>
